<compile_context>
chip_gen: v5e
topology: v5e:2x2
jax: 0.10.0
libtpu: 0.0.40
codegen_flags: <defaults>
</compile_context>

<pallas_src>
import jax
import jax.numpy as jnp
from jax.experimental import pallas as pl
from jax.experimental.pallas import tpu as pltpu

_EPS = 1e-5


def _make_resblock_kernel(H, W, Cin, Cout, pool1, pool2):
    HW = H * W

    def kernel(x_ref, g1_ref, b1_ref, a1_ref, w1_ref,
               g2_ref, b2_ref, a2_ref, w2_ref,
               o_ref, pad_ref):
        # ---------------- helpers ----------------
        def group_norm_relu(act, g_ref, b_ref, a_ref, pool):
            # act: (HW, C) f32.  PyTorch GroupNorm uses biased variance.
            ch_mean = jnp.mean(act, axis=0, keepdims=True)            # (1, C)
            ch_msq = jnp.mean(act * act, axis=0, keepdims=True)       # (1, C)
            if pool:   # channels-per-group > 1: pool channel stats within groups
                A = a_ref[...].astype(jnp.float32)                    # (C, C)
                mean = jnp.dot(ch_mean, A, preferred_element_type=jnp.float32)
                msq = jnp.dot(ch_msq, A, preferred_element_type=jnp.float32)
            else:      # groups == C (min(32, C) case for C <= 32)
                mean, msq = ch_mean, ch_msq
            inv = jax.lax.rsqrt(msq - mean * mean + _EPS)
            gamma = g_ref[...].astype(jnp.float32)                    # (1, C)
            beta = b_ref[...].astype(jnp.float32)                     # (1, C)
            y = (act - mean) * (inv * gamma) + beta
            return jnp.maximum(y, 0.0)

        def write_padded(act_hw_c, C):
            # zero the border, write the interior of the (H+2, W+2, C) scratch
            pad_ref[...] = jnp.zeros_like(pad_ref)
            pad_ref[pl.ds(1, H), pl.ds(1, W), :] = act_hw_c.reshape(H, W, C)

        def conv3x3(w_ref, c_in, c_out):
            acc = jnp.zeros((HW, c_out), jnp.float32)
            for t in range(9):                       # unrolled 3x3 taps
                dy, dx = divmod(t, 3)
                patch = pad_ref[pl.ds(dy, H), pl.ds(dx, W), :]        # (H, W, c_in)
                acc = acc + jnp.dot(patch.reshape(HW, c_in),
                                    w_ref[t].astype(jnp.float32),
                                    preferred_element_type=jnp.float32)
            return acc

        # ---------------- forward ----------------
        x = x_ref[0].astype(jnp.float32).reshape(HW, Cin)   # also the shortcut

        out = group_norm_relu(x, g1_ref, b1_ref, a1_ref, pool1)    # norm1 + relu
        write_padded(out, Cin)
        out = conv3x3(w1_ref, Cin, Cout)                           # conv1
        out = group_norm_relu(out, g2_ref, b2_ref, a2_ref, pool2)  # norm2 + relu
        write_padded(out, Cout)
        out = conv3x3(w2_ref, Cout, Cout)                          # conv2
        out = out + x                                              # + shortcut

        o_ref[0] = out.reshape(H, W, Cout).astype(o_ref.dtype)

    return kernel


def _group_avg_matrix(C, groups):
    cg = C // groups
    gid = jnp.arange(C) // cg
    return (gid[:, None] == gid[None, :]).astype(jnp.float32) / float(cg)


def resblock_pallas(x, params):
    """ResBlock forward.  x: (N, Cin, H, W) NCHW; params: dict of arrays."""
    N, Cin, H, W = x.shape
    w1 = params["conv1_w"]            # (Cout, Cin, 3, 3)
    w2 = params["conv2_w"]            # (Cout, Cout, 3, 3)
    Cout = w1.shape[0]
    # Residual add with downsample=None requires matching shapes (stride=1, planes==inplanes).
    assert Cout == Cin and w1.shape == (Cout, Cin, 3, 3) and w2.shape == (Cout, Cout, 3, 3)
    # TODO(synk): downsample / stride>1 shortcut path not implemented (module default:
    # stride=1, downsample=None), so it is not exercised here.

    g1 = min(32, Cin)
    g2 = min(32, Cout)
    assert Cin % g1 == 0 and Cout % g2 == 0
    pool1 = (Cin // g1) > 1
    pool2 = (Cout // g2) > 1

    # NCHW -> NHWC so the channel dim sits on the lane axis inside the kernel.
    x_nhwc = jnp.transpose(x, (0, 2, 3, 1))
    # conv taps: (Cout, Cin, kh, kw) -> (kh*kw, Cin, Cout)
    w1_taps = jnp.transpose(w1, (2, 3, 1, 0)).reshape(9, Cin, Cout).astype(jnp.float32)
    w2_taps = jnp.transpose(w2, (2, 3, 1, 0)).reshape(9, Cout, Cout).astype(jnp.float32)

    gamma1 = params["gn1_w"].reshape(1, Cin).astype(jnp.float32)
    beta1 = params["gn1_b"].reshape(1, Cin).astype(jnp.float32)
    gamma2 = params["gn2_w"].reshape(1, Cout).astype(jnp.float32)
    beta2 = params["gn2_b"].reshape(1, Cout).astype(jnp.float32)
    A1 = _group_avg_matrix(Cin, g1)
    A2 = _group_avg_matrix(Cout, g2)

    def full_spec(shape):
        zeros = (0,) * len(shape)
        return pl.BlockSpec(shape, lambda n: zeros)

    itemsize = jnp.dtype(x.dtype).itemsize
    param_bytes = sum(int(a.size) * 4 for a in
                      (gamma1, beta1, gamma2, beta2, A1, A2, w1_taps, w2_taps))
    cost = pl.CostEstimate(
        flops=int(2 * N * H * W * 9 * (Cin * Cout + Cout * Cout)
                  + 10 * N * H * W * (Cin + Cout)),
        transcendentals=int(N * (g1 + g2)),
        bytes_accessed=int(N * H * W * (Cin + Cout) * itemsize + param_bytes),
    )

    kernel = _make_resblock_kernel(H, W, Cin, Cout, pool1, pool2)

    out_nhwc = pl.pallas_call(
        kernel,
        out_shape=jax.ShapeDtypeStruct((N, H, W, Cout), x.dtype),
        grid_spec=pltpu.PrefetchScalarGridSpec(
            num_scalar_prefetch=0,
            grid=(N,),
            in_specs=[
                pl.BlockSpec((1, H, W, Cin), lambda n: (n, 0, 0, 0)),
                full_spec((1, Cin)), full_spec((1, Cin)),
                full_spec((Cin, Cin)), full_spec((9, Cin, Cout)),
                full_spec((1, Cout)), full_spec((1, Cout)),
                full_spec((Cout, Cout)), full_spec((9, Cout, Cout)),
            ],
            out_specs=pl.BlockSpec((1, H, W, Cout), lambda n: (n, 0, 0, 0)),
            scratch_shapes=[pltpu.VMEM((H + 2, W + 2, Cin), jnp.float32)],
        ),
        compiler_params=pltpu.CompilerParams(
            dimension_semantics=("parallel",),
        ),
        cost_estimate=cost,
    )(x_nhwc, gamma1, beta1, A1, w1_taps, gamma2, beta2, A2, w2_taps)

    # Back to NCHW to match the PyTorch module's output layout.
    return jnp.transpose(out_nhwc, (0, 3, 1, 2))


def _resblock_reference(x, params):
    """Pure-JAX reference matching the PyTorch module."""
    def gn(y, w, b, groups):
        n, c, h, w_ = y.shape
        yg = y.reshape(n, groups, c // groups, h, w_)
        mean = yg.mean(axis=(2, 3, 4), keepdims=True)
        var = ((yg - mean) ** 2).mean(axis=(2, 3, 4), keepdims=True)
        yn = ((yg - mean) / jnp.sqrt(var + _EPS)).reshape(n, c, h, w_)
        return yn * w.reshape(1, c, 1, 1) + b.reshape(1, c, 1, 1)

    def conv(y, w):
        return jax.lax.conv_general_dilated(
            y, w, window_strides=(1, 1), padding=((1, 1), (1, 1)),
            dimension_numbers=("NCHW", "OIHW", "NCHW"),
            precision=jax.lax.Precision.HIGHEST)

    cin = x.shape[1]
    cout = params["conv1_w"].shape[0]
    shortcut = x
    out = jnp.maximum(gn(x, params["gn1_w"], params["gn1_b"], min(32, cin)), 0.0)
    out = conv(out, params["conv1_w"])
    out = jnp.maximum(gn(out, params["gn2_w"], params["gn2_b"], min(32, cout)), 0.0)
    out = conv(out, params["conv2_w"])
    return out + shortcut


if __name__ == "__main__":
    key = jax.random.PRNGKey(0)
    kx, k1, k2, k3, k4, k5, k6 = jax.random.split(key, 7)

    N, C, H, W = 2, 4, 16, 16          # inplanes = planes = 4, stride = 1
    x = jax.random.normal(kx, (N, C, H, W), dtype=jnp.float32)
    params = {
        "gn1_w": 1.0 + 0.1 * jax.random.normal(k1, (C,), jnp.float32),
        "gn1_b": 0.1 * jax.random.normal(k2, (C,), jnp.float32),
        "conv1_w": 0.2 * jax.random.normal(k3, (C, C, 3, 3), jnp.float32),
        "gn2_w": 1.0 + 0.1 * jax.random.normal(k4, (C,), jnp.float32),
        "gn2_b": 0.1 * jax.random.normal(k5, (C,), jnp.float32),
        "conv2_w": 0.2 * jax.random.normal(k6, (C, C, 3, 3), jnp.float32),
    }

    y = resblock_pallas(x, params)
    jax.block_until_ready(y)

    y_ref = _resblock_reference(x, params)
    assert y.shape == y_ref.shape == (N, C, H, W), y.shape
    assert y.dtype == x.dtype
    err = float(jnp.max(jnp.abs(y - y_ref)))
    assert err < 2e-3, f"max abs error {err}"

    print("KERNEL_OK")
</pallas_src>

<mosaic_0001>
module attributes {stable_mosaic.version = 11 : i64} {
  func.func @kernel(%arg0: i32, %arg1: memref<1x16x16x4xf32, #tpu.memory_space<vmem>>, %arg2: memref<1x4xf32, #tpu.memory_space<vmem>>, %arg3: memref<1x4xf32, #tpu.memory_space<vmem>>, %arg4: memref<4x4xf32, #tpu.memory_space<vmem>>, %arg5: memref<9x4x4xf32, #tpu.memory_space<vmem>>, %arg6: memref<1x4xf32, #tpu.memory_space<vmem>>, %arg7: memref<1x4xf32, #tpu.memory_space<vmem>>, %arg8: memref<4x4xf32, #tpu.memory_space<vmem>>, %arg9: memref<9x4x4xf32, #tpu.memory_space<vmem>>, %arg10: memref<1x16x16x4xf32, #tpu.memory_space<vmem>>, %arg11: memref<18x18x4xf32, #tpu.memory_space<vmem>>) attributes {dimension_semantics = [#tpu.dimension_semantics<parallel>], iteration_bounds = array<i64: 2>, scalar_prefetch = 0 : i64, scratch_operands = 1 : i64, tpu.core_type = #tpu.core_type<tc>, window_params = [{transform_indices = @transform_0, window_bounds = array<i64: 1, 16, 16, 4>}, {pipeline_mode = #tpu.pipeline_mode<synchronous>, transform_indices = @transform_1, window_bounds = array<i64: 1, 4>}, {pipeline_mode = #tpu.pipeline_mode<synchronous>, transform_indices = @transform_2, window_bounds = array<i64: 1, 4>}, {pipeline_mode = #tpu.pipeline_mode<synchronous>, transform_indices = @transform_3, window_bounds = array<i64: 4, 4>}, {pipeline_mode = #tpu.pipeline_mode<synchronous>, transform_indices = @transform_4, window_bounds = array<i64: 9, 4, 4>}, {pipeline_mode = #tpu.pipeline_mode<synchronous>, transform_indices = @transform_5, window_bounds = array<i64: 1, 4>}, {pipeline_mode = #tpu.pipeline_mode<synchronous>, transform_indices = @transform_6, window_bounds = array<i64: 1, 4>}, {pipeline_mode = #tpu.pipeline_mode<synchronous>, transform_indices = @transform_7, window_bounds = array<i64: 4, 4>}, {pipeline_mode = #tpu.pipeline_mode<synchronous>, transform_indices = @transform_8, window_bounds = array<i64: 9, 4, 4>}, {transform_indices = @transform_9, window_bounds = array<i64: 1, 16, 16, 4>}]} {
    %c0 = arith.constant 0 : index
    %c0_0 = arith.constant 0 : index
    %c0_1 = arith.constant 0 : index
    %c0_2 = arith.constant 0 : index
    %0 = vector.load %arg1[%c0, %c0_0, %c0_1, %c0_2] : memref<1x16x16x4xf32, #tpu.memory_space<vmem>>, vector<1x16x16x4xf32>
    %1 = vector.shape_cast %0 : vector<1x16x16x4xf32> to vector<16x16x4xf32>
    %2 = vector.shape_cast %1 : vector<16x16x4xf32> to vector<256x4xf32>
    %cst = arith.constant dense<0.000000e+00> : vector<4xf32>
    %3 = vector.multi_reduction <add>, %2, %cst [0] : vector<256x4xf32> to vector<4xf32>
    %4 = vector.shape_cast %3 : vector<4xf32> to vector<1x4xf32>
    %cst_3 = arith.constant 2.560000e+02 : f32
    %5 = vector.broadcast %cst_3 : f32 to vector<1x4xf32>
    %6 = arith.divf %4, %5 : vector<1x4xf32>
    %7 = arith.mulf %2, %2 : vector<256x4xf32>
    %cst_4 = arith.constant dense<0.000000e+00> : vector<4xf32>
    %8 = vector.multi_reduction <add>, %7, %cst_4 [0] : vector<256x4xf32> to vector<4xf32>
    %9 = vector.shape_cast %8 : vector<4xf32> to vector<1x4xf32>
    %cst_5 = arith.constant 2.560000e+02 : f32
    %10 = vector.broadcast %cst_5 : f32 to vector<1x4xf32>
    %11 = arith.divf %9, %10 : vector<1x4xf32>
    %12 = arith.mulf %6, %6 : vector<1x4xf32>
    %13 = arith.subf %11, %12 : vector<1x4xf32>
    %cst_6 = arith.constant 9.99999974E-6 : f32
    %14 = vector.broadcast %cst_6 : f32 to vector<1x4xf32>
    %15 = arith.addf %13, %14 : vector<1x4xf32>
    %16 = math.rsqrt %15 : vector<1x4xf32>
    %c0_7 = arith.constant 0 : index
    %c0_8 = arith.constant 0 : index
    %17 = vector.load %arg2[%c0_7, %c0_8] : memref<1x4xf32, #tpu.memory_space<vmem>>, vector<1x4xf32>
    %c0_9 = arith.constant 0 : index
    %c0_10 = arith.constant 0 : index
    %18 = vector.load %arg3[%c0_9, %c0_10] : memref<1x4xf32, #tpu.memory_space<vmem>>, vector<1x4xf32>
    %19 = vector.broadcast %6 : vector<1x4xf32> to vector<256x4xf32>
    %20 = arith.subf %2, %19 : vector<256x4xf32>
    %21 = arith.mulf %16, %17 : vector<1x4xf32>
    %22 = vector.broadcast %21 : vector<1x4xf32> to vector<256x4xf32>
    %23 = arith.mulf %20, %22 : vector<256x4xf32>
    %24 = vector.broadcast %18 : vector<1x4xf32> to vector<256x4xf32>
    %25 = arith.addf %23, %24 : vector<256x4xf32>
    %cst_11 = arith.constant 0.000000e+00 : f32
    %26 = vector.broadcast %cst_11 : f32 to vector<256x4xf32>
    %27 = arith.maximumf %25, %26 : vector<256x4xf32>
    %cst_12 = arith.constant 0.000000e+00 : f32
    %28 = vector.broadcast %cst_12 : f32 to vector<18x18x4xf32>
    %c0_13 = arith.constant 0 : index
    %c0_14 = arith.constant 0 : index
    %c0_15 = arith.constant 0 : index
    %29 = vector.load %arg11[%c0_13, %c0_14, %c0_15] : memref<18x18x4xf32, #tpu.memory_space<vmem>>, vector<18x18x4xf32>
    tpu.vector_store %arg11[%c0_13, %c0_14, %c0_15], %28 {strides = array<i32>} : memref<18x18x4xf32, #tpu.memory_space<vmem>>, vector<18x18x4xf32>,
    %30 = vector.shape_cast %27 : vector<256x4xf32> to vector<16x16x4xf32>
    %c1 = arith.constant 1 : index
    %c1_16 = arith.constant 1 : index
    %c0_17 = arith.constant 0 : index
    %31 = vector.load %arg11[%c1, %c1_16, %c0_17] : memref<18x18x4xf32, #tpu.memory_space<vmem>>, vector<16x16x4xf32>
    tpu.vector_store %arg11[%c1, %c1_16, %c0_17], %30 {strides = array<i32>} : memref<18x18x4xf32, #tpu.memory_space<vmem>>, vector<16x16x4xf32>,
    %cst_18 = arith.constant 0.000000e+00 : f32
    %32 = vector.broadcast %cst_18 : f32 to vector<256x4xf32>
    %c0_19 = arith.constant 0 : index
    %c0_20 = arith.constant 0 : index
    %c0_21 = arith.constant 0 : index
    %33 = vector.load %arg11[%c0_19, %c0_20, %c0_21] : memref<18x18x4xf32, #tpu.memory_space<vmem>>, vector<16x16x4xf32>
    %34 = vector.shape_cast %33 : vector<16x16x4xf32> to vector<256x4xf32>
    %c0_22 = arith.constant 0 : index
    %c0_23 = arith.constant 0 : index
    %c0_24 = arith.constant 0 : index
    %35 = vector.load %arg5[%c0_22, %c0_23, %c0_24] : memref<9x4x4xf32, #tpu.memory_space<vmem>>, vector<1x4x4xf32>
    %36 = vector.shape_cast %35 : vector<1x4x4xf32> to vector<4x4xf32>
    %cst_25 = arith.constant dense<0.000000e+00> : vector<256x4xf32>
    %37 = tpu.matmul %34, %36, %cst_25 {dimension_numbers = #tpu.dot_dimension_numbers<[1], [0], [0], [1], [0, 0, 1, 1], [], []>} : vector<256x4xf32>, vector<4x4xf32>, vector<256x4xf32> -> vector<256x4xf32>
    %38 = arith.addf %32, %37 : vector<256x4xf32>
    %c0_26 = arith.constant 0 : index
    %c1_27 = arith.constant 1 : index
    %c0_28 = arith.constant 0 : index
    %39 = vector.load %arg11[%c0_26, %c1_27, %c0_28] : memref<18x18x4xf32, #tpu.memory_space<vmem>>, vector<16x16x4xf32>
    %40 = vector.shape_cast %39 : vector<16x16x4xf32> to vector<256x4xf32>
    %c1_29 = arith.constant 1 : index
    %c0_30 = arith.constant 0 : index
    %c0_31 = arith.constant 0 : index
    %41 = vector.load %arg5[%c1_29, %c0_30, %c0_31] : memref<9x4x4xf32, #tpu.memory_space<vmem>>, vector<1x4x4xf32>
    %42 = vector.shape_cast %41 : vector<1x4x4xf32> to vector<4x4xf32>
    %cst_32 = arith.constant dense<0.000000e+00> : vector<256x4xf32>
    %43 = tpu.matmul %40, %42, %cst_32 {dimension_numbers = #tpu.dot_dimension_numbers<[1], [0], [0], [1], [0, 0, 1, 1], [], []>} : vector<256x4xf32>, vector<4x4xf32>, vector<256x4xf32> -> vector<256x4xf32>
    %44 = arith.addf %38, %43 : vector<256x4xf32>
    %c0_33 = arith.constant 0 : index
    %c2 = arith.constant 2 : index
    %c0_34 = arith.constant 0 : index
    %45 = vector.load %arg11[%c0_33, %c2, %c0_34] : memref<18x18x4xf32, #tpu.memory_space<vmem>>, vector<16x16x4xf32>
    %46 = vector.shape_cast %45 : vector<16x16x4xf32> to vector<256x4xf32>
    %c2_35 = arith.constant 2 : index
    %c0_36 = arith.constant 0 : index
    %c0_37 = arith.constant 0 : index
    %47 = vector.load %arg5[%c2_35, %c0_36, %c0_37] : memref<9x4x4xf32, #tpu.memory_space<vmem>>, vector<1x4x4xf32>
    %48 = vector.shape_cast %47 : vector<1x4x4xf32> to vector<4x4xf32>
    %cst_38 = arith.constant dense<0.000000e+00> : vector<256x4xf32>
    %49 = tpu.matmul %46, %48, %cst_38 {dimension_numbers = #tpu.dot_dimension_numbers<[1], [0], [0], [1], [0, 0, 1, 1], [], []>} : vector<256x4xf32>, vector<4x4xf32>, vector<256x4xf32> -> vector<256x4xf32>
    %50 = arith.addf %44, %49 : vector<256x4xf32>
    %c1_39 = arith.constant 1 : index
    %c0_40 = arith.constant 0 : index
    %c0_41 = arith.constant 0 : index
    %51 = vector.load %arg11[%c1_39, %c0_40, %c0_41] : memref<18x18x4xf32, #tpu.memory_space<vmem>>, vector<16x16x4xf32>
    %52 = vector.shape_cast %51 : vector<16x16x4xf32> to vector<256x4xf32>
    %c3 = arith.constant 3 : index
    %c0_42 = arith.constant 0 : index
    %c0_43 = arith.constant 0 : index
    %53 = vector.load %arg5[%c3, %c0_42, %c0_43] : memref<9x4x4xf32, #tpu.memory_space<vmem>>, vector<1x4x4xf32>
    %54 = vector.shape_cast %53 : vector<1x4x4xf32> to vector<4x4xf32>
    %cst_44 = arith.constant dense<0.000000e+00> : vector<256x4xf32>
    %55 = tpu.matmul %52, %54, %cst_44 {dimension_numbers = #tpu.dot_dimension_numbers<[1], [0], [0], [1], [0, 0, 1, 1], [], []>} : vector<256x4xf32>, vector<4x4xf32>, vector<256x4xf32> -> vector<256x4xf32>
    %56 = arith.addf %50, %55 : vector<256x4xf32>
    %c1_45 = arith.constant 1 : index
    %c1_46 = arith.constant 1 : index
    %c0_47 = arith.constant 0 : index
    %57 = vector.load %arg11[%c1_45, %c1_46, %c0_47] : memref<18x18x4xf32, #tpu.memory_space<vmem>>, vector<16x16x4xf32>
    %58 = vector.shape_cast %57 : vector<16x16x4xf32> to vector<256x4xf32>
    %c4 = arith.constant 4 : index
    %c0_48 = arith.constant 0 : index
    %c0_49 = arith.constant 0 : index
    %59 = vector.load %arg5[%c4, %c0_48, %c0_49] : memref<9x4x4xf32, #tpu.memory_space<vmem>>, vector<1x4x4xf32>
    %60 = vector.shape_cast %59 : vector<1x4x4xf32> to vector<4x4xf32>
    %cst_50 = arith.constant dense<0.000000e+00> : vector<256x4xf32>
    %61 = tpu.matmul %58, %60, %cst_50 {dimension_numbers = #tpu.dot_dimension_numbers<[1], [0], [0], [1], [0, 0, 1, 1], [], []>} : vector<256x4xf32>, vector<4x4xf32>, vector<256x4xf32> -> vector<256x4xf32>
    %62 = arith.addf %56, %61 : vector<256x4xf32>
    %c1_51 = arith.constant 1 : index
    %c2_52 = arith.constant 2 : index
    %c0_53 = arith.constant 0 : index
    %63 = vector.load %arg11[%c1_51, %c2_52, %c0_53] : memref<18x18x4xf32, #tpu.memory_space<vmem>>, vector<16x16x4xf32>
    %64 = vector.shape_cast %63 : vector<16x16x4xf32> to vector<256x4xf32>
    %c5 = arith.constant 5 : index
    %c0_54 = arith.constant 0 : index
    %c0_55 = arith.constant 0 : index
    %65 = vector.load %arg5[%c5, %c0_54, %c0_55] : memref<9x4x4xf32, #tpu.memory_space<vmem>>, vector<1x4x4xf32>
    %66 = vector.shape_cast %65 : vector<1x4x4xf32> to vector<4x4xf32>
    %cst_56 = arith.constant dense<0.000000e+00> : vector<256x4xf32>
    %67 = tpu.matmul %64, %66, %cst_56 {dimension_numbers = #tpu.dot_dimension_numbers<[1], [0], [0], [1], [0, 0, 1, 1], [], []>} : vector<256x4xf32>, vector<4x4xf32>, vector<256x4xf32> -> vector<256x4xf32>
    %68 = arith.addf %62, %67 : vector<256x4xf32>
    %c2_57 = arith.constant 2 : index
    %c0_58 = arith.constant 0 : index
    %c0_59 = arith.constant 0 : index
    %69 = vector.load %arg11[%c2_57, %c0_58, %c0_59] : memref<18x18x4xf32, #tpu.memory_space<vmem>>, vector<16x16x4xf32>
    %70 = vector.shape_cast %69 : vector<16x16x4xf32> to vector<256x4xf32>
    %c6 = arith.constant 6 : index
    %c0_60 = arith.constant 0 : index
    %c0_61 = arith.constant 0 : index
    %71 = vector.load %arg5[%c6, %c0_60, %c0_61] : memref<9x4x4xf32, #tpu.memory_space<vmem>>, vector<1x4x4xf32>
    %72 = vector.shape_cast %71 : vector<1x4x4xf32> to vector<4x4xf32>
    %cst_62 = arith.constant dense<0.000000e+00> : vector<256x4xf32>
    %73 = tpu.matmul %70, %72, %cst_62 {dimension_numbers = #tpu.dot_dimension_numbers<[1], [0], [0], [1], [0, 0, 1, 1], [], []>} : vector<256x4xf32>, vector<4x4xf32>, vector<256x4xf32> -> vector<256x4xf32>
    %74 = arith.addf %68, %73 : vector<256x4xf32>
    %c2_63 = arith.constant 2 : index
    %c1_64 = arith.constant 1 : index
    %c0_65 = arith.constant 0 : index
    %75 = vector.load %arg11[%c2_63, %c1_64, %c0_65] : memref<18x18x4xf32, #tpu.memory_space<vmem>>, vector<16x16x4xf32>
    %76 = vector.shape_cast %75 : vector<16x16x4xf32> to vector<256x4xf32>
    %c7 = arith.constant 7 : index
    %c0_66 = arith.constant 0 : index
    %c0_67 = arith.constant 0 : index
    %77 = vector.load %arg5[%c7, %c0_66, %c0_67] : memref<9x4x4xf32, #tpu.memory_space<vmem>>, vector<1x4x4xf32>
    %78 = vector.shape_cast %77 : vector<1x4x4xf32> to vector<4x4xf32>
    %cst_68 = arith.constant dense<0.000000e+00> : vector<256x4xf32>
    %79 = tpu.matmul %76, %78, %cst_68 {dimension_numbers = #tpu.dot_dimension_numbers<[1], [0], [0], [1], [0, 0, 1, 1], [], []>} : vector<256x4xf32>, vector<4x4xf32>, vector<256x4xf32> -> vector<256x4xf32>
    %80 = arith.addf %74, %79 : vector<256x4xf32>
    %c2_69 = arith.constant 2 : index
    %c2_70 = arith.constant 2 : index
    %c0_71 = arith.constant 0 : index
    %81 = vector.load %arg11[%c2_69, %c2_70, %c0_71] : memref<18x18x4xf32, #tpu.memory_space<vmem>>, vector<16x16x4xf32>
    %82 = vector.shape_cast %81 : vector<16x16x4xf32> to vector<256x4xf32>
    %c8 = arith.constant 8 : index
    %c0_72 = arith.constant 0 : index
    %c0_73 = arith.constant 0 : index
    %83 = vector.load %arg5[%c8, %c0_72, %c0_73] : memref<9x4x4xf32, #tpu.memory_space<vmem>>, vector<1x4x4xf32>
    %84 = vector.shape_cast %83 : vector<1x4x4xf32> to vector<4x4xf32>
    %cst_74 = arith.constant dense<0.000000e+00> : vector<256x4xf32>
    %85 = tpu.matmul %82, %84, %cst_74 {dimension_numbers = #tpu.dot_dimension_numbers<[1], [0], [0], [1], [0, 0, 1, 1], [], []>} : vector<256x4xf32>, vector<4x4xf32>, vector<256x4xf32> -> vector<256x4xf32>
    %86 = arith.addf %80, %85 : vector<256x4xf32>
    %cst_75 = arith.constant dense<0.000000e+00> : vector<4xf32>
    %87 = vector.multi_reduction <add>, %86, %cst_75 [0] : vector<256x4xf32> to vector<4xf32>
    %88 = vector.shape_cast %87 : vector<4xf32> to vector<1x4xf32>
    %cst_76 = arith.constant 2.560000e+02 : f32
    %89 = vector.broadcast %cst_76 : f32 to vector<1x4xf32>
    %90 = arith.divf %88, %89 : vector<1x4xf32>
    %91 = arith.mulf %86, %86 : vector<256x4xf32>
    %cst_77 = arith.constant dense<0.000000e+00> : vector<4xf32>
    %92 = vector.multi_reduction <add>, %91, %cst_77 [0] : vector<256x4xf32> to vector<4xf32>
    %93 = vector.shape_cast %92 : vector<4xf32> to vector<1x4xf32>
    %cst_78 = arith.constant 2.560000e+02 : f32
    %94 = vector.broadcast %cst_78 : f32 to vector<1x4xf32>
    %95 = arith.divf %93, %94 : vector<1x4xf32>
    %96 = arith.mulf %90, %90 : vector<1x4xf32>
    %97 = arith.subf %95, %96 : vector<1x4xf32>
    %cst_79 = arith.constant 9.99999974E-6 : f32
    %98 = vector.broadcast %cst_79 : f32 to vector<1x4xf32>
    %99 = arith.addf %97, %98 : vector<1x4xf32>
    %100 = math.rsqrt %99 : vector<1x4xf32>
    %c0_80 = arith.constant 0 : index
    %c0_81 = arith.constant 0 : index
    %101 = vector.load %arg6[%c0_80, %c0_81] : memref<1x4xf32, #tpu.memory_space<vmem>>, vector<1x4xf32>
    %c0_82 = arith.constant 0 : index
    %c0_83 = arith.constant 0 : index
    %102 = vector.load %arg7[%c0_82, %c0_83] : memref<1x4xf32, #tpu.memory_space<vmem>>, vector<1x4xf32>
    %103 = vector.broadcast %90 : vector<1x4xf32> to vector<256x4xf32>
    %104 = arith.subf %86, %103 : vector<256x4xf32>
    %105 = arith.mulf %100, %101 : vector<1x4xf32>
    %106 = vector.broadcast %105 : vector<1x4xf32> to vector<256x4xf32>
    %107 = arith.mulf %104, %106 : vector<256x4xf32>
    %108 = vector.broadcast %102 : vector<1x4xf32> to vector<256x4xf32>
    %109 = arith.addf %107, %108 : vector<256x4xf32>
    %cst_84 = arith.constant 0.000000e+00 : f32
    %110 = vector.broadcast %cst_84 : f32 to vector<256x4xf32>
    %111 = arith.maximumf %109, %110 : vector<256x4xf32>
    %cst_85 = arith.constant 0.000000e+00 : f32
    %112 = vector.broadcast %cst_85 : f32 to vector<18x18x4xf32>
    %c0_86 = arith.constant 0 : index
    %c0_87 = arith.constant 0 : index
    %c0_88 = arith.constant 0 : index
    %113 = vector.load %arg11[%c0_86, %c0_87, %c0_88] : memref<18x18x4xf32, #tpu.memory_space<vmem>>, vector<18x18x4xf32>
    tpu.vector_store %arg11[%c0_86, %c0_87, %c0_88], %112 {strides = array<i32>} : memref<18x18x4xf32, #tpu.memory_space<vmem>>, vector<18x18x4xf32>,
    %114 = vector.shape_cast %111 : vector<256x4xf32> to vector<16x16x4xf32>
    %c1_89 = arith.constant 1 : index
    %c1_90 = arith.constant 1 : index
    %c0_91 = arith.constant 0 : index
    %115 = vector.load %arg11[%c1_89, %c1_90, %c0_91] : memref<18x18x4xf32, #tpu.memory_space<vmem>>, vector<16x16x4xf32>
    tpu.vector_store %arg11[%c1_89, %c1_90, %c0_91], %114 {strides = array<i32>} : memref<18x18x4xf32, #tpu.memory_space<vmem>>, vector<16x16x4xf32>,
    %cst_92 = arith.constant 0.000000e+00 : f32
    %116 = vector.broadcast %cst_92 : f32 to vector<256x4xf32>
    %c0_93 = arith.constant 0 : index
    %c0_94 = arith.constant 0 : index
    %c0_95 = arith.constant 0 : index
    %117 = vector.load %arg11[%c0_93, %c0_94, %c0_95] : memref<18x18x4xf32, #tpu.memory_space<vmem>>, vector<16x16x4xf32>
    %118 = vector.shape_cast %117 : vector<16x16x4xf32> to vector<256x4xf32>
    %c0_96 = arith.constant 0 : index
    %c0_97 = arith.constant 0 : index
    %c0_98 = arith.constant 0 : index
    %119 = vector.load %arg9[%c0_96, %c0_97, %c0_98] : memref<9x4x4xf32, #tpu.memory_space<vmem>>, vector<1x4x4xf32>
    %120 = vector.shape_cast %119 : vector<1x4x4xf32> to vector<4x4xf32>
    %cst_99 = arith.constant dense<0.000000e+00> : vector<256x4xf32>
    %121 = tpu.matmul %118, %120, %cst_99 {dimension_numbers = #tpu.dot_dimension_numbers<[1], [0], [0], [1], [0, 0, 1, 1], [], []>} : vector<256x4xf32>, vector<4x4xf32>, vector<256x4xf32> -> vector<256x4xf32>
    %122 = arith.addf %116, %121 : vector<256x4xf32>
    %c0_100 = arith.constant 0 : index
    %c1_101 = arith.constant 1 : index
    %c0_102 = arith.constant 0 : index
    %123 = vector.load %arg11[%c0_100, %c1_101, %c0_102] : memref<18x18x4xf32, #tpu.memory_space<vmem>>, vector<16x16x4xf32>
    %124 = vector.shape_cast %123 : vector<16x16x4xf32> to vector<256x4xf32>
    %c1_103 = arith.constant 1 : index
    %c0_104 = arith.constant 0 : index
    %c0_105 = arith.constant 0 : index
    %125 = vector.load %arg9[%c1_103, %c0_104, %c0_105] : memref<9x4x4xf32, #tpu.memory_space<vmem>>, vector<1x4x4xf32>
    %126 = vector.shape_cast %125 : vector<1x4x4xf32> to vector<4x4xf32>
    %cst_106 = arith.constant dense<0.000000e+00> : vector<256x4xf32>
    %127 = tpu.matmul %124, %126, %cst_106 {dimension_numbers = #tpu.dot_dimension_numbers<[1], [0], [0], [1], [0, 0, 1, 1], [], []>} : vector<256x4xf32>, vector<4x4xf32>, vector<256x4xf32> -> vector<256x4xf32>
    %128 = arith.addf %122, %127 : vector<256x4xf32>
    %c0_107 = arith.constant 0 : index
    %c2_108 = arith.constant 2 : index
    %c0_109 = arith.constant 0 : index
    %129 = vector.load %arg11[%c0_107, %c2_108, %c0_109] : memref<18x18x4xf32, #tpu.memory_space<vmem>>, vector<16x16x4xf32>
    %130 = vector.shape_cast %129 : vector<16x16x4xf32> to vector<256x4xf32>
    %c2_110 = arith.constant 2 : index
    %c0_111 = arith.constant 0 : index
    %c0_112 = arith.constant 0 : index
    %131 = vector.load %arg9[%c2_110, %c0_111, %c0_112] : memref<9x4x4xf32, #tpu.memory_space<vmem>>, vector<1x4x4xf32>
    %132 = vector.shape_cast %131 : vector<1x4x4xf32> to vector<4x4xf32>
    %cst_113 = arith.constant dense<0.000000e+00> : vector<256x4xf32>
    %133 = tpu.matmul %130, %132, %cst_113 {dimension_numbers = #tpu.dot_dimension_numbers<[1], [0], [0], [1], [0, 0, 1, 1], [], []>} : vector<256x4xf32>, vector<4x4xf32>, vector<256x4xf32> -> vector<256x4xf32>
    %134 = arith.addf %128, %133 : vector<256x4xf32>
    %c1_114 = arith.constant 1 : index
    %c0_115 = arith.constant 0 : index
    %c0_116 = arith.constant 0 : index
    %135 = vector.load %arg11[%c1_114, %c0_115, %c0_116] : memref<18x18x4xf32, #tpu.memory_space<vmem>>, vector<16x16x4xf32>
    %136 = vector.shape_cast %135 : vector<16x16x4xf32> to vector<256x4xf32>
    %c3_117 = arith.constant 3 : index
    %c0_118 = arith.constant 0 : index
    %c0_119 = arith.constant 0 : index
    %137 = vector.load %arg9[%c3_117, %c0_118, %c0_119] : memref<9x4x4xf32, #tpu.memory_space<vmem>>, vector<1x4x4xf32>
    %138 = vector.shape_cast %137 : vector<1x4x4xf32> to vector<4x4xf32>
    %cst_120 = arith.constant dense<0.000000e+00> : vector<256x4xf32>
    %139 = tpu.matmul %136, %138, %cst_120 {dimension_numbers = #tpu.dot_dimension_numbers<[1], [0], [0], [1], [0, 0, 1, 1], [], []>} : vector<256x4xf32>, vector<4x4xf32>, vector<256x4xf32> -> vector<256x4xf32>
    %140 = arith.addf %134, %139 : vector<256x4xf32>
    %c1_121 = arith.constant 1 : index
    %c1_122 = arith.constant 1 : index
    %c0_123 = arith.constant 0 : index
    %141 = vector.load %arg11[%c1_121, %c1_122, %c0_123] : memref<18x18x4xf32, #tpu.memory_space<vmem>>, vector<16x16x4xf32>
    %142 = vector.shape_cast %141 : vector<16x16x4xf32> to vector<256x4xf32>
    %c4_124 = arith.constant 4 : index
    %c0_125 = arith.constant 0 : index
    %c0_126 = arith.constant 0 : index
    %143 = vector.load %arg9[%c4_124, %c0_125, %c0_126] : memref<9x4x4xf32, #tpu.memory_space<vmem>>, vector<1x4x4xf32>
    %144 = vector.shape_cast %143 : vector<1x4x4xf32> to vector<4x4xf32>
    %cst_127 = arith.constant dense<0.000000e+00> : vector<256x4xf32>
    %145 = tpu.matmul %142, %144, %cst_127 {dimension_numbers = #tpu.dot_dimension_numbers<[1], [0], [0], [1], [0, 0, 1, 1], [], []>} : vector<256x4xf32>, vector<4x4xf32>, vector<256x4xf32> -> vector<256x4xf32>
    %146 = arith.addf %140, %145 : vector<256x4xf32>
    %c1_128 = arith.constant 1 : index
    %c2_129 = arith.constant 2 : index
    %c0_130 = arith.constant 0 : index
    %147 = vector.load %arg11[%c1_128, %c2_129, %c0_130] : memref<18x18x4xf32, #tpu.memory_space<vmem>>, vector<16x16x4xf32>
    %148 = vector.shape_cast %147 : vector<16x16x4xf32> to vector<256x4xf32>
    %c5_131 = arith.constant 5 : index
    %c0_132 = arith.constant 0 : index
    %c0_133 = arith.constant 0 : index
    %149 = vector.load %arg9[%c5_131, %c0_132, %c0_133] : memref<9x4x4xf32, #tpu.memory_space<vmem>>, vector<1x4x4xf32>
    %150 = vector.shape_cast %149 : vector<1x4x4xf32> to vector<4x4xf32>
    %cst_134 = arith.constant dense<0.000000e+00> : vector<256x4xf32>
    %151 = tpu.matmul %148, %150, %cst_134 {dimension_numbers = #tpu.dot_dimension_numbers<[1], [0], [0], [1], [0, 0, 1, 1], [], []>} : vector<256x4xf32>, vector<4x4xf32>, vector<256x4xf32> -> vector<256x4xf32>
    %152 = arith.addf %146, %151 : vector<256x4xf32>
    %c2_135 = arith.constant 2 : index
    %c0_136 = arith.constant 0 : index
    %c0_137 = arith.constant 0 : index
    %153 = vector.load %arg11[%c2_135, %c0_136, %c0_137] : memref<18x18x4xf32, #tpu.memory_space<vmem>>, vector<16x16x4xf32>
    %154 = vector.shape_cast %153 : vector<16x16x4xf32> to vector<256x4xf32>
    %c6_138 = arith.constant 6 : index
    %c0_139 = arith.constant 0 : index
    %c0_140 = arith.constant 0 : index
    %155 = vector.load %arg9[%c6_138, %c0_139, %c0_140] : memref<9x4x4xf32, #tpu.memory_space<vmem>>, vector<1x4x4xf32>
    %156 = vector.shape_cast %155 : vector<1x4x4xf32> to vector<4x4xf32>
    %cst_141 = arith.constant dense<0.000000e+00> : vector<256x4xf32>
    %157 = tpu.matmul %154, %156, %cst_141 {dimension_numbers = #tpu.dot_dimension_numbers<[1], [0], [0], [1], [0, 0, 1, 1], [], []>} : vector<256x4xf32>, vector<4x4xf32>, vector<256x4xf32> -> vector<256x4xf32>
    %158 = arith.addf %152, %157 : vector<256x4xf32>
    %c2_142 = arith.constant 2 : index
    %c1_143 = arith.constant 1 : index
    %c0_144 = arith.constant 0 : index
    %159 = vector.load %arg11[%c2_142, %c1_143, %c0_144] : memref<18x18x4xf32, #tpu.memory_space<vmem>>, vector<16x16x4xf32>
    %160 = vector.shape_cast %159 : vector<16x16x4xf32> to vector<256x4xf32>
    %c7_145 = arith.constant 7 : index
    %c0_146 = arith.constant 0 : index
    %c0_147 = arith.constant 0 : index
    %161 = vector.load %arg9[%c7_145, %c0_146, %c0_147] : memref<9x4x4xf32, #tpu.memory_space<vmem>>, vector<1x4x4xf32>
    %162 = vector.shape_cast %161 : vector<1x4x4xf32> to vector<4x4xf32>
    %cst_148 = arith.constant dense<0.000000e+00> : vector<256x4xf32>
    %163 = tpu.matmul %160, %162, %cst_148 {dimension_numbers = #tpu.dot_dimension_numbers<[1], [0], [0], [1], [0, 0, 1, 1], [], []>} : vector<256x4xf32>, vector<4x4xf32>, vector<256x4xf32> -> vector<256x4xf32>
    %164 = arith.addf %158, %163 : vector<256x4xf32>
    %c2_149 = arith.constant 2 : index
    %c2_150 = arith.constant 2 : index
    %c0_151 = arith.constant 0 : index
    %165 = vector.load %arg11[%c2_149, %c2_150, %c0_151] : memref<18x18x4xf32, #tpu.memory_space<vmem>>, vector<16x16x4xf32>
    %166 = vector.shape_cast %165 : vector<16x16x4xf32> to vector<256x4xf32>
    %c8_152 = arith.constant 8 : index
    %c0_153 = arith.constant 0 : index
    %c0_154 = arith.constant 0 : index
    %167 = vector.load %arg9[%c8_152, %c0_153, %c0_154] : memref<9x4x4xf32, #tpu.memory_space<vmem>>, vector<1x4x4xf32>
    %168 = vector.shape_cast %167 : vector<1x4x4xf32> to vector<4x4xf32>
    %cst_155 = arith.constant dense<0.000000e+00> : vector<256x4xf32>
    %169 = tpu.matmul %166, %168, %cst_155 {dimension_numbers = #tpu.dot_dimension_numbers<[1], [0], [0], [1], [0, 0, 1, 1], [], []>} : vector<256x4xf32>, vector<4x4xf32>, vector<256x4xf32> -> vector<256x4xf32>
    %170 = arith.addf %164, %169 : vector<256x4xf32>
    %171 = arith.addf %170, %2 : vector<256x4xf32>
    %172 = vector.shape_cast %171 : vector<256x4xf32> to vector<16x16x4xf32>
    %c0_156 = arith.constant 0 : index
    %c0_157 = arith.constant 0 : index
    %c0_158 = arith.constant 0 : index
    %c0_159 = arith.constant 0 : index
    %173 = vector.load %arg10[%c0_156, %c0_157, %c0_158, %c0_159] : memref<1x16x16x4xf32, #tpu.memory_space<vmem>>, vector<1x16x16x4xf32>
    %174 = vector.shape_cast %173 : vector<1x16x16x4xf32> to vector<16x16x4xf32>
    %175 = vector.shape_cast %172 : vector<16x16x4xf32> to vector<1x16x16x4xf32>
    tpu.vector_store %arg10[%c0_156, %c0_157, %c0_158, %c0_159], %175 {strides = array<i32>} : memref<1x16x16x4xf32, #tpu.memory_space<vmem>>, vector<1x16x16x4xf32>,
    return
  }
  func.func @transform_0(%arg0: i32) -> (i32, i32, i32, i32) {
    %c0_i32 = arith.constant 0 : i32
    %c0_i32_0 = arith.constant 0 : i32
    %c0_i32_1 = arith.constant 0 : i32
    %c0_i32_2 = arith.constant 0 : i32
    return %arg0, %c0_i32, %c0_i32_0, %c0_i32_1 : i32, i32, i32, i32
  }
  func.func @transform_1(%arg0: i32) -> (i32, i32) {
    %c0_i32 = arith.constant 0 : i32
    %c0_i32_0 = arith.constant 0 : i32
    %c0_i32_1 = arith.constant 0 : i32
    return %c0_i32, %c0_i32_0 : i32, i32
  }
  func.func @transform_2(%arg0: i32) -> (i32, i32) {
    %c0_i32 = arith.constant 0 : i32
    %c0_i32_0 = arith.constant 0 : i32
    %c0_i32_1 = arith.constant 0 : i32
    return %c0_i32, %c0_i32_0 : i32, i32
  }
  func.func @transform_3(%arg0: i32) -> (i32, i32) {
    %c0_i32 = arith.constant 0 : i32
    %c0_i32_0 = arith.constant 0 : i32
    %c0_i32_1 = arith.constant 0 : i32
    return %c0_i32, %c0_i32_0 : i32, i32
  }
  func.func @transform_4(%arg0: i32) -> (i32, i32, i32) {
    %c0_i32 = arith.constant 0 : i32
    %c0_i32_0 = arith.constant 0 : i32
    %c0_i32_1 = arith.constant 0 : i32
    %c0_i32_2 = arith.constant 0 : i32
    return %c0_i32, %c0_i32_0, %c0_i32_1 : i32, i32, i32
  }
  func.func @transform_5(%arg0: i32) -> (i32, i32) {
    %c0_i32 = arith.constant 0 : i32
    %c0_i32_0 = arith.constant 0 : i32
    %c0_i32_1 = arith.constant 0 : i32
    return %c0_i32, %c0_i32_0 : i32, i32
  }
  func.func @transform_6(%arg0: i32) -> (i32, i32) {
    %c0_i32 = arith.constant 0 : i32
    %c0_i32_0 = arith.constant 0 : i32
    %c0_i32_1 = arith.constant 0 : i32
    return %c0_i32, %c0_i32_0 : i32, i32
  }
  func.func @transform_7(%arg0: i32) -> (i32, i32) {
    %c0_i32 = arith.constant 0 : i32
    %c0_i32_0 = arith.constant 0 : i32
    %c0_i32_1 = arith.constant 0 : i32
    return %c0_i32, %c0_i32_0 : i32, i32
  }
  func.func @transform_8(%arg0: i32) -> (i32, i32, i32) {
    %c0_i32 = arith.constant 0 : i32
    %c0_i32_0 = arith.constant 0 : i32
    %c0_i32_1 = arith.constant 0 : i32
    %c0_i32_2 = arith.constant 0 : i32
    return %c0_i32, %c0_i32_0, %c0_i32_1 : i32, i32, i32
  }
  func.func @transform_9(%arg0: i32) -> (i32, i32, i32, i32) {
    %c0_i32 = arith.constant 0 : i32
    %c0_i32_0 = arith.constant 0 : i32
    %c0_i32_1 = arith.constant 0 : i32
    %c0_i32_2 = arith.constant 0 : i32
    return %arg0, %c0_i32, %c0_i32_0, %c0_i32_1 : i32, i32, i32, i32
  }
}

</mosaic_0001>

<bundles_post_ra>
// kernel: tpu_custom_call.1
= control target key start
LH: loop header
LB: loop body
LE: loop exit
PB: predicated region body
PF: predicated region fallthrough
CT: control target
= control target key end

     0   :  { %s6920_s30 = smov 0   ;;  %s10444_s0 = inlined_call_operand.vmem [shape: f32[2,16,16,4], index: 0, kind: input, shape index: {}]   ;;  %s10445_s1 = inlined_call_operand.vmem [shape: f32[1,4], index: 1, kind: input, shape index: {}]   ;;  %s10446_s2 = inlined_call_operand.vmem [shape: f32[1,4], index: 2, kind: input, shape index: {}]   ;;  %s10447_s3 = inlined_call_operand.vmem [shape: f32[4,4], index: 3, kind: input, shape index: {}]   ;;  %s10448_s4 = inlined_call_operand.vmem [shape: f32[9,4,4], index: 4, kind: input, shape index: {}]   ;;  %s10449_s5 = inlined_call_operand.vmem [shape: f32[1,4], index: 5, kind: input, shape index: {}]   ;;  %s10450_s6 = inlined_call_operand.vmem [shape: f32[1,4], index: 6, kind: input, shape index: {}]   ;;  %s10451_s7 = inlined_call_operand.vmem [shape: f32[4,4], index: 7, kind: input, shape index: {}]   ;;  %s10452_s8 = inlined_call_operand.vmem [shape: f32[9,4,4], index: 8, kind: input, shape index: {}]   ;;  %s10453_s9 = inlined_call_operand.vmem [shape: f32[2,16,16,4], index: 9, kind: output, shape index: {}]  }
   0x1 LB: > { %s6182_s3 = sadd.s32 4294967295, %s6866_s30   ;;  %p6186_p0 = scmp.ge.s32.totalorder %s6866_s30, 1  ;;  %s6866_s30 = sphi %s6920_s30, %s19_s30  }
   0x2   : > { %p287_p1 = scmp.lt.s32.totalorder %s6866_s30, 3 }
   0x4   : > { %p288_p2 = pnand %p6186_p0, %p287_p1 }
   0x6   : > { %291 = sbr.rel (%p288_p2) target bundleno = 1848 (0x738), region = 56 }
   0xb   : > { %v6191_v0 = vld [vmem:[%s10448_s4 + $0x4] sm:$0xf]  ;;  %vm944_vm0 = vcmask 1043456   ;;  %v813_v1 = vld [vmem:[%s10448_s4] sm:$0xf]  ;;  %p323_p3 = scmp.lt.s32.totalorder %s6182_s3, 1 }
   0xc   : > { %6805 = vmatpush.msk.msra.mxu2 %vm944_vm0, %v6191_v0  ;;  %6806 = vmatpush.msk.msra.mxu3 %vm944_vm0, %v813_v1  ;;  %vm365_vm1 = vcmask 31744   ;;  %vm695_vm6 = vcmask 25600  }
   0xd   : > { %s10881_s3 = smov (!%p323_p3, %s6182_s3), 1  ;;  %6192 = vmatpush.msk.msra.mxu0 %vm944_vm0, %v6191_v0  ;;  %6225 = vmatpush.msk.msra.mxu1 %vm944_vm0, %v813_v1 }
   0xe   : > { %s6803_s13 = sshll.u32 %s10881_s3, 8 }
   0xf   : > { %s6946_s16 = scalar_lea.vmem %s10444_s0, %s6803_s13  ;;  %s10176_s23 = scalar_lea.vmem %s10453_s9, %s6803_s13 }
  0x10   : > { %v6949_v2 = vld [vmem:[%s6946_s16] sm:$0xff]  ;;  %v6952_v3 = vld [vmem:[%s6946_s16 + $0x8] sm:$0xff]  ;;  %v6955_v4 = vld [vmem:[%s6946_s16 + $0x10] sm:$0xff] }
  0x11   : > { %v6958_v5 = vld [vmem:[%s6946_s16 + $0x18] sm:$0xff]  ;;  %v366_v6 = vsel %vm365_vm1, %v6949_v2, 0.0  ;;  %v367_v7 = vsel %vm365_vm1, %v6952_v3, 0.0  ;;  %v369_v8 = vsel %vm365_vm1, %v6955_v4, 0.0  ;;  %v6967_v9 = vld [vmem:[%s6946_s16 + $0x20] sm:$0xff]  ;;  %v6972_v12 = vld [vmem:[%s6946_s16 + $0x28] sm:$0xff]  ;;  %v443_v23 = vmul.f32 %v6949_v2, %v6949_v2 }
  0x12   : > { %v368_v10 = vadd.f32 %v367_v7, %v366_v6  ;;  %v371_v11 = vsel %vm365_vm1, %v6958_v5, 0.0  ;;  %v373_v14 = vsel %vm365_vm1, %v6967_v9, 0.0  ;;  %v6977_v15 = vld [vmem:[%s6946_s16 + $0x30] sm:$0xff]  ;;  %v375_v17 = vsel %vm365_vm1, %v6972_v12, 0.0  ;;  %v6982_v18 = vld [vmem:[%s6946_s16 + $0x38] sm:$0xff]  ;;  %v6987_v21 = vld [vmem:[%s6946_s16 + $0x40] sm:$0xff] }
  0x13   : > { %v377_v20 = vsel %vm365_vm1, %v6977_v15, 0.0  ;;  %v379_v24 = vsel %vm365_vm1, %v6982_v18, 0.0  ;;  %v444_v25 = vmul.f32 %v6952_v3, %v6952_v3  ;;  %v445_v26 = vmul.f32 %v6955_v4, %v6955_v4  ;;  %v6998_v27 = vld [vmem:[%s6946_s16 + $0x48] sm:$0xff]  ;;  %v7005_v31 = vld [vmem:[%s6946_s16 + $0x50] sm:$0xff]  ;;  %v7015_v38 = vld [vmem:[%s6946_s16 + $0x58] sm:$0xff] }
  0x14   : > { %v370_v13 = vadd.f32 %v369_v8, %v368_v10  ;;  %v381_v29 = vsel %vm365_vm1, %v6987_v21, 0.0  ;;  %v446_v30 = vmul.f32 %v6958_v5, %v6958_v5  ;;  %v475_v33 = vsel %vm365_vm1, %v443_v23, 0.0  ;;  %v7023_v44 = vld [vmem:[%s6946_s16 + $0x60] sm:$0xff]  ;;  %v7031_v50 = vld [vmem:[%s6946_s16 + $0x68] sm:$0xff]  ;;  %v7039_v56 = vld [vmem:[%s6946_s16 + $0x70] sm:$0xff] }
  0x15   : > { %v383_v34 = vsel %vm365_vm1, %v6998_v27, 0.0  ;;  %v447_v35 = vmul.f32 %v6967_v9, %v6967_v9  ;;  %v476_v36 = vsel %vm365_vm1, %v444_v25, 0.0  ;;  %v478_v37 = vsel %vm365_vm1, %v445_v26, 0.0  ;;  %v7047_v62 = vld [vmem:[%s6946_s16 + $0x78] sm:$0xff]  ;;  %v7055_v8 = vld [vmem:[%s6946_s16 + $0x80] sm:$0xff]  ;;  %v7071_v25 = vld [vmem:[%s6946_s16 + $0x90] sm:$0xff] }
  0x16   : > { %v372_v16 = vadd.f32 %v371_v11, %v370_v13  ;;  %v477_v40 = vadd.f32 %v476_v36, %v475_v33  ;;  %v385_v41 = vsel %vm365_vm1, %v7005_v31, 0.0  ;;  %v448_v42 = vmul.f32 %v6972_v12, %v6972_v12  ;;  %v7079_v33 = vld [vmem:[%s6946_s16 + $0x98] sm:$0xff] }
  0x17   : > { %v480_v43 = vsel %vm365_vm1, %v446_v30, 0.0  ;;  %v387_v47 = vsel %vm365_vm1, %v7015_v38, 0.0  ;;  %v449_v48 = vmul.f32 %v6977_v15, %v6977_v15  ;;  %v482_v49 = vsel %vm365_vm1, %v447_v35, 0.0 }
  0x18   : > { %v374_v19 = vadd.f32 %v373_v14, %v372_v16  ;;  %v479_v46 = vadd.f32 %v478_v37, %v477_v40  ;;  %v389_v53 = vsel %vm365_vm1, %v7023_v44, 0.0  ;;  %v450_v54 = vmul.f32 %v6982_v18, %v6982_v18  ;;  %v7087_v40 = vld [vmem:[%s6946_s16 + $0xa0] sm:$0xff] }
  0x19   : > { %v484_v55 = vsel %vm365_vm1, %v448_v42, 0.0  ;;  %v391_v59 = vsel %vm365_vm1, %v7031_v50, 0.0  ;;  %v451_v60 = vmul.f32 %v6987_v21, %v6987_v21  ;;  %v486_v61 = vsel %vm365_vm1, %v449_v48, 0.0 }
  0x1a   : > { %v376_v22 = vadd.f32 %v375_v17, %v374_v19  ;;  %v481_v52 = vadd.f32 %v480_v43, %v479_v46  ;;  %v393_v1 = vsel %vm365_vm1, %v7039_v56, 0.0  ;;  %v452_v6 = vmul.f32 %v6998_v27, %v6998_v27  ;;  %v7063_v17 = vld [vmem:[%s6946_s16 + $0x88] sm:$0xff] }
  0x1b   : > { %v488_v7 = vsel %vm365_vm1, %v450_v54, 0.0  ;;  %v395_v13 = vsel %vm365_vm1, %v7047_v62, 0.0  ;;  %v453_v14 = vmul.f32 %v7005_v31, %v7005_v31  ;;  %v490_v16 = vsel %vm365_vm1, %v451_v60, 0.0  ;;  %v7103_v54 = vld [vmem:[%s6946_s16 + $0xb0] sm:$0xff] }
  0x1c   : > { %v378_v28 = vadd.f32 %v377_v20, %v376_v22  ;;  %v483_v58 = vadd.f32 %v482_v49, %v481_v52  ;;  %v397_v22 = vsel %vm365_vm1, %v7055_v8, 0.0  ;;  %v454_v23 = vmul.f32 %v7015_v38, %v7015_v38 }
  0x1d   : > { %v455_v30 = vmul.f32 %v7023_v44, %v7023_v44  ;;  %v401_v36 = vsel %vm365_vm1, %v7071_v25, 0.0  ;;  %v456_v37 = vmul.f32 %v7031_v50, %v7031_v50  ;;  %v403_v43 = vsel %vm365_vm1, %v7079_v33, 0.0 }
  0x1e   : > { %v380_v32 = vadd.f32 %v379_v24, %v378_v28  ;;  %v485_v0 = vadd.f32 %v484_v55, %v483_v58  ;;  %v492_v24 = vsel %vm365_vm1, %v452_v6, 0.0  ;;  %v458_v52 = vmul.f32 %v7047_v62, %v7047_v62 }
  0x1f   : > { %v498_v46 = vsel %vm365_vm1, %v455_v30, 0.0  ;;  %v460_v6 = vmul.f32 %v7063_v17, %v7063_v17 }
  0x20   : > { %v382_v39 = vadd.f32 %v381_v29, %v380_v32  ;;  %v487_v11 = vadd.f32 %v486_v61, %v485_v0  ;;  %v399_v29 = vsel %vm365_vm1, %v7063_v17, 0.0  ;;  %v494_v32 = vsel %vm365_vm1, %v453_v14, 0.0  ;;  %v7111_v61 = vld [vmem:[%s6946_s16 + $0xb8] sm:$0xff] }
  0x21   : > { %v411_v14 = vsel %vm365_vm1, %v7111_v61, 0.0 }
  0x22   : > { %v384_v45 = vadd.f32 %v383_v34, %v382_v39  ;;  %v489_v20 = vadd.f32 %v488_v7, %v487_v11  ;;  %v496_v39 = vsel %vm365_vm1, %v454_v23, 0.0  ;;  %v504_v7 = vsel %vm365_vm1, %v458_v52, 0.0 }
  0x23   : > { %v465_v52 = vmul.f32 %v7103_v54, %v7103_v54 }
  0x24   : > { %v386_v51 = vadd.f32 %v385_v41, %v384_v45  ;;  %v491_v28 = vadd.f32 %v490_v16, %v489_v20  ;;  %v457_v45 = vmul.f32 %v7039_v56, %v7039_v56  ;;  %v461_v16 = vmul.f32 %v7071_v25, %v7071_v25  ;;  %v7127_v20 = vld [vmem:[%s6946_s16 + $0xc8] sm:$0xff] }
  0x26   : > { %v388_v57 = vadd.f32 %v387_v47, %v386_v51  ;;  %v493_v35 = vadd.f32 %v492_v24, %v491_v28  ;;  %v7095_v47 = vld [vmem:[%s6946_s16 + $0xa8] sm:$0xff]  ;;  %v405_v51 = vsel %vm365_vm1, %v7087_v40, 0.0  ;;  %v502_v60 = vsel %vm365_vm1, %v457_v45, 0.0 }
  0x27   : > { %v407_v58 = vsel %vm365_vm1, %v7095_v47, 0.0  ;;  %v508_v28 = vsel %vm365_vm1, %v460_v6, 0.0 }
  0x28   : > { %v390_v63 = vadd.f32 %v389_v53, %v388_v57  ;;  %v495_v42 = vadd.f32 %v494_v32, %v493_v35  ;;  %v500_v53 = vsel %vm365_vm1, %v456_v37, 0.0  ;;  %v463_v35 = vmul.f32 %v7087_v40, %v7087_v40  ;;  %v7143_v37 = vld [vmem:[%s6946_s16 + $0xd8] sm:$0xff] }
  0x2a   : > { %v392_v10 = vadd.f32 %v391_v59, %v390_v63  ;;  %v497_v49 = vadd.f32 %v496_v39, %v495_v42  ;;  %v459_v59 = vmul.f32 %v7055_v8, %v7055_v8 }
  0x2c   : > { %v394_v19 = vadd.f32 %v393_v1, %v392_v10  ;;  %v499_v57 = vadd.f32 %v498_v46, %v497_v49  ;;  %v409_v1 = vsel %vm365_vm1, %v7103_v54, 0.0  ;;  %v7119_v10 = vld [vmem:[%s6946_s16 + $0xc0] sm:$0xff] }
  0x2d   : > { %v413_v24 = vsel %vm365_vm1, %v7119_v10, 0.0  ;;  %v7151_v46 = vld [vmem:[%s6946_s16 + $0xe0] sm:$0xff] }
  0x2e   : > { %v396_v26 = vadd.f32 %v395_v13, %v394_v19  ;;  %v501_v0 = vadd.f32 %v500_v53, %v499_v57  ;;  %v506_v19 = vsel %vm365_vm1, %v459_v59, 0.0  ;;  %v514_v53 = vsel %vm365_vm1, %v463_v35, 0.0 }
  0x2f   : > { %v421_v59 = vsel %vm365_vm1, %v7151_v46, 0.0 }
  0x30   : > { %v398_v34 = vadd.f32 %v397_v22, %v396_v26  ;;  %v503_v13 = vadd.f32 %v502_v60, %v501_v0  ;;  %v462_v26 = vmul.f32 %v7079_v33, %v7079_v33  ;;  %v466_v60 = vmul.f32 %v7111_v61, %v7111_v61  ;;  %v363_v0 = vld [vmem:[%s6946_s16 + $0xf0] sm:$0xff] }
  0x32   : > { %v400_v41 = vadd.f32 %v399_v29, %v398_v34  ;;  %v505_v23 = vadd.f32 %v504_v7, %v503_v13  ;;  %v7135_v29 = vld [vmem:[%s6946_s16 + $0xd0] sm:$0xff]  ;;  %v415_v34 = vsel %vm365_vm1, %v7127_v20, 0.0  ;;  %v512_v45 = vsel %vm365_vm1, %v462_v26, 0.0 }
  0x33   : > { %v417_v42 = vsel %vm365_vm1, %v7135_v29, 0.0  ;;  %v518_v13 = vsel %vm365_vm1, %v465_v52, 0.0  ;;  %v520_v26 = vsel %vm365_vm1, %v466_v60, 0.0 }
  0x34   : > { %v402_v48 = vadd.f32 %v401_v36, %v400_v41  ;;  %v507_v32 = vadd.f32 %v506_v19, %v505_v23  ;;  %v510_v36 = vsel %vm365_vm1, %v461_v16, 0.0  ;;  %v6868_v19 = vmov 256.0  }
  0x35   : > { %6819 = vrcp.f32 %v6868_v19  ;;  %v425_v23 = vsel %vm365_vm1, %v363_v0, 0.0 }
  0x36   : > { %v404_v55 = vadd.f32 %v403_v43, %v402_v48  ;;  %v509_v41 = vadd.f32 %v508_v28, %v507_v32  ;;  %v464_v43 = vmul.f32 %v7095_v47, %v7095_v47 }
  0x38   : > { %v406_v63 = vadd.f32 %v405_v51, %v404_v55  ;;  %v511_v49 = vadd.f32 %v510_v36, %v509_v41  ;;  %v419_v51 = vsel %vm365_vm1, %v7143_v37, 0.0  ;;  %v7159_v55 = vld [vmem:[%s6946_s16 + $0xe8] sm:$0xff]  ;;  %v470_v41 = vmul.f32 %v7143_v37, %v7143_v37 }
  0x39   : > { %v423_v7 = vsel %vm365_vm1, %v7159_v55, 0.0 }
  0x3a   : > { %v408_v11 = vadd.f32 %v407_v58, %v406_v63  ;;  %v513_v58 = vadd.f32 %v512_v45, %v511_v49  ;;  %v516_v63 = vsel %vm365_vm1, %v464_v43, 0.0  ;;  %v471_v49 = vmul.f32 %v7151_v46, %v7151_v46 }
  0x3b   : > { %v6820_v43 = vpop.eup %6819 }
  0x3c   : > { %v410_v22 = vadd.f32 %v409_v1, %v408_v11  ;;  %v515_v6 = vadd.f32 %v514_v53, %v513_v58  ;;  %v467_v11 = vmul.f32 %v7119_v10, %v7119_v10  ;;  %v472_v58 = vmul.f32 %v7159_v55, %v7159_v55 }
  0x3d   : > { %vm440_vm2 = vweird.f32 %v6820_v43 }
  0x3e   : > { %v412_v30 = vadd.f32 %v411_v14, %v410_v22  ;;  %v364_v14 = vld [vmem:[%s6946_s16 + $0xf8] sm:$0xff]  ;;  %v517_v22 = vadd.f32 %v516_v63, %v515_v6  ;;  %v522_v35 = vsel %vm365_vm1, %v467_v11, 0.0  ;;  %v530_v6 = vsel %vm365_vm1, %v471_v49, 0.0 }
  0x3f   : > { %v427_v32 = vsel %vm365_vm1, %v364_v14, 0.0  ;;  %v532_v19 = vsel %vm365_vm1, %v472_v58, 0.0 }
  0x40   : > { %v414_v39 = vadd.f32 %v413_v24, %v412_v30  ;;  %v468_v24 = vmul.f32 %v7127_v20, %v7127_v20  ;;  %v519_v30 = vadd.f32 %v518_v13, %v517_v22 }
  0x42   : > { %v416_v48 = vadd.f32 %v415_v34, %v414_v39  ;;  %v469_v34 = vmul.f32 %v7135_v29, %v7135_v29  ;;  %v521_v39 = vadd.f32 %v520_v26, %v519_v30 }
  0x44   : > { %v418_v57 = vadd.f32 %v417_v42, %v416_v48  ;;  %v524_v42 = vsel %vm365_vm1, %v468_v24, 0.0  ;;  %v523_v48 = vadd.f32 %v522_v35, %v521_v39 }
  0x46   : > { %v420_v1 = vadd.f32 %v419_v51, %v418_v57  ;;  %v526_v51 = vsel %vm365_vm1, %v469_v34, 0.0  ;;  %v525_v53 = vadd.f32 %v524_v42, %v523_v48  ;;  %v436_v57 = vmul.f32 256.0, %v6820_v43 }
  0x48   : > { %v422_v16 = vadd.f32 %v421_v59, %v420_v1  ;;  %v528_v59 = vsel %vm365_vm1, %v470_v41, 0.0  ;;  %v527_v63 = vadd.f32 %v526_v51, %v525_v53  ;;  %v473_v1 = vmul.f32 %v363_v0, %v363_v0 }
  0x49   : > { %v437_v13 = vsub.f32 1.0, %v436_v57  ;;  %v10459_v57 = vmov 0.0  }
  0x4a   : > { %v424_v28 = vadd.f32 %v423_v7, %v422_v16  ;;  %v529_v11 = vadd.f32 %v528_v59, %v527_v63  ;;  %v474_v16 = vmul.f32 %v364_v14, %v364_v14  ;;  %718 = vst.msk [vmem:[#allocation2 + $0xc0] sm:$0xff] %vm365_vm1, %v10459_v57  ;;  %v6258_v59 = vld [vmem:[%s10448_s4 + $0x8] sm:$0xf] }
  0x4b   : > { %719 = vst.msk [vmem:[#allocation2 + $0xc8] sm:$0xff] %vm365_vm1, %v10459_v57  ;;  %6259 = vmatpush.msk.msrb.mxu2 %vm944_vm0, %v6258_v59 }
  0x4c   : > { %v426_v36 = vadd.f32 %v425_v23, %v424_v28  ;;  %v531_v22 = vadd.f32 %v530_v6, %v529_v11  ;;  %v534_v23 = vsel %vm365_vm1, %v473_v1, 0.0  ;;  %v438_v28 = vmul.f32 %v6820_v43, %v437_v13  ;;  %693 = vst.msk [vmem:[#allocation2] sm:$0xff] %vm365_vm1, %v10459_v57 }
  0x4d   : > { %v536_v30 = vsel %vm365_vm1, %v474_v16, 0.0  ;;  %694 = vst.msk [vmem:[#allocation2 + $0x8] sm:$0xff] %vm365_vm1, %v10459_v57 }
  0x4e   : > { %v428_v45 = vadd.f32 %v427_v32, %v426_v36  ;;  %v533_v26 = vadd.f32 %v532_v19, %v531_v22  ;;  %v439_v0 = vadd.f32 %v6820_v43, %v438_v28  ;;  %697 = vst.msk [vmem:[#allocation2 + $0x18] sm:$0xff] %vm365_vm1, %v10459_v57  ;;  %v558_v22 = vld [vmem:[%s10445_s1] sm:$0x1] }
  0x4f   : > { %698 = vst.msk [vmem:[#allocation2 + $0x20] sm:$0xff] %vm365_vm1, %v10459_v57 }
  0x50   : > { %v429_v52 = vrot.slane %v428_v45, 4  ;;  %v535_v32 = vadd.f32 %v534_v23, %v533_v26  ;;  %v7194_v42 = vsel %vm440_vm2, %v6820_v43, %v439_v0  ;;  %700 = vst.msk [vmem:[#allocation2 + $0x30] sm:$0xff] %vm365_vm1, %v10459_v57 }
  0x51   : > { %10531 = vst [vmem:[#allocation3_spill] sm:$0xff] %v7194_v42 }
  0x52   : > { %v430_v60 = vadd.f32 %v429_v52, %v428_v45  ;;  %v537_v35 = vadd.f32 %v536_v30, %v535_v32  ;;  %701 = vst.msk [vmem:[#allocation2 + $0x38] sm:$0xff] %vm365_vm1, %v10459_v57  ;;  %v6326_v30 = vld [vmem:[%s10448_s4 + $0x10] sm:$0xf] }
  0x53   : > { %703 = vst.msk [vmem:[#allocation2 + $0x48] sm:$0xff] %vm365_vm1, %v10459_v57  ;;  %v781_v16 = vld [vmem:[#allocation2] sm:$0xff]  ;;  %6327 = vmatpush.msk.msrb.mxu0 %vm944_vm0, %v6326_v30 }
  0x54   : > { %v431_v7 = vrot.slane %v430_v60, 2  ;;  %v538_v36 = vrot.slane %v537_v35, 4  ;;  %704 = vst.msk [vmem:[#allocation2 + $0x50] sm:$0xff] %vm365_vm1, %v10459_v57  ;;  %v814_v13 = vld [vmem:[#allocation2 + $0x1] sm:$0xff]  ;;  %6226 = vmatmul.msk.f32.vlgmr.msra.gmra.mxu1 %vm365_vm1, %v781_v16 }
  0x55   : > { %706 = vst.msk [vmem:[#allocation2 + $0x60] sm:$0xff] %vm365_vm1, %v10459_v57  ;;  %6193 = vmatmul.msk.f32.vlgmr.msra.gmra.mxu0 %vm365_vm1, %v814_v13 }
  0x56   : > { %v432_v24 = vadd.f32 %v431_v7, %v430_v60  ;;  %v539_v41 = vadd.f32 %v538_v36, %v537_v35  ;;  %v6292_v60 = vld [vmem:[%s10448_s4 + $0xc] sm:$0xf]  ;;  %707 = vst.msk [vmem:[#allocation2 + $0x68] sm:$0xff] %vm365_vm1, %v10459_v57 }
  0x57   : > { %6293 = vmatpush.msk.msrb.mxu3 %vm944_vm0, %v6292_v60  ;;  %709 = vst.msk [vmem:[#allocation2 + $0x78] sm:$0xff] %vm365_vm1, %v10459_v57 }
  0x58   : > { %v433_v34 = vrot.slane %v432_v24, 1  ;;  %v540_v14 = vrot.slane %v539_v41, 2  ;;  %710 = vst.msk [vmem:[#allocation2 + $0x80] sm:$0xff] %vm365_vm1, %v10459_v57 }
  0x59   : > { %712 = vst.msk [vmem:[#allocation2 + $0x90] sm:$0xff] %vm365_vm1, %v10459_v57 }
  0x5a   : > { %v434_v39 = vadd.f32 %v433_v34, %v432_v24  ;;  %v541_v48 = vadd.f32 %v540_v14, %v539_v41  ;;  %713 = vst.msk [vmem:[#allocation2 + $0x98] sm:$0xff] %vm365_vm1, %v10459_v57 }
  0x5b   : > { %715 = vst.msk [vmem:[#allocation2 + $0xa8] sm:$0xff] %vm365_vm1, %v10459_v57 }
  0x5c   : > { %v7197_v45 = vmul.f32 %v7194_v42, %v434_v39  ;;  %v542_v49 = vrot.slane %v541_v48, 1  ;;  %716 = vst.msk [vmem:[#allocation2 + $0xb0] sm:$0xff] %vm365_vm1, %v10459_v57  ;;  %v782_v39 = vld [vmem:[#allocation2 + $0x8] sm:$0xff] }
  0x5d   : > { %721 = vst.msk [vmem:[#allocation2 + $0xd8] sm:$0xff] %vm365_vm1, %v10459_v57  ;;  %6227 = vmatmul.msk.f32.gmra.mxu1 %vm365_vm1, %v782_v39 }
  0x5e   : > { %v543_v51 = vadd.f32 %v542_v49, %v541_v48  ;;  %v545_v52 = vmul.f32 %v7197_v45, %v7197_v45  ;;  %722 = vst.msk [vmem:[#allocation2 + $0xe0] sm:$0xff] %vm365_vm1, %v10459_v57  ;;  %v574_v24 = vsub.f32 %v7039_v56, %v7197_v45  ;;  %v575_v28 = vsub.f32 %v7047_v62, %v7197_v45  ;;  %v7278_v56 = vld [vmem:[%s10446_s2] ss:$0 sm:$0xff] }
  0x5f   : > { %724 = vst.msk [vmem:[#allocation2 + $0xf0] sm:$0xff] %vm365_vm1, %v10459_v57  ;;  %v576_v49 = vsub.f32 %v7055_v8, %v7197_v45  ;;  %v578_v8 = vsub.f32 %v7071_v25, %v7197_v45 }
  0x60   : > { %v544_v53 = vmul.f32 %v543_v51, %v7194_v42  ;;  %725 = vst.msk [vmem:[#allocation2 + $0xf8] sm:$0xff] %vm365_vm1, %v10459_v57  ;;  %v577_v51 = vsub.f32 %v7063_v17, %v7197_v45  ;;  %v561_v17 = vsub.f32 %v6952_v3, %v7197_v45  ;;  %v562_v3 = vsub.f32 %v6955_v4, %v7197_v45 }
  0x61   : > { %727 = vst.msk [vmem:[#allocation2 + $0x108] sm:$0xff] %vm365_vm1, %v10459_v57 }
  0x62   : > { %v546_v58 = vsub.f32 %v544_v53, %v545_v52  ;;  %728 = vst.msk [vmem:[#allocation2 + $0x110] sm:$0xff] %vm365_vm1, %v10459_v57  ;;  %v560_v52 = vsub.f32 %v6949_v2, %v7197_v45  ;;  %v579_v2 = vsub.f32 %v7079_v33, %v7197_v45 }
  0x63   : > { %730 = vst.msk [vmem:[#allocation2 + $0x120] sm:$0xff] %vm365_vm1, %v10459_v57 }
  0x64   : > { %v547_v43 = vadd.f32 1e-05, %v546_v58  ;;  %731 = vst.msk [vmem:[#allocation2 + $0x128] sm:$0xff] %vm365_vm1, %v10459_v57 }
  0x65   : > { %733 = vst.msk [vmem:[#allocation2 + $0x138] sm:$0xff] %vm365_vm1, %v10459_v57 }
  0x66   : > { %6821 = vrsqrt.f32 %v547_v43  ;;  %vm554_vm3 = vweird.f32 %v547_v43  ;;  %734 = vst.msk [vmem:[#allocation2 + $0x140] sm:$0xff] %vm365_vm1, %v10459_v57 }
  0x67   : > { %736 = vst.msk [vmem:[#allocation2 + $0x150] sm:$0xff] %vm365_vm1, %v10459_v57 }
  0x68   : > { %737 = vst.msk [vmem:[#allocation2 + $0x158] sm:$0xff] %vm365_vm1, %v10459_v57 }
  0x69   : > { %739 = vst.msk [vmem:[#allocation2 + $0x168] sm:$0xff] %vm365_vm1, %v10459_v57 }
  0x6a   : > { %740 = vst.msk [vmem:[#allocation2 + $0x170] sm:$0xff] %vm365_vm1, %v10459_v57 }
  0x6b   : > { %742 = vst.msk [vmem:[#allocation2 + $0x180] sm:$0xff] %vm365_vm1, %v10459_v57 }
  0x6c   : > { %v6822_v63 = vpop.eup %6821  ;;  %743 = vst.msk [vmem:[#allocation2 + $0x188] sm:$0xff] %vm365_vm1, %v10459_v57 }
  0x6d   : > { %v549_v1 = vmul.f32 %v6822_v63, %v547_v43  ;;  %vm555_vm4 = vweird.f32 %v6822_v63  ;;  %745 = vst.msk [vmem:[#allocation2 + $0x198] sm:$0xff] %vm365_vm1, %v10459_v57 }
  0x6e   : > { %vm556_vm5 = vmor %vm554_vm3, %vm555_vm4  ;;  %746 = vst.msk [vmem:[#allocation2 + $0x1a0] sm:$0xff] %vm365_vm1, %v10459_v57 }
  0x6f   : > { %v550_v6 = vmul.f32 %v6822_v63, %v549_v1  ;;  %720 = vst.msk [vmem:[#allocation2 + $0xd0] sm:$0x3] %vm695_vm6, %v10459_v57 }
  0x70   : > { %696 = vst.msk [vmem:[#allocation2 + $0x10] sm:$0x3] %vm695_vm6, %v10459_v57 }
  0x71   : > { %v551_v7 = vmul.f32 0.5, %v550_v6  ;;  %699 = vst.msk [vmem:[#allocation2 + $0x28] sm:$0x3] %vm695_vm6, %v10459_v57  ;;  %v580_v6 = vsub.f32 %v7087_v40, %v7197_v45  ;;  %v563_v40 = vsub.f32 %v6958_v5, %v7197_v45 }
  0x72   : > { %702 = vst.msk [vmem:[#allocation2 + $0x40] sm:$0x3] %vm695_vm6, %v10459_v57 }
  0x73   : > { %v552_v11 = vsub.f32 1.5, %v551_v7  ;;  %705 = vst.msk [vmem:[#allocation2 + $0x58] sm:$0x3] %vm695_vm6, %v10459_v57 }
  0x74   : > { %708 = vst.msk [vmem:[#allocation2 + $0x70] sm:$0x3] %vm695_vm6, %v10459_v57 }
  0x75   : > { %v553_v19 = vmul.f32 %v6822_v63, %v552_v11  ;;  %711 = vst.msk [vmem:[#allocation2 + $0x88] sm:$0x3] %vm695_vm6, %v10459_v57 }
  0x76   : > { %714 = vst.msk [vmem:[#allocation2 + $0xa0] sm:$0x3] %vm695_vm6, %v10459_v57 }
  0x77   : > { %v557_v23 = vsel %vm556_vm5, %v6822_v63, %v553_v19  ;;  %717 = vst.msk [vmem:[#allocation2 + $0xb8] sm:$0x3] %vm695_vm6, %v10459_v57  ;;  %v815_v59 = vld [vmem:[#allocation2 + $0x9] sm:$0xff] }
  0x78   : > { %v592_v26 = vmul.f32 %v558_v22, %v557_v23  ;;  %723 = vst.msk [vmem:[#allocation2 + $0xe8] sm:$0x3] %vm695_vm6, %v10459_v57  ;;  %6194 = vmatmul.msk.f32.gmra.mxu0 %vm365_vm1, %v815_v59 }
  0x79   : > { %726 = vst.msk [vmem:[#allocation2 + $0x100] sm:$0x3] %vm695_vm6, %v10459_v57 }
  0x7a   : > { %v7273_v32 = vperm.slane %v592_v26, 0  ;;  %729 = vst.msk [vmem:[#allocation2 + $0x118] sm:$0x3] %vm695_vm6, %v10459_v57 }
  0x7b   : > { %732 = vst.msk [vmem:[#allocation2 + $0x130] sm:$0x3] %vm695_vm6, %v10459_v57 }
  0x7c   : > { %v608_v62 = vmul.f32 %v7273_v32, %v574_v24  ;;  %v609_v34 = vmul.f32 %v7273_v32, %v575_v28  ;;  %v610_v53 = vmul.f32 %v7273_v32, %v576_v49  ;;  %v611_v58 = vmul.f32 %v7273_v32, %v577_v51  ;;  %735 = vst.msk [vmem:[#allocation2 + $0x148] sm:$0x3] %vm695_vm6, %v10459_v57 }
  0x7d   : > { %v594_v60 = vmul.f32 %v7273_v32, %v560_v52  ;;  %v612_v63 = vmul.f32 %v7273_v32, %v578_v8  ;;  %v595_v1 = vmul.f32 %v7273_v32, %v561_v17  ;;  %v613_v7 = vmul.f32 %v7273_v32, %v579_v2  ;;  %738 = vst.msk [vmem:[#allocation2 + $0x160] sm:$0x3] %vm695_vm6, %v10459_v57 }
  0x7e   : > { %v643_v35 = vadd.f32 %v7278_v56, %v608_v62  ;;  %v644_v0 = vadd.f32 %v7278_v56, %v609_v34  ;;  %v645_v33 = vadd.f32 %v7278_v56, %v610_v53  ;;  %v646_v4 = vadd.f32 %v7278_v56, %v611_v58  ;;  %741 = vst.msk [vmem:[#allocation2 + $0x178] sm:$0x3] %vm695_vm6, %v10459_v57 }
  0x7f   : > { %v629_v11 = vadd.f32 %v7278_v56, %v594_v60  ;;  %v596_v13 = vmul.f32 %v7273_v32, %v562_v3  ;;  %v647_v16 = vadd.f32 %v7278_v56, %v612_v63  ;;  %v614_v19 = vmul.f32 %v7273_v32, %v580_v6  ;;  %744 = vst.msk [vmem:[#allocation2 + $0x190] sm:$0x3] %vm695_vm6, %v10459_v57 }
  0x80   : > { %v675_v36 = vmax.f32 %v643_v35, 0.0  ;;  %v676_v41 = vmax.f32 %v644_v0, 0.0  ;;  %v677_v22 = vmax.f32 %v645_v33, 0.0  ;;  %v630_v23 = vadd.f32 %v7278_v56, %v595_v1  ;;  %747 = vst.msk [vmem:[#allocation2 + $0x1a8] sm:$0x3] %vm695_vm6, %v10459_v57 }
  0x81   : > { %v597_v24 = vmul.f32 %v7273_v32, %v563_v40  ;;  %v678_v26 = vmax.f32 %v646_v4, 0.0  ;;  %v648_v5 = vadd.f32 %v7278_v56, %v613_v7  ;;  %v661_v28 = vmax.f32 %v629_v11, 0.0 }
  0x82   : > { %763 = vst.msk [vmem:[#allocation2 + $0xc1] sm:$0xff] %vm365_vm1, %v675_v36  ;;  %v631_v30 = vadd.f32 %v7278_v56, %v596_v13  ;;  %v679_v62 = vmax.f32 %v647_v16, 0.0  ;;  %v649_v34 = vadd.f32 %v7278_v56, %v614_v19  ;;  %v662_v35 = vmax.f32 %v630_v23, 0.0 }
  0x83   : > { %764 = vst.msk [vmem:[#allocation2 + $0xc9] sm:$0xff] %vm365_vm1, %v676_v41  ;;  %v632_v0 = vadd.f32 %v7278_v56, %v597_v24  ;;  %v581_v36 = vsub.f32 %v7095_v47, %v7197_v45  ;;  %v680_v39 = vmax.f32 %v648_v5, 0.0  ;;  %v564_v49 = vsub.f32 %v6967_v9, %v7197_v45 }
  0x84   : > { %765 = vst.msk [vmem:[#allocation2 + $0xd9] sm:$0xff] %vm365_vm1, %v677_v22  ;;  %v663_v41 = vmax.f32 %v631_v30, 0.0  ;;  %v681_v51 = vmax.f32 %v649_v34, 0.0  ;;  %v565_v63 = vsub.f32 %v6972_v12, %v7197_v45  ;;  %v583_v40 = vsub.f32 %v7111_v61, %v7197_v45 }
  0x85   : > { %766 = vst.msk [vmem:[#allocation2 + $0xe1] sm:$0xff] %vm365_vm1, %v678_v26  ;;  %v664_v52 = vmax.f32 %v632_v0, 0.0  ;;  %v598_v47 = vmul.f32 %v7273_v32, %v564_v49  ;;  %v566_v19 = vsub.f32 %v6977_v15, %v7197_v45 }
  0x86   : > { %749 = vst.msk [vmem:[#allocation2 + $0x19] sm:$0xff] %vm365_vm1, %v661_v28  ;;  %v599_v33 = vmul.f32 %v7273_v32, %v565_v63  ;;  %v617_v16 = vmul.f32 %v7273_v32, %v583_v40 }
  0x87   : > { %767 = vst.msk [vmem:[#allocation2 + $0xf1] sm:$0xff] %vm365_vm1, %v679_v62  ;;  %v633_v17 = vadd.f32 %v7278_v56, %v598_v47  ;;  %v600_v23 = vmul.f32 %v7273_v32, %v566_v19  ;;  %v584_v62 = vsub.f32 %v7119_v10, %v7197_v45  ;;  %v568_v47 = vsub.f32 %v6987_v21, %v7197_v45 }
  0x88   : > { %750 = vst.msk [vmem:[#allocation2 + $0x21] sm:$0xff] %vm365_vm1, %v662_v35  ;;  %v634_v7 = vadd.f32 %v7278_v56, %v599_v33  ;;  %v652_v22 = vadd.f32 %v7278_v56, %v617_v16  ;;  %v567_v35 = vsub.f32 %v6982_v18, %v7197_v45  ;;  %v586_v33 = vsub.f32 %v7135_v29, %v7197_v45 }
  0x89   : > { %v830_v14 = vld [vmem:[#allocation2 + $0xc1] sm:$0xff]  ;;  %768 = vst.msk [vmem:[#allocation2 + $0xf9] sm:$0xff] %vm365_vm1, %v680_v39  ;;  %v665_v2 = vmax.f32 %v633_v17, 0.0  ;;  %v635_v5 = vadd.f32 %v7278_v56, %v600_v23  ;;  %v618_v34 = vmul.f32 %v7273_v32, %v584_v62  ;;  %v602_v17 = vmul.f32 %v7273_v32, %v568_v47 }
  0x8a   : > { %v7313_v48 = vld [vmem:[#allocation2 + $0xc0] sm:$0xff]  ;;  %6209 = vmatmul.msk.f32.vlgmr.msra.gmra.mxu2 %vm365_vm1, %v830_v14  ;;  %v831_v43 = vld [vmem:[#allocation2 + $0xc9] sm:$0xff]  ;;  %v615_v14 = vmul.f32 %v7273_v32, %v581_v36  ;;  %751 = vst.msk [vmem:[#allocation2 + $0x31] sm:$0xff] %vm365_vm1, %v663_v41  ;;  %v666_v12 = vmax.f32 %v634_v7, 0.0  ;;  %v684_v26 = vmax.f32 %v652_v22, 0.0  ;;  %v601_v36 = vmul.f32 %v7273_v32, %v567_v35 }
  0x8b   : > { %6242 = vmatmul.msk.f32.vlgmr.msra.gmra.mxu3 %vm365_vm1, %v7313_v48  ;;  %v7346_v25 = vld [vmem:[#allocation2 + $0xc8] sm:$0xff]  ;;  %v7407_v58 = vld [vmem:[#allocation2 + $0xd9] sm:$0xff]  ;;  %769 = vst.msk [vmem:[#allocation2 + $0x109] sm:$0xff] %vm365_vm1, %v681_v51  ;;  %v667_v15 = vmax.f32 %v635_v5, 0.0  ;;  %v653_v0 = vadd.f32 %v7278_v56, %v618_v34  ;;  %v569_v7 = vsub.f32 %v6998_v27, %v7197_v45  ;;  %v587_v5 = vsub.f32 %v7143_v37, %v7197_v45 }
  0x8c   : > { %v650_v8 = vadd.f32 %v7278_v56, %v615_v14  ;;  %v7409_v9 = vld [vmem:[#allocation2 + $0xd8] sm:$0xff]  ;;  %752 = vst.msk [vmem:[#allocation2 + $0x39] sm:$0xff] %vm365_vm1, %v664_v52  ;;  %v7434_v1 = vld [vmem:[#allocation2 + $0xe1] sm:$0xff]  ;;  %v636_v14 = vadd.f32 %v7278_v56, %v601_v36  ;;  %v585_v52 = vsub.f32 %v7127_v20, %v7197_v45  ;;  %v570_v62 = vsub.f32 %v7005_v31, %v7197_v45 }
  0x8d   : > { %v7419_v59 = vld [vmem:[#allocation2 + $0x19] sm:$0xff]  ;;  %753 = vst.msk [vmem:[#allocation2 + $0x49] sm:$0xff] %vm365_vm1, %v665_v2  ;;  %v685_v41 = vmax.f32 %v653_v0, 0.0  ;;  %v603_v40 = vmul.f32 %v7273_v32, %v569_v7  ;;  %v571_v47 = vsub.f32 %v7015_v38, %v7197_v45  ;;  %v589_v7 = vsub.f32 %v7159_v55, %v7197_v45 }
  0x8e   : > { %v682_v53 = vmax.f32 %v650_v8, 0.0  ;;  %v7421_v60 = vld [vmem:[#allocation2 + $0x18] sm:$0xff]  ;;  %6195 = vmatmul.msk.f32.gmra.mxu0 %vm365_vm1, %v7419_v59  ;;  %v7436_v6 = vld [vmem:[#allocation2 + $0xe0] sm:$0xff]  ;;  %754 = vst.msk [vmem:[#allocation2 + $0x51] sm:$0xff] %vm365_vm1, %v666_v12  ;;  %v7462_v61 = vld [vmem:[#allocation2 + $0xf0] sm:$0xff]  ;;  %v668_v18 = vmax.f32 %v636_v14, 0.0  ;;  %v619_v8 = vmul.f32 %v7273_v32, %v585_v52  ;;  %v604_v35 = vmul.f32 %v7273_v32, %v570_v62 }
  0x8f   : > { %6228 = vmatmul.msk.f32.gmra.mxu1 %vm365_vm1, %v7421_v60  ;;  %v7439_v11 = vld [vmem:[#allocation2 + $0x21] sm:$0xff]  ;;  %v7460_v24 = vld [vmem:[#allocation2 + $0xf1] sm:$0xff]  ;;  %772 = vst.msk [vmem:[#allocation2 + $0x129] sm:$0xff] %vm365_vm1, %v684_v26  ;;  %v638_v22 = vadd.f32 %v7278_v56, %v603_v40  ;;  %v588_v52 = vsub.f32 %v7151_v46, %v7197_v45  ;;  %v572_v40 = vsub.f32 %v7023_v44, %v7197_v45 }
  0x90   : > { %770 = vst.msk [vmem:[#allocation2 + $0x111] sm:$0xff] %vm365_vm1, %v682_v53  ;;  %v7441_v13 = vld [vmem:[#allocation2 + $0x20] sm:$0xff]  ;;  %v7488_v10 = vld [vmem:[#allocation2 + $0xf8] sm:$0xff]  ;;  %v654_v53 = vadd.f32 %v7278_v56, %v619_v8 }
  0x91   : > { %v7465_v28 = vld [vmem:[#allocation2 + $0x31] sm:$0xff]  ;;  %755 = vst.msk [vmem:[#allocation2 + $0x61] sm:$0xff] %vm365_vm1, %v667_v15  ;;  %v7486_v39 = vld [vmem:[#allocation2 + $0xf9] sm:$0xff]  ;;  %v670_v27 = vmax.f32 %v638_v22, 0.0  ;;  %v621_v15 = vmul.f32 %v7273_v32, %v587_v5  ;;  %v622_v8 = vmul.f32 %v7273_v32, %v588_v52  ;;  %v606_v22 = vmul.f32 %v7273_v32, %v572_v40 }
  0x92   : > { %6210 = vmatmul.msk.f32.gmra.mxu2 %vm365_vm1, %v831_v43  ;;  %v582_v43 = vsub.f32 %v7103_v54, %v7197_v45  ;;  %v7467_v30 = vld [vmem:[#allocation2 + $0x30] sm:$0xff]  ;;  %773 = vst.msk [vmem:[#allocation2 + $0x139] sm:$0xff] %vm365_vm1, %v685_v41  ;;  %v7514_v20 = vld [vmem:[#allocation2 + $0x108] sm:$0xff]  ;;  %v639_v41 = vadd.f32 %v7278_v56, %v604_v35  ;;  %v573_v35 = vsub.f32 %v7031_v50, %v7197_v45 }
  0x93   : > { %6243 = vmatmul.msk.f32.gmra.mxu3 %vm365_vm1, %v7346_v25  ;;  %v7491_v49 = vld [vmem:[#allocation2 + $0x39] sm:$0xff]  ;;  %756 = vst.msk [vmem:[#allocation2 + $0x69] sm:$0xff] %vm365_vm1, %v668_v18  ;;  %v7512_v2 = vld [vmem:[#allocation2 + $0x109] sm:$0xff]  ;;  %v656_v34 = vadd.f32 %v7278_v56, %v621_v15  ;;  %v641_v15 = vadd.f32 %v7278_v56, %v606_v22 }
  0x94   : > { %v616_v3 = vmul.f32 %v7273_v32, %v582_v43  ;;  %v7493_v51 = vld [vmem:[#allocation2 + $0x38] sm:$0xff]  ;;  %v686_v43 = vmax.f32 %v654_v53, 0.0  ;;  %v7517_v63 = vld [vmem:[#allocation2 + $0x49] sm:$0xff]  ;;  %758 = vst.msk [vmem:[#allocation2 + $0x81] sm:$0xff] %vm365_vm1, %v670_v27  ;;  %v671_v31 = vmax.f32 %v639_v41, 0.0  ;;  %v657_v53 = vadd.f32 %v7278_v56, %v622_v8 }
  0x95   : > { %v7543_v23 = vld [vmem:[#allocation2 + $0x51] sm:$0xff]  ;;  %v688_v36 = vmax.f32 %v656_v34, 0.0  ;;  %v673_v44 = vmax.f32 %v641_v15, 0.0  ;;  %v6462_v15 = vld [vmem:[%s10448_s4 + $0x20] sm:$0xf] }
  0x96   : > { %v651_v54 = vadd.f32 %v7278_v56, %v616_v3  ;;  %6196 = vmatmul.msk.f32.gmra.mxu0 %vm365_vm1, %v7439_v11  ;;  %v637_v3 = vadd.f32 %v7278_v56, %v602_v17  ;;  %774 = vst.msk [vmem:[#allocation2 + $0x141] sm:$0xff] %vm365_vm1, %v686_v43  ;;  %v7545_v26 = vld [vmem:[#allocation2 + $0x50] sm:$0xff]  ;;  %v605_v17 = vmul.f32 %v7273_v32, %v571_v47 }
  0x97   : > { %6229 = vmatmul.msk.f32.gmra.mxu1 %vm365_vm1, %v7441_v13  ;;  %v7538_v16 = vld [vmem:[#allocation2 + $0x111] sm:$0xff]  ;;  %776 = vst.msk [vmem:[#allocation2 + $0x159] sm:$0xff] %vm365_vm1, %v688_v36  ;;  %v7590_v43 = vld [vmem:[#allocation2 + $0x129] sm:$0xff]  ;;  %v607_v36 = vmul.f32 %v7273_v32, %v573_v35  ;;  %v2107_v35 = vld [vmem:[#allocation2 + $0x1a] sm:$0xff]  ;;  %6463 = vmatpush.msk.msra.mxu0 %vm944_vm0, %v6462_v15 }
  0x98   : > { %v683_v4 = vmax.f32 %v651_v54, 0.0  ;;  %v7519_v54 = vld [vmem:[#allocation2 + $0x48] sm:$0xff]  ;;  %v669_v21 = vmax.f32 %v637_v3, 0.0  ;;  %v7540_v29 = vld [vmem:[#allocation2 + $0x110] sm:$0xff]  ;;  %v7571_v18 = vld [vmem:[#allocation2 + $0x60] sm:$0xff]  ;;  %759 = vst.msk [vmem:[#allocation2 + $0x91] sm:$0xff] %vm365_vm1, %v671_v31 }
  0x99   : > { %v7569_v14 = vld [vmem:[#allocation2 + $0x61] sm:$0xff]  ;;  %v689_v3 = vmax.f32 %v657_v53, 0.0  ;;  %v7616_v27 = vld [vmem:[#allocation2 + $0x139] sm:$0xff]  ;;  %761 = vst.msk [vmem:[#allocation2 + $0xa9] sm:$0xff] %vm365_vm1, %v673_v44  ;;  %v642_v52 = vadd.f32 %v7278_v56, %v607_v36  ;;  %v6360_v44 = vld [vmem:[%s10448_s4 + $0x14] sm:$0xf] }
  0x9a   : > { %6211 = vmatmul.msk.f32.gmra.mxu2 %vm365_vm1, %v7407_v58  ;;  %771 = vst.msk [vmem:[#allocation2 + $0x121] sm:$0xff] %vm365_vm1, %v683_v4  ;;  %v620_v4 = vmul.f32 %v7273_v32, %v586_v33  ;;  %v7595_v33 = vld [vmem:[#allocation2 + $0x69] sm:$0xff]  ;;  %v7618_v55 = vld [vmem:[#allocation2 + $0x138] sm:$0xff]  ;;  %6361 = vmatpush.msk.msrb.mxu1 %vm944_vm0, %v6360_v44 }
  0x9b   : > { %6244 = vmatmul.msk.f32.gmra.mxu3 %vm365_vm1, %v7409_v9  ;;  %757 = vst.msk [vmem:[#allocation2 + $0x79] sm:$0xff] %vm365_vm1, %v669_v21  ;;  %v640_v21 = vadd.f32 %v7278_v56, %v605_v17  ;;  %v7643_v8 = vld [vmem:[#allocation2 + $0x81] sm:$0xff]  ;;  %v674_v50 = vmax.f32 %v642_v52, 0.0 }
  0x9c   : > { %v655_v12 = vadd.f32 %v7278_v56, %v620_v4  ;;  %v7597_v4 = vld [vmem:[#allocation2 + $0x68] sm:$0xff]  ;;  %777 = vst.msk [vmem:[#allocation2 + $0x169] sm:$0xff] %vm365_vm1, %v689_v3 }
  0x9d   : > { %v672_v38 = vmax.f32 %v640_v21, 0.0  ;;  %v7638_v41 = vld [vmem:[#allocation2 + $0x141] sm:$0xff]  ;;  %762 = vst.msk [vmem:[#allocation2 + $0xb1] sm:$0xff] %vm365_vm1, %v674_v50 }
  0x9e   : > { %6197 = vmatmul.msk.f32.gmra.mxu0 %vm365_vm1, %v7465_v28  ;;  %v687_v19 = vmax.f32 %v655_v12, 0.0  ;;  %v623_v12 = vmul.f32 %v7273_v32, %v589_v7  ;;  %v7640_v31 = vld [vmem:[#allocation2 + $0x140] sm:$0xff]  ;;  %v6428_v7 = vld [vmem:[%s10448_s4 + $0x1c] sm:$0xf]  ;;  %3543 = vst.msk [vmem:[#allocation2 + $0x18] sm:$0xff] %vm365_vm1, %v10459_v57 }
  0x9f   : > { %6230 = vmatmul.msk.f32.gmra.mxu1 %vm365_vm1, %v7467_v30  ;;  %760 = vst.msk [vmem:[#allocation2 + $0x99] sm:$0xff] %vm365_vm1, %v672_v38  ;;  %v1273_v53 = vld [vmem:[#allocation2 + $0x2] sm:$0xff]  ;;  %v7662_v3 = vld [vmem:[#allocation2 + $0x91] sm:$0xff]  ;;  %6429 = vmatpush.msk.msra.mxu3 %vm944_vm0, %v6428_v7  ;;  %v7686_v40 = vld [vmem:[#allocation2 + $0x159] sm:$0xff] }
  0xa0   : > { %775 = vst.msk [vmem:[#allocation2 + $0x151] sm:$0xff] %vm365_vm1, %v687_v19  ;;  %v658_v19 = vadd.f32 %v7278_v56, %v623_v12  ;;  %v7664_v21 = vld [vmem:[#allocation2 + $0x90] sm:$0xff]  ;;  %v6394_v38 = vld [vmem:[%s10448_s4 + $0x18] sm:$0xf]  ;;  %v2108_v7 = vld [vmem:[#allocation2 + $0x22] sm:$0xff] }
  0xa1   : > { %v7564_v0 = vld [vmem:[#allocation2 + $0x121] sm:$0xff]  ;;  %3540 = vst.msk [vmem:[#allocation2] sm:$0xff] %vm365_vm1, %v10459_v57  ;;  %v1274_v12 = vld [vmem:[#allocation2 + $0xa] sm:$0xff]  ;;  %6395 = vmatpush.msk.msra.mxu2 %vm944_vm0, %v6394_v38 }
  0xa2   : > { %6212 = vmatmul.msk.f32.gmra.mxu2 %vm365_vm1, %v7434_v1  ;;  %v7566_v37 = vld [vmem:[#allocation2 + $0x120] sm:$0xff]  ;;  %v7592_v46 = vld [vmem:[#allocation2 + $0x128] sm:$0xff]  ;;  %v690_v5 = vmax.f32 %v658_v19, 0.0  ;;  %v7623_v34 = vld [vmem:[#allocation2 + $0x78] sm:$0xff]  ;;  %3541 = vst.msk [vmem:[#allocation2 + $0x8] sm:$0xff] %vm365_vm1, %v10459_v57 }
  0xa3   : > { %6245 = vmatmul.msk.f32.gmra.mxu3 %vm365_vm1, %v7436_v6  ;;  %v7621_v62 = vld [vmem:[#allocation2 + $0x79] sm:$0xff]  ;;  %3542 = vst.msk [vmem:[#allocation2 + $0x10] sm:$0x3] %vm695_vm6, %v10459_v57  ;;  %v7712_v36 = vld [vmem:[#allocation2 + $0x169] sm:$0xff] }
  0xa4   : > { %778 = vst.msk [vmem:[#allocation2 + $0x171] sm:$0xff] %vm365_vm1, %v690_v5  ;;  %v7645_v47 = vld [vmem:[#allocation2 + $0x80] sm:$0xff]  ;;  %v7714_v52 = vld [vmem:[#allocation2 + $0x168] sm:$0xff]  ;;  %v7736_v42 = vld [vmem:[#allocation2 + $0xb1] sm:$0xff] }
  0xa5   : > { %10533 = vst [vmem:[#allocation5_spill] sm:$0xff] %v7686_v40  ;;  %v7716_v50 = vld [vmem:[#allocation2 + $0xa9] sm:$0xff] }
  0xa6   : > { %6198 = vmatmul.msk.f32.gmra.mxu0 %vm365_vm1, %v7491_v49  ;;  %v7690_v22 = vld [vmem:[#allocation2 + $0x99] sm:$0xff]  ;;  %10535 = vst [vmem:[#allocation7_spill] sm:$0xff] %v7712_v36  ;;  %v7718_v38 = vld [vmem:[#allocation2 + $0xa8] sm:$0xff] }
  0xa7   : > { %6231 = vmatmul.msk.f32.gmra.mxu1 %vm365_vm1, %v7493_v51  ;;  %v7658_v56 = vld [vmem:[#allocation2 + $0x151] sm:$0xff]  ;;  %10536 = vst [vmem:[#allocation8_spill] sm:$0xff] %v7714_v52 }
  0xa8   : > { %10532 = vst [vmem:[#allocation4_spill] sm:$0xff] %v7658_v56  ;;  %v7660_v17 = vld [vmem:[#allocation2 + $0x150] sm:$0xff]  ;;  %v7688_v19 = vld [vmem:[#allocation2 + $0x158] sm:$0xff] }
  0xa9   : > { %10534 = vst [vmem:[#allocation6_spill] sm:$0xff] %v7688_v19  ;;  %v7692_v5 = vld [vmem:[#allocation2 + $0x98] sm:$0xff] }
  0xaa   : > { %6213 = vmatmul.msk.f32.gmra.mxu2 %vm365_vm1, %v7460_v24  ;;  %3545 = vst.msk [vmem:[#allocation2 + $0x28] sm:$0x3] %vm695_vm6, %v10459_v57 }
  0xab   : > { %6246 = vmatmul.msk.f32.gmra.mxu3 %vm365_vm1, %v7462_v61  ;;  %v7730_v15 = vld [vmem:[#allocation2 + $0x171] sm:$0xff]  ;;  %3544 = vst.msk [vmem:[#allocation2 + $0x20] sm:$0xff] %vm365_vm1, %v10459_v57 }
  0xac   : > { %10537 = vst [vmem:[#allocation9_spill] sm:$0xff] %v7730_v15  ;;  %v7732_v44 = vld [vmem:[#allocation2 + $0x170] sm:$0xff] }
  0xad   : > { %10538 = vst [vmem:[#allocation10_spill] sm:$0xff] %v7732_v44 }
  0xae   : > { %6199 = vmatmul.msk.f32.gmra.mxu0 %vm365_vm1, %v7517_v63 }
  0xaf   : > { %6232 = vmatmul.msk.f32.gmra.mxu1 %vm365_vm1, %v7519_v54 }
  0xb2   : > { %6214 = vmatmul.msk.f32.gmra.mxu2 %vm365_vm1, %v7486_v39 }
  0xb3   : > { %6247 = vmatmul.msk.f32.gmra.mxu3 %vm365_vm1, %v7488_v10 }
  0xb6   : > { %6200 = vmatmul.msk.f32.gmra.mxu0 %vm365_vm1, %v7543_v23 }
  0xb7   : > { %6233 = vmatmul.msk.f32.gmra.mxu1 %vm365_vm1, %v7545_v26 }
  0xba   : > { %6215 = vmatmul.msk.f32.gmra.mxu2 %vm365_vm1, %v7512_v2 }
  0xbb   : > { %6248 = vmatmul.msk.f32.gmra.mxu3 %vm365_vm1, %v7514_v20 }
  0xbe   : > { %6201 = vmatmul.msk.f32.gmra.mxu0 %vm365_vm1, %v7569_v14 }
  0xbf   : > { %6234 = vmatmul.msk.f32.gmra.mxu1 %vm365_vm1, %v7571_v18 }
  0xc2   : > { %6216 = vmatmul.msk.f32.gmra.mxu2 %vm365_vm1, %v7538_v16 }
  0xc3   : > { %6249 = vmatmul.msk.f32.gmra.mxu3 %vm365_vm1, %v7540_v29 }
  0xc6   : > { %6202 = vmatmul.msk.f32.gmra.mxu0 %vm365_vm1, %v7595_v33 }
  0xc7   : > { %6235 = vmatmul.msk.f32.gmra.mxu1 %vm365_vm1, %v7597_v4 }
  0xca   : > { %6217 = vmatmul.msk.f32.gmra.mxu2 %vm365_vm1, %v7564_v0 }
  0xcb   : > { %6250 = vmatmul.msk.f32.gmra.mxu3 %vm365_vm1, %v7566_v37 }
  0xce   : > { %6203 = vmatmul.msk.f32.gmra.mxu0 %vm365_vm1, %v7621_v62 }
  0xcf   : > { %6236 = vmatmul.msk.f32.gmra.mxu1 %vm365_vm1, %v7623_v34 }
  0xd2   : > { %6218 = vmatmul.msk.f32.gmra.mxu2 %vm365_vm1, %v7590_v43 }
  0xd3   : > { %6251 = vmatmul.msk.f32.gmra.mxu3 %vm365_vm1, %v7592_v46 }
  0xd6   : > { %6204 = vmatmul.msk.f32.gmra.mxu0 %vm365_vm1, %v7643_v8 }
  0xd7   : > { %6237 = vmatmul.msk.f32.gmra.mxu1 %vm365_vm1, %v7645_v47 }
  0xda   : > { %6219 = vmatmul.msk.f32.gmra.mxu2 %vm365_vm1, %v7616_v27 }
  0xdb   : > { %6252 = vmatmul.msk.f32.gmra.mxu3 %vm365_vm1, %v7618_v55 }
  0xde   : > { %6205 = vmatmul.msk.f32.gmra.mxu0 %vm365_vm1, %v7662_v3 }
  0xdf   : > { %6238 = vmatmul.msk.f32.gmra.mxu1 %vm365_vm1, %v7664_v21 }
  0xe2   : > { %6220 = vmatmul.msk.f32.gmra.mxu2 %vm365_vm1, %v7638_v41 }
  0xe3   : > { %6253 = vmatmul.msk.f32.gmra.mxu3 %vm365_vm1, %v7640_v31 }
  0xe6   : > { %6206 = vmatmul.msk.f32.gmra.mxu0 %vm365_vm1, %v7690_v22 }
  0xe7   : > { %6239 = vmatmul.msk.f32.gmra.mxu1 %vm365_vm1, %v7692_v5 }
  0xea   : > { %6221 = vmatmul.msk.f32.gmra.mxu2 %vm365_vm1, %v7658_v56  ;;  %v7795_v56 = vld [vmem:[#allocation2 + $0x3a] sm:$0xff] }
  0xeb   : > { %6254 = vmatmul.msk.f32.gmra.mxu3 %vm365_vm1, %v7660_v17  ;;  %10545 = vst [vmem:[#allocation17_spill] sm:$0xff] %v7795_v56 }
  0xee   : > { %6207 = vmatmul.msk.f32.gmra.mxu0 %vm365_vm1, %v7716_v50 }
  0xef   : > { %6240 = vmatmul.msk.f32.gmra.mxu1 %vm365_vm1, %v7718_v38 }
  0xf2   : > { %6222 = vmatmul.msk.f32.gmra.mxu2 %vm365_vm1, %v7686_v40  ;;  %v7750_v40 = vpop.f32.mrf.mxu1 }
  0xf3   : > { %6255 = vmatmul.msk.f32.gmra.mxu3 %vm365_vm1, %v7688_v19 }
  0xf6   : > { %6208 = vmatmul.msk.f32.gmra.mxu0 %vm365_vm1, %v7736_v42 }
  0xfa   : > { %6223 = vmatmul.msk.f32.gmra.mxu2 %vm365_vm1, %v7712_v36  ;;  %v7738_v36 = vld [vmem:[#allocation2 + $0xb0] sm:$0xff] }
  0xfb   : > { %6256 = vmatmul.msk.f32.gmra.mxu3 %vm365_vm1, %v7714_v52  ;;  %6241 = vmatmul.msk.f32.gmra.mxu1 %vm365_vm1, %v7738_v36  ;;  %v7748_v52 = vpop.f32.mrf.mxu0 }
  0xfe   : > { %6328 = vmatmul.msk.f32.vlgmr.msrb.gmra.mxu0 %vm365_vm1, %v7419_v59 }
 0x102   : > { %6224 = vmatmul.msk.f32.gmra.mxu2 %vm365_vm1, %v7730_v15 }
 0x103   : > { %6257 = vmatmul.msk.f32.gmra.mxu3 %vm365_vm1, %v7732_v44  ;;  %6362 = vmatmul.msk.f32.vlgmr.msrb.gmra.mxu1 %vm365_vm1, %v2107_v35  ;;  %v7762_v15 = vpop.f32.mrf.mxu0  ;;  %v7764_v44 = vpop.f32.mrf.mxu1 }
 0x106   : > { %6329 = vmatmul.msk.f32.gmra.mxu0 %vm365_vm1, %v7439_v11 }
 0x10a   : > { %6260 = vmatmul.msk.f32.vlgmr.msrb.gmra.mxu2 %vm365_vm1, %v1273_v53 }
 0x10b   : > { %6294 = vmatmul.msk.f32.vlgmr.msrb.gmra.mxu3 %vm365_vm1, %v7421_v60  ;;  %6363 = vmatmul.msk.f32.gmra.mxu1 %vm365_vm1, %v2108_v7  ;;  %v7776_v59 = vpop.f32.mrf.mxu0 }
 0x10c   : > { %v7778_v60 = vpop.f32.mrf.mxu1 }
 0x10d   : > { %v7752_v57 = vpop.f32.mrf.mxu2 }
 0x10e   : > { %10539 = vst [vmem:[#allocation11_spill] sm:$0xff] %v7752_v57  ;;  %v7754_v19 = vpop.f32.mrf.mxu3  ;;  %v7780_v57 = vld [vmem:[#allocation2 + $0x32] sm:$0xff]  ;;  %6330 = vmatmul.msk.f32.gmra.mxu0 %vm365_vm1, %v7465_v28 }
 0x10f   : > { %10540 = vst [vmem:[#allocation12_spill] sm:$0xff] %v7754_v19 }
 0x110   : > { %10543 = vst [vmem:[#allocation15_spill] sm:$0xff] %v7780_v57 }
 0x112   : > { %6261 = vmatmul.msk.f32.gmra.mxu2 %vm365_vm1, %v1274_v12 }
 0x113   : > { %6295 = vmatmul.msk.f32.gmra.mxu3 %vm365_vm1, %v7441_v13  ;;  %6364 = vmatmul.msk.f32.gmra.mxu1 %vm365_vm1, %v7780_v57 }
 0x115   : > { %v7769_v19 = vpop.f32.mrf.mxu2 }
 0x116   : > { %10541 = vst [vmem:[#allocation13_spill] sm:$0xff] %v7769_v19  ;;  %v7771_v53 = vpop.f32.mrf.mxu3  ;;  %v7793_v19 = vpop.f32.mrf.mxu1  ;;  %6331 = vmatmul.msk.f32.gmra.mxu0 %vm365_vm1, %v7491_v49 }
 0x117   : > { %10542 = vst [vmem:[#allocation14_spill] sm:$0xff] %v7771_v53  ;;  %v7791_v53 = vpop.f32.mrf.mxu0 }
 0x11a   : > { %6262 = vmatmul.msk.f32.gmra.mxu2 %vm365_vm1, %v2107_v35 }
 0x11b   : > { %6296 = vmatmul.msk.f32.gmra.mxu3 %vm365_vm1, %v7467_v30  ;;  %6365 = vmatmul.msk.f32.gmra.mxu1 %vm365_vm1, %v7795_v56 }
 0x11d   : > { %v1019_v11 = vpop.f32.mrf.mxu2 }
 0x11e   : > { %v1231_v13 = vpop.f32.mrf.mxu3  ;;  %6332 = vmatmul.msk.f32.gmra.mxu0 %vm365_vm1, %v7517_v63 }
 0x11f   : > { %v7789_v12 = vadd.f32 %v1231_v13, %v1019_v11  ;;  %v7806_v11 = vpop.f32.mrf.mxu0  ;;  %v7808_v13 = vpop.f32.mrf.mxu1 }
 0x121   : > { %10544 = vst [vmem:[#allocation16_spill] sm:$0xff] %v7789_v12  ;;  %v7810_v12 = vld [vmem:[#allocation2 + $0x4a] sm:$0xff] }
 0x122   : > { %6263 = vmatmul.msk.f32.gmra.mxu2 %vm365_vm1, %v2108_v7  ;;  %10547 = vst [vmem:[#allocation19_spill] sm:$0xff] %v7810_v12 }
 0x123   : > { %6297 = vmatmul.msk.f32.gmra.mxu3 %vm365_vm1, %v7493_v51  ;;  %6366 = vmatmul.msk.f32.gmra.mxu1 %vm365_vm1, %v7810_v12 }
 0x125   : > { %v1022_v28 = vpop.f32.mrf.mxu2 }
 0x126   : > { %v1234_v30 = vpop.f32.mrf.mxu3  ;;  %6333 = vmatmul.msk.f32.gmra.mxu0 %vm365_vm1, %v7543_v23 }
 0x127   : > { %v7804_v35 = vadd.f32 %v1234_v30, %v1022_v28  ;;  %v7822_v28 = vpop.f32.mrf.mxu0  ;;  %v7824_v30 = vpop.f32.mrf.mxu1 }
 0x129   : > { %10546 = vst [vmem:[#allocation18_spill] sm:$0xff] %v7804_v35  ;;  %v7826_v35 = vld [vmem:[#allocation2 + $0x52] sm:$0xff] }
 0x12a   : > { %6264 = vmatmul.msk.f32.gmra.mxu2 %vm365_vm1, %v7780_v57  ;;  %10549 = vst [vmem:[#allocation21_spill] sm:$0xff] %v7826_v35  ;;  %v7842_v57 = vld [vmem:[#allocation2 + $0x62] sm:$0xff] }
 0x12b   : > { %6298 = vmatmul.msk.f32.gmra.mxu3 %vm365_vm1, %v7519_v54  ;;  %6367 = vmatmul.msk.f32.gmra.mxu1 %vm365_vm1, %v7826_v35  ;;  %10551 = vst [vmem:[#allocation23_spill] sm:$0xff] %v7842_v57 }
 0x12d   : > { %v1025_v49 = vpop.f32.mrf.mxu2 }
 0x12e   : > { %v1237_v51 = vpop.f32.mrf.mxu3  ;;  %6334 = vmatmul.msk.f32.gmra.mxu0 %vm365_vm1, %v7569_v14 }
 0x12f   : > { %v7820_v7 = vadd.f32 %v1237_v51, %v1025_v49  ;;  %v7838_v51 = vpop.f32.mrf.mxu0 }
 0x131   : > { %10548 = vst [vmem:[#allocation20_spill] sm:$0xff] %v7820_v7  ;;  %v7840_v7 = vpop.f32.mrf.mxu1 }
 0x132   : > { %6265 = vmatmul.msk.f32.gmra.mxu2 %vm365_vm1, %v7795_v56  ;;  %v7858_v56 = vld [vmem:[#allocation2 + $0x6a] sm:$0xff] }
 0x133   : > { %6299 = vmatmul.msk.f32.gmra.mxu3 %vm365_vm1, %v7545_v26  ;;  %6368 = vmatmul.msk.f32.gmra.mxu1 %vm365_vm1, %v7842_v57  ;;  %10553 = vst [vmem:[#allocation25_spill] sm:$0xff] %v7858_v56 }
 0x135   : > { %v1028_v63 = vpop.f32.mrf.mxu2 }
 0x136   : > { %v1240_v54 = vpop.f32.mrf.mxu3  ;;  %6335 = vmatmul.msk.f32.gmra.mxu0 %vm365_vm1, %v7595_v33 }
 0x137   : > { %v7836_v49 = vadd.f32 %v1240_v54, %v1028_v63  ;;  %v7854_v54 = vpop.f32.mrf.mxu0 }
 0x139   : > { %10550 = vst [vmem:[#allocation22_spill] sm:$0xff] %v7836_v49  ;;  %v7856_v49 = vpop.f32.mrf.mxu1 }
 0x13a   : > { %6266 = vmatmul.msk.f32.gmra.mxu2 %vm365_vm1, %v7810_v12  ;;  %v7874_v12 = vld [vmem:[#allocation2 + $0x7a] sm:$0xff] }
 0x13b   : > { %6300 = vmatmul.msk.f32.gmra.mxu3 %vm365_vm1, %v7571_v18  ;;  %6369 = vmatmul.msk.f32.gmra.mxu1 %vm365_vm1, %v7858_v56  ;;  %10555 = vst [vmem:[#allocation27_spill] sm:$0xff] %v7874_v12 }
 0x13d   : > { %v1031_v23 = vpop.f32.mrf.mxu2 }
 0x13e   : > { %v1243_v26 = vpop.f32.mrf.mxu3  ;;  %6336 = vmatmul.msk.f32.gmra.mxu0 %vm365_vm1, %v7621_v62 }
 0x13f   : > { %v7852_v63 = vadd.f32 %v1243_v26, %v1031_v23  ;;  %v7870_v26 = vpop.f32.mrf.mxu0 }
 0x141   : > { %10552 = vst [vmem:[#allocation24_spill] sm:$0xff] %v7852_v63  ;;  %v7872_v63 = vpop.f32.mrf.mxu1 }
 0x142   : > { %6267 = vmatmul.msk.f32.gmra.mxu2 %vm365_vm1, %v7826_v35  ;;  %v7890_v35 = vld [vmem:[#allocation2 + $0x82] sm:$0xff] }
 0x143   : > { %6301 = vmatmul.msk.f32.gmra.mxu3 %vm365_vm1, %v7597_v4  ;;  %6370 = vmatmul.msk.f32.gmra.mxu1 %vm365_vm1, %v7874_v12  ;;  %10557 = vst [vmem:[#allocation29_spill] sm:$0xff] %v7890_v35 }
 0x145   : > { %v1034_v14 = vpop.f32.mrf.mxu2 }
 0x146   : > { %v1246_v18 = vpop.f32.mrf.mxu3  ;;  %6337 = vmatmul.msk.f32.gmra.mxu0 %vm365_vm1, %v7643_v8 }
 0x147   : > { %v7868_v23 = vadd.f32 %v1246_v18, %v1034_v14  ;;  %v7886_v18 = vpop.f32.mrf.mxu0 }
 0x149   : > { %10554 = vst [vmem:[#allocation26_spill] sm:$0xff] %v7868_v23  ;;  %v7888_v23 = vpop.f32.mrf.mxu1 }
 0x14a   : > { %6268 = vmatmul.msk.f32.gmra.mxu2 %vm365_vm1, %v7842_v57  ;;  %v7906_v57 = vld [vmem:[#allocation2 + $0x92] sm:$0xff] }
 0x14b   : > { %6302 = vmatmul.msk.f32.gmra.mxu3 %vm365_vm1, %v7623_v34  ;;  %6371 = vmatmul.msk.f32.gmra.mxu1 %vm365_vm1, %v7890_v35  ;;  %10559 = vst [vmem:[#allocation31_spill] sm:$0xff] %v7906_v57 }
 0x14d   : > { %v1037_v33 = vpop.f32.mrf.mxu2 }
 0x14e   : > { %v1249_v4 = vpop.f32.mrf.mxu3  ;;  %6338 = vmatmul.msk.f32.gmra.mxu0 %vm365_vm1, %v7662_v3 }
 0x14f   : > { %v7884_v14 = vadd.f32 %v1249_v4, %v1037_v33  ;;  %v7902_v4 = vpop.f32.mrf.mxu0 }
 0x151   : > { %10556 = vst [vmem:[#allocation28_spill] sm:$0xff] %v7884_v14  ;;  %v7904_v14 = vpop.f32.mrf.mxu1 }
 0x152   : > { %6269 = vmatmul.msk.f32.gmra.mxu2 %vm365_vm1, %v7858_v56  ;;  %v7922_v56 = vld [vmem:[#allocation2 + $0x9a] sm:$0xff] }
 0x153   : > { %6303 = vmatmul.msk.f32.gmra.mxu3 %vm365_vm1, %v7645_v47  ;;  %6372 = vmatmul.msk.f32.gmra.mxu1 %vm365_vm1, %v7906_v57  ;;  %10561 = vst [vmem:[#allocation33_spill] sm:$0xff] %v7922_v56 }
 0x155   : > { %v1040_v62 = vpop.f32.mrf.mxu2 }
 0x156   : > { %v1252_v34 = vpop.f32.mrf.mxu3  ;;  %6339 = vmatmul.msk.f32.gmra.mxu0 %vm365_vm1, %v7690_v22 }
 0x157   : > { %v7900_v33 = vadd.f32 %v1252_v34, %v1040_v62  ;;  %v7918_v34 = vpop.f32.mrf.mxu0 }
 0x159   : > { %10558 = vst [vmem:[#allocation30_spill] sm:$0xff] %v7900_v33  ;;  %v7920_v33 = vpop.f32.mrf.mxu1 }
 0x15a   : > { %6270 = vmatmul.msk.f32.gmra.mxu2 %vm365_vm1, %v7874_v12  ;;  %v7938_v12 = vld [vmem:[#allocation2 + $0xaa] sm:$0xff] }
 0x15b   : > { %6304 = vmatmul.msk.f32.gmra.mxu3 %vm365_vm1, %v7664_v21  ;;  %6373 = vmatmul.msk.f32.gmra.mxu1 %vm365_vm1, %v7922_v56  ;;  %10564 = vst [vmem:[#allocation36_spill] sm:$0xff] %v7938_v12 }
 0x15d   : > { %v1043_v8 = vpop.f32.mrf.mxu2 }
 0x15e   : > { %v1255_v47 = vpop.f32.mrf.mxu3  ;;  %6340 = vmatmul.msk.f32.gmra.mxu0 %vm365_vm1, %v7716_v50 }
 0x15f   : > { %v7916_v62 = vadd.f32 %v1255_v47, %v1043_v8  ;;  %v7934_v47 = vpop.f32.mrf.mxu0 }
 0x161   : > { %10560 = vst [vmem:[#allocation32_spill] sm:$0xff] %v7916_v62  ;;  %v7936_v62 = vpop.f32.mrf.mxu1 }
 0x162   : > { %6271 = vmatmul.msk.f32.gmra.mxu2 %vm365_vm1, %v7890_v35  ;;  %10563 = vst [vmem:[#allocation35_spill] sm:$0xff] %v7936_v62  ;;  %v10567_v35 = vmov 0.0   ;;  %v7960_v62 = vld [vmem:[#allocation2 + $0xb2] sm:$0xff] }
 0x163   : > { %6305 = vmatmul.msk.f32.gmra.mxu3 %vm365_vm1, %v7692_v5  ;;  %6374 = vmatmul.msk.f32.gmra.mxu1 %vm365_vm1, %v7938_v12  ;;  %10570 = vst [vmem:[#allocation41_spill] sm:$0xff] %v7960_v62 }
 0x165   : > { %v1046_v3 = vpop.f32.mrf.mxu2 }
 0x166   : > { %v1258_v21 = vpop.f32.mrf.mxu3  ;;  %6341 = vmatmul.msk.f32.gmra.mxu0 %vm365_vm1, %v7736_v42 }
 0x167   : > { %v7932_v8 = vadd.f32 %v1258_v21, %v1046_v3  ;;  %v7948_v3 = vld [vmem:[#allocation2 + $0xc9] sm:$0xff] }
 0x168   : > { %10565 = vst [vmem:[#allocation37_spill] sm:$0xff] %v7948_v3  ;;  %v7950_v21 = vld [vmem:[#allocation2 + $0xca] sm:$0xff] }
 0x169   : > { %10562 = vst [vmem:[#allocation34_spill] sm:$0xff] %v7932_v8 }
 0x16a   : > { %6272 = vmatmul.msk.f32.gmra.mxu2 %vm365_vm1, %v7906_v57  ;;  %3566 = vst.msk [vmem:[#allocation2 + $0xd0] sm:$0x3] %vm695_vm6, %v10567_v35  ;;  %v7956_v57 = vpop.f32.mrf.mxu0 }
 0x16b   : > { %6306 = vmatmul.msk.f32.gmra.mxu3 %vm365_vm1, %v7718_v38  ;;  %10568 = vst [vmem:[#allocation39_spill] sm:$0xff] %v7956_v57  ;;  %v7958_v38 = vpop.f32.mrf.mxu1  ;;  %6375 = vmatmul.msk.f32.gmra.mxu1 %vm365_vm1, %v7960_v62  ;;  %v7976_v57 = vld [vmem:[#allocation2 + $0xc1] sm:$0xff] }
 0x16c   : > { %10569 = vst [vmem:[#allocation40_spill] sm:$0xff] %v7958_v38 }
 0x16d   : > { %v1049_v22 = vpop.f32.mrf.mxu2  ;;  %10572 = vst [vmem:[#allocation43_spill] sm:$0xff] %v7976_v57 }
 0x16e   : > { %v1261_v5 = vpop.f32.mrf.mxu3  ;;  %6342 = vmatmul.msk.f32.gmra.mxu0 %vm365_vm1, %v7976_v57 }
 0x16f   : > { %v7952_v8 = vadd.f32 %v1261_v5, %v1049_v22 }
 0x171   : > { %10566 = vst [vmem:[#allocation38_spill] sm:$0xff] %v7952_v8 }
 0x172   : > { %6273 = vmatmul.msk.f32.gmra.mxu2 %vm365_vm1, %v7922_v56  ;;  %v7972_v8 = vpop.f32.mrf.mxu0  ;;  %v7978_v56 = vld [vmem:[#allocation2 + $0xc2] sm:$0xff] }
 0x173   : > { %6307 = vmatmul.msk.f32.gmra.mxu3 %vm365_vm1, %v7738_v36  ;;  %v7974_v38 = vpop.f32.mrf.mxu1  ;;  %10573 = vst [vmem:[#allocation44_spill] sm:$0xff] %v7978_v56  ;;  %6376 = vmatmul.msk.f32.gmra.mxu1 %vm365_vm1, %v7978_v56 }
 0x175   : > { %v1052_v50 = vpop.f32.mrf.mxu2 }
 0x176   : > { %v1264_v22 = vpop.f32.mrf.mxu3  ;;  %6343 = vmatmul.msk.f32.gmra.mxu0 %vm365_vm1, %v7948_v3 }
 0x177   : > { %v7970_v5 = vadd.f32 %v1264_v22, %v1052_v50 }
 0x179   : > { %10571 = vst [vmem:[#allocation42_spill] sm:$0xff] %v7970_v5 }
 0x17a   : > { %6274 = vmatmul.msk.f32.gmra.mxu2 %vm365_vm1, %v7938_v12  ;;  %v7990_v22 = vpop.f32.mrf.mxu0  ;;  %v8004_v12 = vld [vmem:[#allocation2 + $0xda] sm:$0xff] }
 0x17b   : > { %6308 = vmatmul.msk.f32.gmra.mxu3 %vm365_vm1, %v7313_v48  ;;  %10575 = vst [vmem:[#allocation46_spill] sm:$0xff] %v7990_v22  ;;  %v7992_v5 = vpop.f32.mrf.mxu1  ;;  %6377 = vmatmul.msk.f32.gmra.mxu1 %vm365_vm1, %v7950_v21  ;;  %v8016_v22 = vld [vmem:[#allocation2 + $0xe2] sm:$0xff] }
 0x17c   : > { %10576 = vst [vmem:[#allocation47_spill] sm:$0xff] %v7992_v5 }
 0x17d   : > { %v1055_v42 = vpop.f32.mrf.mxu2 }
 0x17e   : > { %v1267_v36 = vpop.f32.mrf.mxu3  ;;  %6344 = vmatmul.msk.f32.gmra.mxu0 %vm365_vm1, %v7407_v58  ;;  %v1181_v58 = vadd.f32 %v7764_v44, %v7762_v15 }
 0x17f   : > { %v7988_v50 = vadd.f32 %v1267_v36, %v1055_v42 }
 0x181   : > { %10574 = vst [vmem:[#allocation45_spill] sm:$0xff] %v7988_v50 }
 0x182   : > { %6275 = vmatmul.msk.f32.gmra.mxu2 %vm365_vm1, %v7960_v62  ;;  %v1979_v36 = vpop.f32.mrf.mxu0 }
 0x183   : > { %6309 = vmatmul.msk.f32.gmra.mxu3 %vm365_vm1, %v7346_v25  ;;  %v2257_v50 = vpop.f32.mrf.mxu1  ;;  %v1178_v25 = vadd.f32 %v7750_v40, %v7748_v52  ;;  %6378 = vmatmul.msk.f32.gmra.mxu1 %vm365_vm1, %v8004_v12 }
 0x185   : > { %v1058_v48 = vpop.f32.mrf.mxu2 }
 0x186   : > { %v1270_v57 = vpop.f32.mrf.mxu3  ;;  %6345 = vmatmul.msk.f32.gmra.mxu0 %vm365_vm1, %v7434_v1  ;;  %v1184_v1 = vadd.f32 %v7778_v60, %v7776_v59 }
 0x187   : > { %v8002_v42 = vadd.f32 %v1270_v57, %v1058_v48 }
 0x189   : > { %10577 = vst [vmem:[#allocation48_spill] sm:$0xff] %v8002_v42 }
 0x18a   : > { %6276 = vmatmul.msk.f32.gmra.mxu2 %vm365_vm1, %v7978_v56  ;;  %v1982_v62 = vpop.f32.mrf.mxu0 }
 0x18b   : > { %6310 = vmatmul.msk.f32.gmra.mxu3 %vm365_vm1, %v7409_v9  ;;  %v2260_v5 = vpop.f32.mrf.mxu1  ;;  %6379 = vmatmul.msk.f32.gmra.mxu1 %vm365_vm1, %v8016_v22 }
 0x18d   : > { %v1423_v57 = vpop.f32.mrf.mxu2 }
 0x18e   : > { %v1701_v48 = vpop.f32.mrf.mxu3  ;;  %v1519_v42 = vadd.f32 %v1423_v57, %v1178_v25  ;;  %v8030_v57 = vld [vmem:[#allocation2 + $0xf2] sm:$0xff]  ;;  %6346 = vmatmul.msk.f32.gmra.mxu0 %vm365_vm1, %v7460_v24  ;;  %v1187_v24 = vadd.f32 %v7793_v19, %v7791_v53 }
 0x190   : > { %v1797_v3 = vadd.f32 %v1701_v48, %v1519_v42 }
 0x192   : > { %v2075_v56 = vadd.f32 %v1979_v36, %v1797_v3  ;;  %6277 = vmatmul.msk.f32.gmra.mxu2 %vm365_vm1, %v7950_v21  ;;  %v1985_v36 = vpop.f32.mrf.mxu0 }
 0x193   : > { %6311 = vmatmul.msk.f32.gmra.mxu3 %vm365_vm1, %v7436_v6  ;;  %v2263_v25 = vpop.f32.mrf.mxu1  ;;  %6380 = vmatmul.msk.f32.gmra.mxu1 %vm365_vm1, %v8030_v57 }
 0x194   : > { %v8024_v9 = vadd.f32 %v2257_v50, %v2075_v56 }
 0x195   : > { %v1426_v40 = vpop.f32.mrf.mxu2 }
 0x196   : > { %v1704_v52 = vpop.f32.mrf.mxu3  ;;  %v1520_v3 = vadd.f32 %v1426_v40, %v1181_v58  ;;  %v8044_v40 = vld [vmem:[#allocation2 + $0xfa] sm:$0xff]  ;;  %6347 = vmatmul.msk.f32.gmra.mxu0 %vm365_vm1, %v7486_v39  ;;  %v1190_v39 = vadd.f32 %v7808_v13, %v7806_v11 }
 0x198   : > { %v1798_v42 = vadd.f32 %v1704_v52, %v1520_v3 }
 0x19a   : > { %v2076_v6 = vadd.f32 %v1982_v62, %v1798_v42  ;;  %6278 = vmatmul.msk.f32.gmra.mxu2 %vm365_vm1, %v8004_v12  ;;  %v1988_v48 = vpop.f32.mrf.mxu0 }
 0x19b   : > { %6312 = vmatmul.msk.f32.gmra.mxu3 %vm365_vm1, %v7462_v61  ;;  %v2266_v58 = vpop.f32.mrf.mxu1  ;;  %6381 = vmatmul.msk.f32.gmra.mxu1 %vm365_vm1, %v8044_v40 }
 0x19c   : > { %v8038_v56 = vadd.f32 %v2260_v5, %v2076_v6 }
 0x19d   : > { %v1429_v15 = vpop.f32.mrf.mxu2 }
 0x19e   : > { %v1707_v44 = vpop.f32.mrf.mxu3  ;;  %v1521_v62 = vadd.f32 %v1429_v15, %v1184_v1  ;;  %6348 = vmatmul.msk.f32.gmra.mxu0 %vm365_vm1, %v7512_v2  ;;  %v1193_v2 = vadd.f32 %v7824_v30, %v7822_v28 }
 0x1a0   : > { %v1799_v50 = vadd.f32 %v1707_v44, %v1521_v62  ;;  %v8072_v62 = vld [vmem:[#allocation2 + $0x112] sm:$0xff] }
 0x1a2   : > { %v2077_v61 = vadd.f32 %v1985_v36, %v1799_v50  ;;  %6279 = vmatmul.msk.f32.gmra.mxu2 %vm365_vm1, %v8016_v22  ;;  %v1991_v42 = vpop.f32.mrf.mxu0  ;;  %v8058_v36 = vld [vmem:[#allocation2 + $0x10a] sm:$0xff] }
 0x1a3   : > { %6313 = vmatmul.msk.f32.gmra.mxu3 %vm365_vm1, %v7488_v10  ;;  %v2269_v10 = vpop.f32.mrf.mxu1  ;;  %6382 = vmatmul.msk.f32.gmra.mxu1 %vm365_vm1, %v8058_v36 }
 0x1a4   : > { %v8052_v59 = vadd.f32 %v2263_v25, %v2077_v61 }
 0x1a5   : > { %v1432_v60 = vpop.f32.mrf.mxu2 }
 0x1a6   : > { %v1710_v5 = vpop.f32.mrf.mxu3  ;;  %v1522_v52 = vadd.f32 %v1432_v60, %v1187_v24  ;;  %6349 = vmatmul.msk.f32.gmra.mxu0 %vm365_vm1, %v7538_v16  ;;  %v8086_v60 = vld [vmem:[#allocation2 + $0x122] sm:$0xff]  ;;  %v1196_v16 = vadd.f32 %v7840_v7, %v7838_v51 }
 0x1a8   : > { %v1800_v3 = vadd.f32 %v1710_v5, %v1522_v52 }
 0x1aa   : > { %v2078_v6 = vadd.f32 %v1988_v48, %v1800_v3  ;;  %6280 = vmatmul.msk.f32.gmra.mxu2 %vm365_vm1, %v8030_v57  ;;  %v1994_v44 = vpop.f32.mrf.mxu0 }
 0x1ab   : > { %6314 = vmatmul.msk.f32.gmra.mxu3 %vm365_vm1, %v7514_v20  ;;  %v2272_v13 = vpop.f32.mrf.mxu1  ;;  %6383 = vmatmul.msk.f32.gmra.mxu1 %vm365_vm1, %v8072_v62 }
 0x1ac   : > { %v8066_v19 = vadd.f32 %v2266_v58, %v2078_v6 }
 0x1ad   : > { %v1435_v53 = vpop.f32.mrf.mxu2 }
 0x1ae   : > { %v1713_v25 = vpop.f32.mrf.mxu3  ;;  %v1523_v1 = vadd.f32 %v1435_v53, %v1190_v39  ;;  %6350 = vmatmul.msk.f32.gmra.mxu0 %vm365_vm1, %v7564_v0  ;;  %v1199_v0 = vadd.f32 %v7856_v49, %v7854_v54  ;;  %v6825_v54 = vld [vmem:[%s6946_s16 + $0xf0] sm:$0xff] }
 0x1b0   : > { %v1801_v15 = vadd.f32 %v1713_v25, %v1523_v1 }
 0x1b2   : > { %v2079_v20 = vadd.f32 %v1991_v42, %v1801_v15  ;;  %6281 = vmatmul.msk.f32.gmra.mxu2 %vm365_vm1, %v8044_v40  ;;  %v1997_v24 = vpop.f32.mrf.mxu0 }
 0x1b3   : > { %6315 = vmatmul.msk.f32.gmra.mxu3 %vm365_vm1, %v7540_v29  ;;  %6384 = vmatmul.msk.f32.gmra.mxu1 %vm365_vm1, %v8086_v60  ;;  %v2275_v3 = vpop.f32.mrf.mxu1 }
 0x1b4   : > { %v8080_v11 = vadd.f32 %v2269_v10, %v2079_v20  ;;  %v8100_v10 = vld [vmem:[#allocation2 + $0x12a] sm:$0xff]  ;;  %v590_v20 = vsub.f32 %v6825_v54, %v7197_v45 }
 0x1b5   : > { %v1438_v50 = vpop.f32.mrf.mxu2 }
 0x1b6   : > { %v1716_v48 = vpop.f32.mrf.mxu3  ;;  %v1524_v58 = vadd.f32 %v1438_v50, %v1193_v2  ;;  %6351 = vmatmul.msk.f32.gmra.mxu0 %vm365_vm1, %v7590_v43  ;;  %v1202_v43 = vadd.f32 %v7872_v63, %v7870_v26  ;;  %v6826_v63 = vld [vmem:[%s10446_s2] ss:$0 sm:$0xff] }
 0x1b8   : > { %v1802_v61 = vadd.f32 %v1716_v48, %v1524_v58 }
 0x1ba   : > { %v2080_v29 = vadd.f32 %v1994_v44, %v1802_v61  ;;  %6282 = vmatmul.msk.f32.gmra.mxu2 %vm365_vm1, %v8058_v36  ;;  %v2000_v6 = vpop.f32.mrf.mxu0  ;;  %v8114_v44 = vld [vmem:[#allocation2 + $0x13a] sm:$0xff] }
 0x1bb   : > { %6316 = vmatmul.msk.f32.gmra.mxu3 %vm365_vm1, %v7566_v37  ;;  %6385 = vmatmul.msk.f32.gmra.mxu1 %vm365_vm1, %v8100_v10  ;;  %v2278_v1 = vpop.f32.mrf.mxu1 }
 0x1bc   : > { %v8094_v28 = vadd.f32 %v2272_v13, %v2080_v29  ;;  %v1205_v29 = vadd.f32 %v7888_v23, %v7886_v18  ;;  %v8152_v23 = vld [vmem:[#allocation2 + $0x152] sm:$0xff] }
 0x1bd   : > { %v1441_v30 = vpop.f32.mrf.mxu2 }
 0x1be   : > { %v1719_v5 = vpop.f32.mrf.mxu3  ;;  %v1525_v52 = vadd.f32 %v1441_v30, %v1196_v16  ;;  %6352 = vmatmul.msk.f32.gmra.mxu0 %vm365_vm1, %v7616_v27  ;;  %v8134_v27 = vld [vmem:[#allocation2 + $0x142] sm:$0xff]  ;;  %v6827_v16 = vld [vmem:[%s6946_s16 + $0xf8] sm:$0xff] }
 0x1bf   : > { %v591_v30 = vsub.f32 %v6827_v16, %v7197_v45  ;;  %v1208_v45 = vadd.f32 %v7904_v14, %v7902_v4  ;;  %v10579_v14 = vld [vmem:[#allocation6_spill] sm:$0xff]  ;;  %v1211_v4 = vadd.f32 %v7920_v33, %v7918_v34 }
 0x1c0   : > { %v1803_v42 = vadd.f32 %v1719_v5, %v1525_v52  ;;  %v8189_v34 = vld [vmem:[#allocation2 + $0x16a] sm:$0xff] }
 0x1c2   : > { %v2081_v37 = vadd.f32 %v1997_v24, %v1803_v42  ;;  %6283 = vmatmul.msk.f32.gmra.mxu2 %vm365_vm1, %v8072_v62  ;;  %v2003_v15 = vpop.f32.mrf.mxu0 }
 0x1c3   : > { %6317 = vmatmul.msk.f32.gmra.mxu3 %vm365_vm1, %v7592_v46  ;;  %6386 = vmatmul.msk.f32.gmra.mxu1 %vm365_vm1, %v8114_v44 }
 0x1c4   : > { %v8108_v7 = vadd.f32 %v2275_v3, %v2081_v37 }
 0x1c5   : > { %v1444_v51 = vpop.f32.mrf.mxu2 }
 0x1c6   : > { %v1722_v39 = vpop.f32.mrf.mxu3  ;;  %v1526_v53 = vadd.f32 %v1444_v51, %v1199_v0  ;;  %6353 = vmatmul.msk.f32.gmra.mxu0 %vm365_vm1, %v7638_v41  ;;  %v10578_v0 = vld [vmem:[#allocation4_spill] sm:$0xff] }
 0x1c8   : > { %v1804_v25 = vadd.f32 %v1722_v39, %v1526_v53 }
 0x1ca   : > { %v2082_v46 = vadd.f32 %v2000_v6, %v1804_v25  ;;  %6284 = vmatmul.msk.f32.gmra.mxu2 %vm365_vm1, %v8086_v60  ;;  %v2006_v58 = vpop.f32.mrf.mxu0 }
 0x1cb   : > { %6318 = vmatmul.msk.f32.gmra.mxu3 %vm365_vm1, %v7618_v55  ;;  %v624_v55 = vmul.f32 %v7273_v32, %v590_v20  ;;  %6387 = vmatmul.msk.f32.gmra.mxu1 %vm365_vm1, %v8134_v27 }
 0x1cc   : > { %v8122_v49 = vadd.f32 %v2278_v1, %v2082_v46  ;;  %v8167_v1 = vld [vmem:[#allocation2 + $0x15a] sm:$0xff] }
 0x1cd   : > { %v1447_v2 = vpop.f32.mrf.mxu2  ;;  %v659_v26 = vadd.f32 %v6826_v63, %v624_v55 }
 0x1ce   : > { %v1725_v13 = vpop.f32.mrf.mxu3  ;;  %v1527_v50 = vadd.f32 %v1447_v2, %v1202_v43  ;;  %6354 = vmatmul.msk.f32.gmra.mxu0 %vm365_vm1, %v10578_v0  ;;  %v10585_v0 = vld [vmem:[#allocation39_spill] sm:$0xff] }
 0x1cf   : > { %v691_v24 = vmax.f32 %v659_v26, 0.0  ;;  %v2664_v26 = vld [vmem:[#allocation2 + $0x31] sm:$0xff] }
 0x1d0   : > { %v1805_v48 = vadd.f32 %v1725_v13, %v1527_v50 }
 0x1d1   : > { %779 = vst.msk [vmem:[#allocation2 + $0x181] sm:$0xff] %vm365_vm1, %v691_v24 }
 0x1d2   : > { %v8136_v61 = vadd.f32 %v2003_v15, %v1805_v48  ;;  %6285 = vmatmul.msk.f32.gmra.mxu2 %vm365_vm1, %v8100_v10  ;;  %v2009_v37 = vpop.f32.mrf.mxu0  ;;  %v10580_v15 = vld [vmem:[#allocation5_spill] sm:$0xff]  ;;  %v10581_v48 = vld [vmem:[#allocation8_spill] sm:$0xff] }
 0x1d3   : > { %6319 = vmatmul.msk.f32.gmra.mxu3 %vm365_vm1, %v7640_v31  ;;  %v625_v31 = vmul.f32 %v7273_v32, %v591_v30  ;;  %6388 = vmatmul.msk.f32.gmra.mxu1 %vm365_vm1, %v8152_v23 }
 0x1d5   : > { %v1450_v5 = vpop.f32.mrf.mxu2  ;;  %v660_v6 = vadd.f32 %v6826_v63, %v625_v31  ;;  %v2386_v63 = vld [vmem:[#allocation2 + $0x30] sm:$0xff] }
 0x1d6   : > { %v1728_v52 = vpop.f32.mrf.mxu3  ;;  %v1528_v3 = vadd.f32 %v1450_v5, %v1205_v29  ;;  %6355 = vmatmul.msk.f32.gmra.mxu0 %vm365_vm1, %v10580_v15  ;;  %v10583_v29 = vld [vmem:[#allocation7_spill] sm:$0xff]  ;;  %3546 = vst.msk [vmem:[#allocation2 + $0x30] sm:$0xff] %vm365_vm1, %v10567_v35 }
 0x1d7   : > { %v692_v41 = vmax.f32 %v660_v6, 0.0  ;;  %v8215_v6 = vld [vmem:[#allocation2 + $0x172] sm:$0xff] }
 0x1d8   : > { %v1806_v42 = vadd.f32 %v1728_v52, %v1528_v3  ;;  %v8181_v54 = vld [vmem:[#allocation2 + $0x180] sm:$0xff] }
 0x1d9   : > { %780 = vst.msk [vmem:[#allocation2 + $0x189] sm:$0xff] %vm365_vm1, %v692_v41  ;;  %v8183_v20 = vld [vmem:[#allocation2 + $0x181] sm:$0xff] }
 0x1da   : > { %v8154_v18 = vadd.f32 %v2006_v58, %v1806_v42  ;;  %6286 = vmatmul.msk.f32.gmra.mxu2 %vm365_vm1, %v8114_v44  ;;  %v2012_v25 = vpop.f32.mrf.mxu0  ;;  %v10582_v58 = vld [vmem:[#allocation35_spill] sm:$0xff]  ;;  %v10584_v41 = vld [vmem:[#allocation10_spill] sm:$0xff] }
 0x1db   : > { %6320 = vmatmul.msk.f32.gmra.mxu3 %vm365_vm1, %v7660_v17  ;;  %6389 = vmatmul.msk.f32.gmra.mxu1 %vm365_vm1, %v8167_v1  ;;  %v1214_v24 = vadd.f32 %v10582_v58, %v7934_v47 }
 0x1dd   : > { %v1453_v32 = vpop.f32.mrf.mxu2 }
 0x1de   : > { %v1731_v51 = vpop.f32.mrf.mxu3  ;;  %v1529_v39 = vadd.f32 %v1453_v32, %v1208_v45  ;;  %6356 = vmatmul.msk.f32.gmra.mxu0 %vm365_vm1, %v10583_v29  ;;  %v2665_v45 = vld [vmem:[#allocation2 + $0x39] sm:$0xff] }
 0x1df   : > { %v10586_v32 = vld [vmem:[#allocation40_spill] sm:$0xff]  ;;  %3548 = vst.msk [vmem:[#allocation2 + $0x40] sm:$0x3] %vm695_vm6, %v10567_v35 }
 0x1e0   : > { %v1807_v53 = vadd.f32 %v1731_v51, %v1529_v39  ;;  %v8185_v2 = vld [vmem:[#allocation2 + $0x182] sm:$0xff]  ;;  %v8207_v52 = vld [vmem:[#allocation2 + $0x18a] sm:$0xff]  ;;  %v1217_v51 = vadd.f32 %v10586_v32, %v10585_v0 }
 0x1e1   : > { %3588 = vst.msk [vmem:[#allocation2 + $0x180] sm:$0xff] %vm365_vm1, %v10567_v35  ;;  %v8205_v5 = vld [vmem:[#allocation2 + $0x189] sm:$0xff]  ;;  %v10587_v39 = vld [vmem:[#allocation9_spill] sm:$0xff] }
 0x1e2   : > { %v8169_v17 = vadd.f32 %v2009_v37, %v1807_v53  ;;  %6287 = vmatmul.msk.f32.gmra.mxu2 %vm365_vm1, %v8134_v27  ;;  %v2015_v33 = vpop.f32.mrf.mxu0  ;;  %v8209_v31 = vld [vmem:[#allocation2 + $0x188] sm:$0xff]  ;;  %3590 = vst.msk [vmem:[#allocation2 + $0x190] sm:$0x3] %vm695_vm6, %v10567_v35  ;;  %v2387_v53 = vld [vmem:[#allocation2 + $0x38] sm:$0xff] }
 0x1e3   : > { %6321 = vmatmul.msk.f32.gmra.mxu3 %vm365_vm1, %v10579_v14  ;;  %6390 = vmatmul.msk.f32.gmra.mxu1 %vm365_vm1, %v8189_v34  ;;  %3589 = vst.msk [vmem:[#allocation2 + $0x188] sm:$0xff] %vm365_vm1, %v10567_v35 }
 0x1e4   : > { %3547 = vst.msk [vmem:[#allocation2 + $0x38] sm:$0xff] %vm365_vm1, %v10567_v35 }
 0x1e5   : > { %v1456_v46 = vpop.f32.mrf.mxu2 }
 0x1e6   : > { %v1734_v43 = vpop.f32.mrf.mxu3  ;;  %v1530_v13 = vadd.f32 %v1456_v46, %v1211_v4  ;;  %6357 = vmatmul.msk.f32.gmra.mxu0 %vm365_vm1, %v10587_v39 }
 0x1e8   : > { %v1808_v50 = vadd.f32 %v1734_v43, %v1530_v13  ;;  %v2388_v13 = vld [vmem:[#allocation2 + $0x48] sm:$0xff] }
 0x1ea   : > { %v8191_v55 = vadd.f32 %v2012_v25, %v1808_v50  ;;  %6288 = vmatmul.msk.f32.gmra.mxu2 %vm365_vm1, %v8152_v23  ;;  %v2018_v42 = vpop.f32.mrf.mxu0  ;;  %v2666_v50 = vld [vmem:[#allocation2 + $0x49] sm:$0xff] }
 0x1eb   : > { %6322 = vmatmul.msk.f32.gmra.mxu3 %vm365_vm1, %v10581_v48  ;;  %6391 = vmatmul.msk.f32.gmra.mxu1 %vm365_vm1, %v8215_v6  ;;  %3549 = vst.msk [vmem:[#allocation2 + $0x48] sm:$0xff] %vm365_vm1, %v10567_v35 }
 0x1ed   : > { %v1459_v16 = vpop.f32.mrf.mxu2 }
 0x1ee   : > { %v1737_v30 = vpop.f32.mrf.mxu3  ;;  %v1531_v3 = vadd.f32 %v1459_v16, %v1214_v24  ;;  %6358 = vmatmul.msk.f32.gmra.mxu0 %vm365_vm1, %v8183_v20 }
 0x1f0   : > { %v1809_v47 = vadd.f32 %v1737_v30, %v1531_v3  ;;  %v10589_v3 = vld [vmem:[#allocation47_spill] sm:$0xff] }
 0x1f2   : > { %v8217_v37 = vadd.f32 %v2015_v33, %v1809_v47  ;;  %6289 = vmatmul.msk.f32.gmra.mxu2 %vm365_vm1, %v8167_v1  ;;  %v2021_v46 = vpop.f32.mrf.mxu0  ;;  %v1220_v33 = vadd.f32 %v7974_v38, %v7972_v8  ;;  %v2667_v8 = vld [vmem:[#allocation2 + $0x51] sm:$0xff]  ;;  %v10588_v38 = vld [vmem:[#allocation46_spill] sm:$0xff] }
 0x1f3   : > { %6323 = vmatmul.msk.f32.gmra.mxu3 %vm365_vm1, %v10584_v41  ;;  %6392 = vmatmul.msk.f32.gmra.mxu1 %vm365_vm1, %v8185_v2  ;;  %v1223_v47 = vadd.f32 %v10589_v3, %v10588_v38  ;;  %3551 = vst.msk [vmem:[#allocation2 + $0x58] sm:$0x3] %vm695_vm6, %v10567_v35 }
 0x1f5   : > { %v1462_v25 = vpop.f32.mrf.mxu2 }
 0x1f6   : > { %v1740_v14 = vpop.f32.mrf.mxu3  ;;  %v1532_v4 = vadd.f32 %v1462_v25, %v1217_v51  ;;  %6359 = vmatmul.msk.f32.gmra.mxu0 %vm365_vm1, %v8205_v5 }
 0x1f8   : > { %v1810_v15 = vadd.f32 %v1740_v14, %v1532_v4  ;;  %v2390_v14 = vld [vmem:[#allocation2 + $0x60] sm:$0xff] }
 0x1f9   : > { %v2668_v4 = vld [vmem:[#allocation2 + $0x61] sm:$0xff] }
 0x1fa   : > { %v8233_v43 = vadd.f32 %v2018_v42, %v1810_v15  ;;  %6290 = vmatmul.msk.f32.gmra.mxu2 %vm365_vm1, %v8189_v34  ;;  %v2024_v16 = vpop.f32.mrf.mxu0  ;;  %v2389_v42 = vld [vmem:[#allocation2 + $0x50] sm:$0xff]  ;;  %3552 = vst.msk [vmem:[#allocation2 + $0x60] sm:$0xff] %vm365_vm1, %v10567_v35 }
 0x1fb   : > { %6324 = vmatmul.msk.f32.gmra.mxu3 %vm365_vm1, %v8181_v54  ;;  %6393 = vmatmul.msk.f32.gmra.mxu1 %vm365_vm1, %v8207_v52  ;;  %3550 = vst.msk [vmem:[#allocation2 + $0x50] sm:$0xff] %vm365_vm1, %v10567_v35  ;;  %v10590_v15 = vld [vmem:[#allocation11_spill] sm:$0xff] }
 0x1fd   : > { %v1465_v48 = vpop.f32.mrf.mxu2 }
 0x1fe   : > { %v1743_v58 = vpop.f32.mrf.mxu3  ;;  %v1533_v24 = vadd.f32 %v1465_v48, %v1220_v33  ;;  %v10592_v48 = vld [vmem:[#allocation15_spill] sm:$0xff] }
 0x1ff   : > { %6464 = vmatmul.msk.f32.vlgmr.msra.gmra.mxu0 %vm365_vm1, %v10592_v48  ;;  %v2670_v48 = vld [vmem:[#allocation2 + $0x79] sm:$0xff] }
 0x200   : > { %v1811_v29 = vadd.f32 %v1743_v58, %v1533_v24 }
 0x202   : > { %v8247_v30 = vadd.f32 %v2021_v46, %v1811_v29  ;;  %6291 = vmatmul.msk.f32.gmra.mxu2 %vm365_vm1, %v8215_v6  ;;  %v2027_v39 = vpop.f32.mrf.mxu0  ;;  %v10591_v46 = vld [vmem:[#allocation12_spill] sm:$0xff] }
 0x203   : > { %6325 = vmatmul.msk.f32.gmra.mxu3 %vm365_vm1, %v8209_v31  ;;  %v1226_v33 = vadd.f32 %v10591_v46, %v10590_v15 }
 0x205   : > { %v1468_v41 = vpop.f32.mrf.mxu2 }
 0x206   : > { %v1746_v0 = vpop.f32.mrf.mxu3  ;;  %v1534_v32 = vadd.f32 %v1468_v41, %v1223_v47  ;;  %v10594_v47 = vld [vmem:[#allocation14_spill] sm:$0xff] }
 0x208   : > { %v1812_v51 = vadd.f32 %v1746_v0, %v1534_v32  ;;  %v10595_v0 = vld [vmem:[#allocation17_spill] sm:$0xff]  ;;  %v2391_v32 = vld [vmem:[#allocation2 + $0x68] sm:$0xff] }
 0x209   : > { %6465 = vmatmul.msk.f32.gmra.mxu0 %vm365_vm1, %v10595_v0  ;;  %v2393_v0 = vld [vmem:[#allocation2 + $0x80] sm:$0xff] }
 0x20a   : > { %v8263_v25 = vadd.f32 %v2024_v16, %v1812_v51  ;;  %6396 = vmatmul.msk.f32.vlgmr.msra.gmra.mxu2 %vm365_vm1, %v2386_v63  ;;  %v2030_v38 = vpop.f32.mrf.mxu0  ;;  %v2669_v63 = vld [vmem:[#allocation2 + $0x69] sm:$0xff] }
 0x20b   : > { %6430 = vmatmul.msk.f32.vlgmr.msra.gmra.mxu3 %vm365_vm1, %v2664_v26  ;;  %v10593_v26 = vld [vmem:[#allocation13_spill] sm:$0xff]  ;;  %3554 = vst.msk [vmem:[#allocation2 + $0x70] sm:$0x3] %vm695_vm6, %v10567_v35 }
 0x20c   : > { %v1229_v41 = vadd.f32 %v10594_v47, %v10593_v26  ;;  %3553 = vst.msk [vmem:[#allocation2 + $0x68] sm:$0xff] %vm365_vm1, %v10567_v35 }
 0x20d   : > { %v1471_v58 = vpop.f32.mrf.mxu2 }
 0x20e   : > { %v1749_v24 = vpop.f32.mrf.mxu3  ;;  %v1535_v29 = vadd.f32 %v1471_v58, %v1226_v33  ;;  %v2392_v33 = vld [vmem:[#allocation2 + $0x78] sm:$0xff]  ;;  %v10596_v58 = vld [vmem:[#allocation19_spill] sm:$0xff] }
 0x20f   : > { %3555 = vst.msk [vmem:[#allocation2 + $0x78] sm:$0xff] %vm365_vm1, %v10567_v35 }
 0x210   : > { %v1813_v16 = vadd.f32 %v1749_v24, %v1535_v29 }
 0x211   : > { %6466 = vmatmul.msk.f32.gmra.mxu0 %vm365_vm1, %v10596_v58 }
 0x212   : > { %v8273_v3 = vadd.f32 %v2027_v39, %v1813_v16  ;;  %6397 = vmatmul.msk.f32.gmra.mxu2 %vm365_vm1, %v2387_v53  ;;  %v2033_v46 = vpop.f32.mrf.mxu0  ;;  %v10597_v16 = vld [vmem:[#allocation16_spill] sm:$0xff] }
 0x213   : > { %6431 = vmatmul.msk.f32.gmra.mxu3 %vm365_vm1, %v2665_v45 }
 0x215   : > { %v1474_v51 = vpop.f32.mrf.mxu2 }
 0x216   : > { %v1752_v15 = vpop.f32.mrf.mxu3  ;;  %v1536_v39 = vadd.f32 %v1474_v51, %v1229_v41 }
 0x218   : > { %v1814_v53 = vadd.f32 %v1752_v15, %v1536_v39  ;;  %v10599_v39 = vld [vmem:[#allocation18_spill] sm:$0xff] }
 0x21a   : > { %v8285_v45 = vadd.f32 %v2030_v38, %v1814_v53  ;;  %6398 = vmatmul.msk.f32.gmra.mxu2 %vm365_vm1, %v2388_v13  ;;  %v2036_v41 = vpop.f32.mrf.mxu0  ;;  %v2671_v13 = vld [vmem:[#allocation2 + $0x81] sm:$0xff] }
 0x21b   : > { %6432 = vmatmul.msk.f32.gmra.mxu3 %vm365_vm1, %v2666_v50  ;;  %v10598_v50 = vld [vmem:[#allocation21_spill] sm:$0xff]  ;;  %3557 = vst.msk [vmem:[#allocation2 + $0x88] sm:$0x3] %vm695_vm6, %v10567_v35 }
 0x21c   : > { %6467 = vmatmul.msk.f32.gmra.mxu0 %vm365_vm1, %v10598_v50  ;;  %3556 = vst.msk [vmem:[#allocation2 + $0x80] sm:$0xff] %vm365_vm1, %v10567_v35 }
 0x21d   : > { %v1477_v24 = vpop.f32.mrf.mxu2 }
 0x21e   : > { %v1755_v29 = vpop.f32.mrf.mxu3  ;;  %v1537_v26 = vadd.f32 %v1477_v24, %v10597_v16  ;;  %v2672_v24 = vld [vmem:[#allocation2 + $0x91] sm:$0xff] }
 0x220   : > { %v1815_v47 = vadd.f32 %v1755_v29, %v1537_v26  ;;  %v10600_v29 = vld [vmem:[#allocation23_spill] sm:$0xff] }
 0x222   : > { %v8294_v38 = vadd.f32 %v2033_v46, %v1815_v47  ;;  %6399 = vmatmul.msk.f32.gmra.mxu2 %vm365_vm1, %v2389_v42  ;;  %v2039_v58 = vpop.f32.mrf.mxu0  ;;  %v10601_v47 = vld [vmem:[#allocation20_spill] sm:$0xff] }
 0x223   : > { %6433 = vmatmul.msk.f32.gmra.mxu3 %vm365_vm1, %v2667_v8  ;;  %v2394_v8 = vld [vmem:[#allocation2 + $0x90] sm:$0xff] }
 0x224   : > { %6468 = vmatmul.msk.f32.gmra.mxu0 %vm365_vm1, %v10600_v29  ;;  %3558 = vst.msk [vmem:[#allocation2 + $0x90] sm:$0xff] %vm365_vm1, %v10567_v35  ;;  %v10604_v29 = vld [vmem:[#allocation22_spill] sm:$0xff] }
 0x225   : > { %v1480_v51 = vpop.f32.mrf.mxu2 }
 0x226   : > { %v1758_v15 = vpop.f32.mrf.mxu3  ;;  %v1538_v53 = vadd.f32 %v1480_v51, %v10599_v39  ;;  %v2395_v39 = vld [vmem:[#allocation2 + $0x98] sm:$0xff] }
 0x228   : > { %v1816_v46 = vadd.f32 %v1758_v15, %v1538_v53 }
 0x22a   : > { %v8305_v42 = vadd.f32 %v2036_v41, %v1816_v46  ;;  %6400 = vmatmul.msk.f32.gmra.mxu2 %vm365_vm1, %v2390_v14  ;;  %v2042_v15 = vpop.f32.mrf.mxu0  ;;  %v2673_v14 = vld [vmem:[#allocation2 + $0x99] sm:$0xff] }
 0x22b   : > { %6434 = vmatmul.msk.f32.gmra.mxu3 %vm365_vm1, %v2668_v4  ;;  %v10603_v4 = vld [vmem:[#allocation25_spill] sm:$0xff]  ;;  %3560 = vst.msk [vmem:[#allocation2 + $0xa0] sm:$0x3] %vm695_vm6, %v10567_v35 }
 0x22c   : > { %6469 = vmatmul.msk.f32.gmra.mxu0 %vm365_vm1, %v10603_v4  ;;  %3559 = vst.msk [vmem:[#allocation2 + $0x98] sm:$0xff] %vm365_vm1, %v10567_v35 }
 0x22d   : > { %v1483_v16 = vpop.f32.mrf.mxu2 }
 0x22e   : > { %v1761_v26 = vpop.f32.mrf.mxu3  ;;  %v1539_v50 = vadd.f32 %v1483_v16, %v10601_v47  ;;  %v2674_v47 = vld [vmem:[#allocation2 + $0xa9] sm:$0xff] }
 0x230   : > { %v1817_v51 = vadd.f32 %v1761_v26, %v1539_v50  ;;  %v10606_v50 = vld [vmem:[#allocation27_spill] sm:$0xff] }
 0x232   : > { %v8314_v41 = vadd.f32 %v2039_v58, %v1817_v51  ;;  %6401 = vmatmul.msk.f32.gmra.mxu2 %vm365_vm1, %v2391_v32  ;;  %v2045_v26 = vpop.f32.mrf.mxu0 }
 0x233   : > { %6435 = vmatmul.msk.f32.gmra.mxu3 %vm365_vm1, %v2669_v63  ;;  %v2396_v63 = vld [vmem:[#allocation2 + $0xa8] sm:$0xff] }
 0x234   : > { %10602 = vst [vmem:[#allocation4_spill] sm:$0xff] %v8314_v41  ;;  %6470 = vmatmul.msk.f32.gmra.mxu0 %vm365_vm1, %v10606_v50  ;;  %v10607_v41 = vld [vmem:[#allocation24_spill] sm:$0xff] }
 0x235   : > { %v1486_v53 = vpop.f32.mrf.mxu2  ;;  %3561 = vst.msk [vmem:[#allocation2 + $0xa8] sm:$0xff] %vm365_vm1, %v10567_v35 }
 0x236   : > { %v1764_v46 = vpop.f32.mrf.mxu3  ;;  %v1540_v58 = vadd.f32 %v1486_v53, %v10604_v29 }
 0x238   : > { %v1818_v16 = vadd.f32 %v1764_v46, %v1540_v58  ;;  %v2397_v58 = vld [vmem:[#allocation2 + $0xb0] sm:$0xff] }
 0x23a   : > { %v8325_v32 = vadd.f32 %v2042_v15, %v1818_v16  ;;  %6402 = vmatmul.msk.f32.gmra.mxu2 %vm365_vm1, %v2392_v33  ;;  %v2048_v29 = vpop.f32.mrf.mxu0  ;;  %v2675_v33 = vld [vmem:[#allocation2 + $0xb1] sm:$0xff] }
 0x23b   : > { %6436 = vmatmul.msk.f32.gmra.mxu3 %vm365_vm1, %v2670_v48  ;;  %v10609_v48 = vld [vmem:[#allocation29_spill] sm:$0xff]  ;;  %3563 = vst.msk [vmem:[#allocation2 + $0xb8] sm:$0x3] %vm695_vm6, %v10567_v35 }
 0x23c   : > { %10605 = vst [vmem:[#allocation6_spill] sm:$0xff] %v8325_v32  ;;  %6471 = vmatmul.msk.f32.gmra.mxu0 %vm365_vm1, %v10609_v48 }
 0x23d   : > { %v1489_v51 = vpop.f32.mrf.mxu2  ;;  %3562 = vst.msk [vmem:[#allocation2 + $0xb0] sm:$0xff] %vm365_vm1, %v10567_v35 }
 0x23e   : > { %v1767_v4 = vpop.f32.mrf.mxu3  ;;  %v1541_v53 = vadd.f32 %v1489_v51, %v10607_v41  ;;  %v10610_v41 = vld [vmem:[#allocation26_spill] sm:$0xff] }
 0x240   : > { %v1819_v46 = vadd.f32 %v1767_v4, %v1541_v53 }
 0x242   : > { %v8334_v15 = vadd.f32 %v2045_v26, %v1819_v46  ;;  %6403 = vmatmul.msk.f32.gmra.mxu2 %vm365_vm1, %v2393_v0  ;;  %v2051_v4 = vpop.f32.mrf.mxu0  ;;  %v2398_v0 = vld [vmem:[#allocation2 + $0xc0] sm:$0xff] }
 0x243   : > { %6437 = vmatmul.msk.f32.gmra.mxu3 %vm365_vm1, %v2671_v13  ;;  %3564 = vst.msk [vmem:[#allocation2 + $0xc0] sm:$0xff] %vm365_vm1, %v10567_v35  ;;  %v10611_v13 = vld [vmem:[#allocation31_spill] sm:$0xff] }
 0x244   : > { %10608 = vst [vmem:[#allocation5_spill] sm:$0xff] %v8334_v15  ;;  %6472 = vmatmul.msk.f32.gmra.mxu0 %vm365_vm1, %v10611_v13  ;;  %v10612_v15 = vld [vmem:[#allocation28_spill] sm:$0xff] }
 0x245   : > { %v1492_v16 = vpop.f32.mrf.mxu2 }
 0x246   : > { %v1770_v50 = vpop.f32.mrf.mxu3  ;;  %v1542_v26 = vadd.f32 %v1492_v16, %v10610_v41  ;;  %v2399_v41 = vld [vmem:[#allocation2 + $0xc8] sm:$0xff] }
 0x247   : > { %3565 = vst.msk [vmem:[#allocation2 + $0xc8] sm:$0xff] %vm365_vm1, %v10567_v35 }
 0x248   : > { %v1820_v51 = vadd.f32 %v1770_v50, %v1542_v26 }
 0x24a   : > { %v8345_v53 = vadd.f32 %v2048_v29, %v1820_v51  ;;  %6404 = vmatmul.msk.f32.gmra.mxu2 %vm365_vm1, %v2394_v8  ;;  %v2054_v50 = vpop.f32.mrf.mxu0  ;;  %v10613_v8 = vld [vmem:[#allocation33_spill] sm:$0xff]  ;;  %v10614_v51 = vld [vmem:[#allocation30_spill] sm:$0xff] }
 0x24b   : > { %6438 = vmatmul.msk.f32.gmra.mxu3 %vm365_vm1, %v2672_v24 }
 0x24c   : > { %6473 = vmatmul.msk.f32.gmra.mxu0 %vm365_vm1, %v10613_v8  ;;  %v10617_v8 = vld [vmem:[#allocation32_spill] sm:$0xff] }
 0x24d   : > { %v1495_v46 = vpop.f32.mrf.mxu2 }
 0x24e   : > { %v1773_v48 = vpop.f32.mrf.mxu3  ;;  %v1543_v32 = vadd.f32 %v1495_v46, %v10612_v15 }
 0x250   : > { %v1821_v16 = vadd.f32 %v1773_v48, %v1543_v32 }
 0x252   : > { %v8354_v26 = vadd.f32 %v2051_v4, %v1821_v16  ;;  %6405 = vmatmul.msk.f32.gmra.mxu2 %vm365_vm1, %v2395_v39  ;;  %v2057_v32 = vpop.f32.mrf.mxu0  ;;  %v2400_v39 = vld [vmem:[#allocation2 + $0xd8] sm:$0xff] }
 0x253   : > { %6439 = vmatmul.msk.f32.gmra.mxu3 %vm365_vm1, %v2673_v14  ;;  %v2678_v14 = vld [vmem:[#allocation2 + $0xd9] sm:$0xff] }
 0x254   : > { %v10616_v4 = vld [vmem:[#allocation36_spill] sm:$0xff]  ;;  %3567 = vst.msk [vmem:[#allocation2 + $0xd8] sm:$0xff] %vm365_vm1, %v10567_v35 }
 0x255   : > { %v1498_v24 = vpop.f32.mrf.mxu2  ;;  %6474 = vmatmul.msk.f32.gmra.mxu0 %vm365_vm1, %v10616_v4 }
 0x256   : > { %v1776_v29 = vpop.f32.mrf.mxu3  ;;  %v1544_v13 = vadd.f32 %v1498_v24, %v10614_v51 }
 0x258   : > { %v1822_v15 = vadd.f32 %v1776_v29, %v1544_v13  ;;  %v2401_v13 = vld [vmem:[#allocation2 + $0xe0] sm:$0xff] }
 0x25a   : > { %v8363_v46 = vadd.f32 %v2054_v50, %v1822_v15  ;;  %6406 = vmatmul.msk.f32.gmra.mxu2 %vm365_vm1, %v2396_v63  ;;  %v2060_v51 = vpop.f32.mrf.mxu0  ;;  %v2679_v63 = vld [vmem:[#allocation2 + $0xe1] sm:$0xff] }
 0x25b   : > { %6440 = vmatmul.msk.f32.gmra.mxu3 %vm365_vm1, %v2674_v47  ;;  %v10619_v47 = vld [vmem:[#allocation41_spill] sm:$0xff]  ;;  %3569 = vst.msk [vmem:[#allocation2 + $0xe8] sm:$0x3] %vm695_vm6, %v10567_v35 }
 0x25c   : > { %10615 = vst [vmem:[#allocation8_spill] sm:$0xff] %v8363_v46 }
 0x25d   : > { %v1501_v48 = vpop.f32.mrf.mxu2  ;;  %6475 = vmatmul.msk.f32.gmra.mxu0 %vm365_vm1, %v10619_v47  ;;  %3568 = vst.msk [vmem:[#allocation2 + $0xe0] sm:$0xff] %vm365_vm1, %v10567_v35  ;;  %v10623_v47 = vld [vmem:[#allocation44_spill] sm:$0xff] }
 0x25e   : > { %v1779_v16 = vpop.f32.mrf.mxu3  ;;  %v1545_v24 = vadd.f32 %v1501_v48, %v10617_v8  ;;  %v10620_v48 = vld [vmem:[#allocation34_spill] sm:$0xff] }
 0x260   : > { %v1823_v29 = vadd.f32 %v1779_v16, %v1545_v24  ;;  %v2402_v24 = vld [vmem:[#allocation2 + $0xf0] sm:$0xff] }
 0x262   : > { %v8372_v50 = vadd.f32 %v2057_v32, %v1823_v29  ;;  %6407 = vmatmul.msk.f32.gmra.mxu2 %vm365_vm1, %v2397_v58  ;;  %v2063_v8 = vpop.f32.mrf.mxu0  ;;  %v2680_v29 = vld [vmem:[#allocation2 + $0xf1] sm:$0xff] }
 0x263   : > { %6441 = vmatmul.msk.f32.gmra.mxu3 %vm365_vm1, %v2675_v33  ;;  %v10622_v33 = vld [vmem:[#allocation43_spill] sm:$0xff]  ;;  %3570 = vst.msk [vmem:[#allocation2 + $0xf0] sm:$0xff] %vm365_vm1, %v10567_v35 }
 0x264   : > { %10618 = vst [vmem:[#allocation35_spill] sm:$0xff] %v8372_v50 }
 0x265   : > { %v1504_v15 = vpop.f32.mrf.mxu2  ;;  %6476 = vmatmul.msk.f32.gmra.mxu0 %vm365_vm1, %v10623_v47 }
 0x266   : > { %v1782_v4 = vpop.f32.mrf.mxu3  ;;  %v1546_v32 = vadd.f32 %v1504_v15, %v10620_v48  ;;  %v10624_v15 = vld [vmem:[#allocation38_spill] sm:$0xff] }
 0x268   : > { %v1824_v16 = vadd.f32 %v1782_v4, %v1546_v32 }
 0x26a   : > { %v8383_v58 = vadd.f32 %v2060_v51, %v1824_v16  ;;  %6408 = vmatmul.msk.f32.gmra.mxu2 %vm365_vm1, %v2398_v0  ;;  %v2066_v51 = vpop.f32.mrf.mxu0  ;;  %v10626_v0 = vld [vmem:[#allocation37_spill] sm:$0xff] }
 0x26b   : > { %6442 = vmatmul.msk.f32.gmra.mxu3 %vm365_vm1, %v10622_v33  ;;  %v2681_v16 = vld [vmem:[#allocation2 + $0xf9] sm:$0xff] }
 0x26c   : > { %10621 = vst [vmem:[#allocation7_spill] sm:$0xff] %v8383_v58  ;;  %v2403_v33 = vld [vmem:[#allocation2 + $0xf8] sm:$0xff] }
 0x26d   : > { %v1507_v50 = vpop.f32.mrf.mxu2  ;;  %6477 = vmatmul.msk.f32.gmra.mxu0 %vm365_vm1, %v7950_v21  ;;  %3572 = vst.msk [vmem:[#allocation2 + $0x100] sm:$0x3] %vm695_vm6, %v10567_v35  ;;  %v2404_v21 = vld [vmem:[#allocation2 + $0x108] sm:$0xff] }
 0x26e   : > { %v1785_v46 = vpop.f32.mrf.mxu3  ;;  %v1547_v4 = vadd.f32 %v1507_v50, %v10624_v15  ;;  %3571 = vst.msk [vmem:[#allocation2 + $0xf8] sm:$0xff] %vm365_vm1, %v10567_v35 }
 0x270   : > { %v1825_v48 = vadd.f32 %v1785_v46, %v1547_v4  ;;  %v10627_v46 = vld [vmem:[#allocation42_spill] sm:$0xff] }
 0x271   : > { %v2682_v4 = vld [vmem:[#allocation2 + $0x109] sm:$0xff] }
 0x272   : > { %v8393_v32 = vadd.f32 %v2063_v8, %v1825_v48  ;;  %6409 = vmatmul.msk.f32.gmra.mxu2 %vm365_vm1, %v2399_v41  ;;  %v2069_v41 = vpop.f32.mrf.mxu0  ;;  %3573 = vst.msk [vmem:[#allocation2 + $0x108] sm:$0xff] %vm365_vm1, %v10567_v35 }
 0x273   : > { %6443 = vmatmul.msk.f32.gmra.mxu3 %vm365_vm1, %v10626_v0 }
 0x274   : > { %10625 = vst [vmem:[#allocation10_spill] sm:$0xff] %v8393_v32  ;;  %v10629_v32 = vld [vmem:[#allocation45_spill] sm:$0xff] }
 0x275   : > { %v1510_v47 = vpop.f32.mrf.mxu2  ;;  %6478 = vmatmul.msk.f32.gmra.mxu0 %vm365_vm1, %v8004_v12  ;;  %v2405_v12 = vld [vmem:[#allocation2 + $0x110] sm:$0xff] }
 0x276   : > { %v1788_v58 = vpop.f32.mrf.mxu3  ;;  %v1548_v50 = vadd.f32 %v1510_v47, %v10627_v46 }
 0x278   : > { %v1826_v8 = vadd.f32 %v1788_v58, %v1548_v50 }
 0x27a   : > { %v8405_v15 = vadd.f32 %v2066_v51, %v1826_v8  ;;  %6410 = vmatmul.msk.f32.gmra.mxu2 %vm365_vm1, %v2400_v39  ;;  %v2072_v46 = vpop.f32.mrf.mxu0  ;;  %v2683_v39 = vld [vmem:[#allocation2 + $0x111] sm:$0xff] }
 0x27b   : > { %6444 = vmatmul.msk.f32.gmra.mxu3 %vm365_vm1, %v2678_v14  ;;  %3575 = vst.msk [vmem:[#allocation2 + $0x118] sm:$0x3] %vm695_vm6, %v10567_v35 }
 0x27c   : > { %10628 = vst [vmem:[#allocation39_spill] sm:$0xff] %v8405_v15 }
 0x27d   : > { %v1513_v48 = vpop.f32.mrf.mxu2  ;;  %6479 = vmatmul.msk.f32.gmra.mxu0 %vm365_vm1, %v8016_v22  ;;  %3574 = vst.msk [vmem:[#allocation2 + $0x110] sm:$0xff] %vm365_vm1, %v10567_v35  ;;  %v2406_v22 = vld [vmem:[#allocation2 + $0x120] sm:$0xff] }
 0x27e   : > { %v1791_v0 = vpop.f32.mrf.mxu3  ;;  %v1549_v47 = vadd.f32 %v1513_v48, %v10629_v32  ;;  %v10631_v32 = vld [vmem:[#allocation48_spill] sm:$0xff] }
 0x280   : > { %v1827_v58 = vadd.f32 %v1791_v0, %v1549_v47  ;;  %v2684_v0 = vld [vmem:[#allocation2 + $0x121] sm:$0xff] }
 0x281   : > { %3576 = vst.msk [vmem:[#allocation2 + $0x120] sm:$0xff] %vm365_vm1, %v10567_v35 }
 0x282   : > { %v8414_v51 = vadd.f32 %v2069_v41, %v1827_v58  ;;  %6411 = vmatmul.msk.f32.gmra.mxu2 %vm365_vm1, %v2401_v13  ;;  %v3092_v48 = vpop.f32.mrf.mxu0  ;;  %v8425_v13 = vpop.f32.mrf.mxu1 }
 0x283   : > { %6445 = vmatmul.msk.f32.gmra.mxu3 %vm365_vm1, %v2679_v63 }
 0x284   : > { %10630 = vst [vmem:[#allocation40_spill] sm:$0xff] %v8414_v51 }
 0x285   : > { %v1516_v14 = vpop.f32.mrf.mxu2  ;;  %6480 = vmatmul.msk.f32.gmra.mxu0 %vm365_vm1, %v8030_v57  ;;  %v2407_v57 = vld [vmem:[#allocation2 + $0x128] sm:$0xff] }
 0x286   : > { %v1794_v50 = vpop.f32.mrf.mxu3  ;;  %v1550_v8 = vadd.f32 %v1516_v14, %v10631_v32 }
 0x288   : > { %v1828_v41 = vadd.f32 %v1794_v50, %v1550_v8 }
 0x28a   : > { %v8427_v63 = vadd.f32 %v2072_v46, %v1828_v41  ;;  %6412 = vmatmul.msk.f32.gmra.mxu2 %vm365_vm1, %v2402_v24  ;;  %v3095_v32 = vpop.f32.mrf.mxu0  ;;  %v2685_v24 = vld [vmem:[#allocation2 + $0x129] sm:$0xff] }
 0x28b   : > { %6446 = vmatmul.msk.f32.gmra.mxu3 %vm365_vm1, %v2680_v29  ;;  %v8440_v29 = vpop.f32.mrf.mxu1  ;;  %3578 = vst.msk [vmem:[#allocation2 + $0x130] sm:$0x3] %vm695_vm6, %v10567_v35 }
 0x28c   : > { %10632 = vst [vmem:[#allocation9_spill] sm:$0xff] %v8427_v63 }
 0x28d   : > { %v2536_v47 = vpop.f32.mrf.mxu2  ;;  %6481 = vmatmul.msk.f32.gmra.mxu0 %vm365_vm1, %v8044_v40  ;;  %3577 = vst.msk [vmem:[#allocation2 + $0x128] sm:$0xff] %vm365_vm1, %v10567_v35 }
 0x28e   : > { %v2814_v58 = vpop.f32.mrf.mxu3  ;;  %v2632_v14 = vadd.f32 %v2536_v47, %v8024_v9  ;;  %v2408_v47 = vld [vmem:[#allocation2 + $0x138] sm:$0xff] }
 0x290   : > { %v2910_v50 = vadd.f32 %v2814_v58, %v2632_v14  ;;  %v2686_v58 = vld [vmem:[#allocation2 + $0x139] sm:$0xff] }
 0x291   : > { %3579 = vst.msk [vmem:[#allocation2 + $0x138] sm:$0xff] %vm365_vm1, %v10567_v35 }
 0x292   : > { %v8436_v46 = vadd.f32 %v3092_v48, %v2910_v50  ;;  %6413 = vmatmul.msk.f32.gmra.mxu2 %vm365_vm1, %v2403_v33  ;;  %v3098_v48 = vpop.f32.mrf.mxu0 }
 0x293   : > { %6447 = vmatmul.msk.f32.gmra.mxu3 %vm365_vm1, %v2681_v16  ;;  %v6496_v16 = vld [vmem:[%s10452_s8 + $0x4] sm:$0xf]  ;;  %v8461_v50 = vpop.f32.mrf.mxu1 }
 0x294   : > { %6497 = vmatpush.msk.msra.mxu1 %vm944_vm0, %v6496_v16 }
 0x295   : > { %v2539_v8 = vpop.f32.mrf.mxu2  ;;  %6482 = vmatmul.msk.f32.gmra.mxu0 %vm365_vm1, %v8058_v36  ;;  %v2409_v36 = vld [vmem:[#allocation2 + $0x140] sm:$0xff] }
 0x296   : > { %v2817_v9 = vpop.f32.mrf.mxu3  ;;  %v2633_v41 = vadd.f32 %v2539_v8, %v8038_v56 }
 0x298   : > { %v2911_v33 = vadd.f32 %v2817_v9, %v2633_v41 }
 0x29a   : > { %v8453_v40 = vadd.f32 %v3095_v32, %v2911_v33  ;;  %6414 = vmatmul.msk.f32.gmra.mxu2 %vm365_vm1, %v2404_v21  ;;  %v3101_v9 = vpop.f32.mrf.mxu0  ;;  %v2687_v21 = vld [vmem:[#allocation2 + $0x141] sm:$0xff] }
 0x29b   : > { %6448 = vmatmul.msk.f32.gmra.mxu3 %vm365_vm1, %v2682_v4  ;;  %3581 = vst.msk [vmem:[#allocation2 + $0x148] sm:$0x3] %vm695_vm6, %v10567_v35  ;;  %v8475_v16 = vpop.f32.mrf.mxu1 }
 0x29c   : > { %3580 = vst.msk [vmem:[#allocation2 + $0x140] sm:$0xff] %vm365_vm1, %v10567_v35 }
 0x29d   : > { %v2542_v56 = vpop.f32.mrf.mxu2  ;;  %6483 = vmatmul.msk.f32.gmra.mxu0 %vm365_vm1, %v8072_v62  ;;  %v2410_v62 = vld [vmem:[#allocation2 + $0x150] sm:$0xff] }
 0x29e   : > { %v2820_v14 = vpop.f32.mrf.mxu3  ;;  %v2634_v8 = vadd.f32 %v2542_v56, %v8052_v59  ;;  %v2688_v56 = vld [vmem:[#allocation2 + $0x151] sm:$0xff] }
 0x29f   : > { %3582 = vst.msk [vmem:[#allocation2 + $0x150] sm:$0xff] %vm365_vm1, %v10567_v35 }
 0x2a0   : > { %v2912_v32 = vadd.f32 %v2820_v14, %v2634_v8 }
 0x2a2   : > { %v8464_v41 = vadd.f32 %v3098_v48, %v2912_v32  ;;  %6415 = vmatmul.msk.f32.gmra.mxu2 %vm365_vm1, %v2405_v12  ;;  %v3104_v48 = vpop.f32.mrf.mxu0 }
 0x2a3   : > { %6449 = vmatmul.msk.f32.gmra.mxu3 %vm365_vm1, %v2683_v39 }
 0x2a5   : > { %v2545_v4 = vpop.f32.mrf.mxu2  ;;  %6484 = vmatmul.msk.f32.gmra.mxu0 %vm365_vm1, %v8086_v60  ;;  %v2411_v60 = vld [vmem:[#allocation2 + $0x158] sm:$0xff] }
 0x2a6   : > { %v2823_v33 = vpop.f32.mrf.mxu3  ;;  %v2635_v59 = vadd.f32 %v2545_v4, %v8066_v19 }
 0x2a8   : > { %v2913_v12 = vadd.f32 %v2823_v33, %v2635_v59 }
 0x2aa   : > { %v8477_v39 = vadd.f32 %v3101_v9, %v2913_v12  ;;  %6416 = vmatmul.msk.f32.gmra.mxu2 %vm365_vm1, %v2406_v22  ;;  %v3107_v4 = vpop.f32.mrf.mxu0  ;;  %v8486_v9 = vpop.f32.mrf.mxu1  ;;  %v2689_v22 = vld [vmem:[#allocation2 + $0x159] sm:$0xff] }
 0x2ab   : > { %6450 = vmatmul.msk.f32.gmra.mxu3 %vm365_vm1, %v2684_v0  ;;  %3584 = vst.msk [vmem:[#allocation2 + $0x160] sm:$0x3] %vm695_vm6, %v10567_v35 }
 0x2ac   : > { %3583 = vst.msk [vmem:[#allocation2 + $0x158] sm:$0xff] %vm365_vm1, %v10567_v35 }
 0x2ad   : > { %v2548_v14 = vpop.f32.mrf.mxu2  ;;  %6485 = vmatmul.msk.f32.gmra.mxu0 %vm365_vm1, %v8100_v10  ;;  %v2412_v10 = vld [vmem:[#allocation2 + $0x168] sm:$0xff] }
 0x2ae   : > { %v2826_v19 = vpop.f32.mrf.mxu3  ;;  %v2636_v8 = vadd.f32 %v2548_v14, %v8080_v11 }
 0x2b0   : > { %v2914_v32 = vadd.f32 %v2826_v19, %v2636_v8 }
 0x2b2   : > { %v8488_v33 = vadd.f32 %v3104_v48, %v2914_v32  ;;  %6417 = vmatmul.msk.f32.gmra.mxu2 %vm365_vm1, %v2407_v57  ;;  %v3110_v48 = vpop.f32.mrf.mxu0  ;;  %v8503_v14 = vpop.f32.mrf.mxu1 }
 0x2b3   : > { %6451 = vmatmul.msk.f32.gmra.mxu3 %vm365_vm1, %v2685_v24  ;;  %v2690_v24 = vld [vmem:[#allocation2 + $0x169] sm:$0xff] }
 0x2b4   : > { %3585 = vst.msk [vmem:[#allocation2 + $0x168] sm:$0xff] %vm365_vm1, %v10567_v35 }
 0x2b5   : > { %v2551_v0 = vpop.f32.mrf.mxu2  ;;  %6486 = vmatmul.msk.f32.gmra.mxu0 %vm365_vm1, %v8114_v44  ;;  %v2413_v44 = vld [vmem:[#allocation2 + $0x170] sm:$0xff] }
 0x2b6   : > { %v2829_v11 = vpop.f32.mrf.mxu3  ;;  %v2637_v59 = vadd.f32 %v2551_v0, %v8094_v28 }
 0x2b8   : > { %v2915_v12 = vadd.f32 %v2829_v11, %v2637_v59 }
 0x2ba   : > { %v8499_v57 = vadd.f32 %v3107_v4, %v2915_v12  ;;  %6418 = vmatmul.msk.f32.gmra.mxu2 %vm365_vm1, %v2408_v47  ;;  %v3113_v4 = vpop.f32.mrf.mxu0  ;;  %v2691_v47 = vld [vmem:[#allocation2 + $0x171] sm:$0xff] }
 0x2bb   : > { %6452 = vmatmul.msk.f32.gmra.mxu3 %vm365_vm1, %v2686_v58  ;;  %3587 = vst.msk [vmem:[#allocation2 + $0x178] sm:$0x3] %vm695_vm6, %v10567_v35 }
 0x2bc   : > { %3586 = vst.msk [vmem:[#allocation2 + $0x170] sm:$0xff] %vm365_vm1, %v10567_v35 }
 0x2bd   : > { %v2554_v19 = vpop.f32.mrf.mxu2  ;;  %6487 = vmatmul.msk.f32.gmra.mxu0 %vm365_vm1, %v8134_v27 }
 0x2be   : > { %v2832_v28 = vpop.f32.mrf.mxu3  ;;  %v2638_v8 = vadd.f32 %v2554_v19, %v8108_v7  ;;  %v8520_v7 = vpop.f32.mrf.mxu1 }
 0x2c0   : > { %v2916_v32 = vadd.f32 %v2832_v28, %v2638_v8  ;;  %v2416_v8 = vld [vmem:[#allocation2 + $0x198] sm:$0xff] }
 0x2c2   : > { %v8510_v0 = vadd.f32 %v3110_v48, %v2916_v32  ;;  %6419 = vmatmul.msk.f32.gmra.mxu2 %vm365_vm1, %v2409_v36  ;;  %v8523_v12 = vpop.f32.mrf.mxu0  ;;  %v2694_v32 = vld [vmem:[#allocation2 + $0x199] sm:$0xff] }
 0x2c3   : > { %6453 = vmatmul.msk.f32.gmra.mxu3 %vm365_vm1, %v2687_v21 }
 0x2c5   : > { %v2557_v58 = vpop.f32.mrf.mxu2  ;;  %6488 = vmatmul.msk.f32.gmra.mxu0 %vm365_vm1, %v8152_v23 }
 0x2c6   : > { %v2835_v11 = vpop.f32.mrf.mxu3  ;;  %v2639_v59 = vadd.f32 %v2557_v58, %v8122_v49  ;;  %v8535_v19 = vpop.f32.mrf.mxu1 }
 0x2c8   : > { %v2917_v36 = vadd.f32 %v2835_v11, %v2639_v59  ;;  %v2973_v11 = vld [vmem:[#allocation2 + $0x1a2] sm:$0xff] }
 0x2ca   : > { %v8525_v21 = vadd.f32 %v3113_v4, %v2917_v36  ;;  %6420 = vmatmul.msk.f32.gmra.mxu2 %vm365_vm1, %v2410_v62  ;;  %v8537_v28 = vpop.f32.mrf.mxu0  ;;  %v2972_v4 = vld [vmem:[#allocation2 + $0x19a] sm:$0xff] }
 0x2cb   : > { %6454 = vmatmul.msk.f32.gmra.mxu3 %vm365_vm1, %v2688_v56  ;;  %3591 = vst.msk [vmem:[#allocation2 + $0x198] sm:$0xff] %vm365_vm1, %v10567_v35 }
 0x2cd   : > { %v8531_v27 = vpop.f32.mrf.mxu2  ;;  %6489 = vmatmul.msk.f32.gmra.mxu0 %vm365_vm1, %v8167_v1 }
 0x2ce   : > { %v8533_v48 = vpop.f32.mrf.mxu3  ;;  %v8549_v56 = vpop.f32.mrf.mxu1 }
 0x2d2   : > { %6421 = vmatmul.msk.f32.gmra.mxu2 %vm365_vm1, %v2411_v60  ;;  %v8547_v23 = vpop.f32.mrf.mxu0 }
 0x2d3   : > { %6455 = vmatmul.msk.f32.gmra.mxu3 %vm365_vm1, %v2689_v22 }
 0x2d5   : > { %v8543_v49 = vpop.f32.mrf.mxu2  ;;  %6490 = vmatmul.msk.f32.gmra.mxu0 %vm365_vm1, %v8189_v34 }
 0x2d6   : > { %v8545_v62 = vpop.f32.mrf.mxu3  ;;  %v8563_v58 = vpop.f32.mrf.mxu1 }
 0x2da   : > { %6422 = vmatmul.msk.f32.gmra.mxu2 %vm365_vm1, %v2412_v10  ;;  %v8559_v1 = vpop.f32.mrf.mxu0 }
 0x2db   : > { %6456 = vmatmul.msk.f32.gmra.mxu3 %vm365_vm1, %v2690_v24  ;;  %10633 = vst [vmem:[#allocation46_spill] sm:$0xff] %v8559_v1 }
 0x2dd   : > { %v8555_v60 = vpop.f32.mrf.mxu2  ;;  %6491 = vmatmul.msk.f32.gmra.mxu0 %vm365_vm1, %v8215_v6 }
 0x2de   : > { %v8557_v22 = vpop.f32.mrf.mxu3 }
 0x2e2   : > { %6423 = vmatmul.msk.f32.gmra.mxu2 %vm365_vm1, %v2413_v44  ;;  %v8573_v24 = vpop.f32.mrf.mxu0  ;;  %v2695_v44 = vld [vmem:[#allocation2 + $0x1a1] sm:$0xff] }
 0x2e3   : > { %6457 = vmatmul.msk.f32.gmra.mxu3 %vm365_vm1, %v2691_v47  ;;  %10634 = vst [vmem:[#allocation47_spill] sm:$0xff] %v8573_v24  ;;  %v2417_v47 = vld [vmem:[#allocation2 + $0x1a0] sm:$0xff] }
 0x2e4   : > { %3592 = vst.msk [vmem:[#allocation2 + $0x1a0] sm:$0xff] %vm365_vm1, %v10567_v35 }
 0x2e5   : > { %v8569_v34 = vpop.f32.mrf.mxu2  ;;  %6492 = vmatmul.msk.f32.gmra.mxu0 %vm365_vm1, %v8185_v2  ;;  %3593 = vst.msk [vmem:[#allocation2 + $0x1a8] sm:$0x3] %vm695_vm6, %v10567_v35 }
 0x2e6   : > { %v8571_v10 = vpop.f32.mrf.mxu3 }
 0x2ea   : > { %6424 = vmatmul.msk.f32.gmra.mxu2 %vm365_vm1, %v8181_v54  ;;  %v2311_v54 = vpop.f32.mrf.mxu1  ;;  %v8589_v36 = vpop.f32.mrf.mxu0 }
 0x2eb   : > { %6458 = vmatmul.msk.f32.gmra.mxu3 %vm365_vm1, %v8183_v20  ;;  %10635 = vst [vmem:[#allocation11_spill] sm:$0xff] %v8589_v36 }
 0x2ed   : > { %v8583_v6 = vpop.f32.mrf.mxu2  ;;  %6493 = vmatmul.msk.f32.gmra.mxu0 %vm365_vm1, %v8207_v52 }
 0x2ee   : > { %v8585_v59 = vpop.f32.mrf.mxu3 }
 0x2f2   : > { %6425 = vmatmul.msk.f32.gmra.mxu2 %vm365_vm1, %v8209_v31  ;;  %v2314_v63 = vpop.f32.mrf.mxu1  ;;  %v8601_v51 = vpop.f32.mrf.mxu0 }
 0x2f3   : > { %6459 = vmatmul.msk.f32.gmra.mxu3 %vm365_vm1, %v8205_v5  ;;  %10637 = vst [vmem:[#allocation15_spill] sm:$0xff] %v8601_v51 }
 0x2f5   : > { %v8597_v20 = vpop.f32.mrf.mxu2  ;;  %6494 = vmatmul.msk.f32.gmra.mxu0 %vm365_vm1, %v2972_v4 }
 0x2f6   : > { %v8599_v2 = vpop.f32.mrf.mxu3 }
 0x2f7   : > { %10636 = vst [vmem:[#allocation12_spill] sm:$0xff] %v8599_v2 }
 0x2fa   : > { %6426 = vmatmul.msk.f32.gmra.mxu2 %vm365_vm1, %v2416_v8  ;;  %v8610_v5 = vpop.f32.mrf.mxu0  ;;  %v2317_v52 = vpop.f32.mrf.mxu1 }
 0x2fb   : > { %6460 = vmatmul.msk.f32.gmra.mxu3 %vm365_vm1, %v2694_v32  ;;  %10639 = vst [vmem:[#allocation14_spill] sm:$0xff] %v8610_v5 }
 0x2fd   : > { %v8606_v35 = vpop.f32.mrf.mxu2  ;;  %6495 = vmatmul.msk.f32.gmra.mxu0 %vm365_vm1, %v2973_v11 }
 0x2fe   : > { %v8608_v31 = vpop.f32.mrf.mxu3 }
 0x2ff   : > { %10638 = vst [vmem:[#allocation13_spill] sm:$0xff] %v8608_v31 }
 0x302   : > { %6427 = vmatmul.msk.f32.gmra.mxu2 %vm365_vm1, %v2417_v47  ;;  %v8619_v32 = vpop.f32.mrf.mxu0  ;;  %v2320_v4 = vpop.f32.mrf.mxu1 }
 0x303   : > { %6461 = vmatmul.msk.f32.gmra.mxu3 %vm365_vm1, %v2695_v44  ;;  %10642 = vst [vmem:[#allocation16_spill] sm:$0xff] %v8619_v32 }
 0x305   : > { %v8615_v15 = vpop.f32.mrf.mxu2 }
 0x306   : > { %10640 = vst [vmem:[#allocation17_spill] sm:$0xff] %v8615_v15  ;;  %v8617_v8 = vpop.f32.mrf.mxu3 }
 0x307   : > { %10641 = vst [vmem:[#allocation19_spill] sm:$0xff] %v8617_v8 }
 0x30a   : > { %v8625_v31 = vpop.f32.mrf.mxu0  ;;  %v2323_v44 = vpop.f32.mrf.mxu1 }
 0x30b   : > { %10645 = vst [vmem:[#allocation23_spill] sm:$0xff] %v8625_v31 }
 0x30d   : > { %v8621_v51 = vpop.f32.mrf.mxu2 }
 0x30e   : > { %10643 = vst [vmem:[#allocation21_spill] sm:$0xff] %v8621_v51  ;;  %v8623_v36 = vpop.f32.mrf.mxu3 }
 0x30f   : > { %10644 = vst [vmem:[#allocation18_spill] sm:$0xff] %v8623_v36 }
 0x312   : > { %v8631_v24 = vpop.f32.mrf.mxu0  ;;  %v2326_v8 = vpop.f32.mrf.mxu1 }
 0x313   : > { %10648 = vst [vmem:[#allocation22_spill] sm:$0xff] %v8631_v24 }
 0x315   : > { %v8627_v5 = vpop.f32.mrf.mxu2 }
 0x316   : > { %10646 = vst [vmem:[#allocation20_spill] sm:$0xff] %v8627_v5  ;;  %v8629_v47 = vpop.f32.mrf.mxu3 }
 0x317   : > { %10647 = vst [vmem:[#allocation25_spill] sm:$0xff] %v8629_v47 }
 0x31a   : > { %v8637_v32 = vpop.f32.mrf.mxu0  ;;  %v2329_v31 = vpop.f32.mrf.mxu1 }
 0x31b   : > { %10651 = vst [vmem:[#allocation29_spill] sm:$0xff] %v8637_v32  ;;  %v2361_v32 = vadd.f32 %v8425_v13, %v8136_v61 }
 0x31d   : > { %v8633_v11 = vpop.f32.mrf.mxu2  ;;  %v2640_v13 = vadd.f32 %v8531_v27, %v2361_v32 }
 0x31e   : > { %10649 = vst [vmem:[#allocation27_spill] sm:$0xff] %v8633_v11  ;;  %v8635_v15 = vpop.f32.mrf.mxu3 }
 0x31f   : > { %10650 = vst [vmem:[#allocation24_spill] sm:$0xff] %v8635_v15 }
 0x322   : > { %v8643_v36 = vpop.f32.mrf.mxu0  ;;  %v2332_v24 = vpop.f32.mrf.mxu1 }
 0x323   : > { %10653 = vst [vmem:[#allocation31_spill] sm:$0xff] %v8643_v36  ;;  %v2363_v36 = vadd.f32 %v8461_v50, %v8169_v17  ;;  %v8679_v17 = vadd.f32 %v8549_v56, %v8273_v3  ;;  %v10658_v3 = vld [vmem:[#allocation4_spill] sm:$0xff]  ;;  %v10659_v50 = vld [vmem:[#allocation6_spill] sm:$0xff] }
 0x325   : > { %v8639_v2 = vpop.f32.mrf.mxu2 }
 0x326   : > { %v8641_v51 = vpop.f32.mrf.mxu3 }
 0x327   : > { %10652 = vst [vmem:[#allocation26_spill] sm:$0xff] %v8641_v51  ;;  %v2362_v51 = vadd.f32 %v8440_v29, %v8154_v18  ;;  %v8675_v18 = vadd.f32 %v8535_v19, %v8263_v25  ;;  %v3290_v25 = vmul.f32 %v8436_v46, %v8436_v46  ;;  %v8697_v29 = vadd.f32 %v2317_v52, %v10658_v3 }
 0x328   : > { %v3294_v3 = vmul.f32 %v8488_v33, %v8488_v33 }
 0x329   : > { %v2641_v52 = vadd.f32 %v8543_v49, %v2362_v51 }
 0x32a   : > { %v8649_v1 = vpop.f32.mrf.mxu0  ;;  %v2335_v56 = vpop.f32.mrf.mxu1 }
 0x32b   : > { %10656 = vst [vmem:[#allocation30_spill] sm:$0xff] %v8649_v1  ;;  %v2365_v1 = vadd.f32 %v8486_v9, %v8217_v37  ;;  %v3291_v37 = vmul.f32 %v8453_v40, %v8453_v40  ;;  %v10660_v9 = vld [vmem:[#allocation5_spill] sm:$0xff] }
 0x32d   : > { %v8645_v5 = vpop.f32.mrf.mxu2 }
 0x32e   : > { %10654 = vst [vmem:[#allocation28_spill] sm:$0xff] %v8645_v5  ;;  %v8647_v47 = vpop.f32.mrf.mxu3  ;;  %v2364_v5 = vadd.f32 %v8475_v16, %v8191_v55  ;;  %v8683_v55 = vadd.f32 %v8563_v58, %v8285_v45  ;;  %v8700_v45 = vadd.f32 %v2320_v4, %v10659_v50  ;;  %v3221_v16 = vsel %vm365_vm1, %v8453_v40, 0.0 }
 0x32f   : > { %10655 = vst [vmem:[#allocation33_spill] sm:$0xff] %v8647_v47  ;;  %v2366_v47 = vadd.f32 %v8503_v14, %v8233_v43  ;;  %v8688_v43 = vadd.f32 %v2311_v54, %v8294_v38  ;;  %v3292_v38 = vmul.f32 %v8464_v41, %v8464_v41  ;;  %v8713_v14 = vadd.f32 %v2329_v31, %v8354_v26  ;;  %v10661_v26 = vld [vmem:[#allocation8_spill] sm:$0xff] }
 0x330   : > { %v3323_v58 = vsel %vm365_vm1, %v3291_v37, 0.0  ;;  %v3223_v54 = vsel %vm365_vm1, %v8464_v41, 0.0  ;;  %v8728_v31 = vadd.f32 %v2332_v24, %v10661_v26  ;;  %v2918_v4 = vadd.f32 %v8533_v48, %v2640_v13 }
 0x331   : > { %v3225_v37 = vsel %vm365_vm1, %v8477_v39, 0.0  ;;  %v2642_v50 = vadd.f32 %v8555_v60, %v2363_v36  ;;  %v3227_v13 = vsel %vm365_vm1, %v8488_v33, 0.0 }
 0x332   : > { %v8671_v61 = vpop.f32.mrf.mxu0 }
 0x335   : > { %v8651_v11 = vpop.f32.mrf.mxu2 }
 0x336   : > { %v8653_v15 = vpop.f32.mrf.mxu3 }
 0x337   : > { %10657 = vst [vmem:[#allocation36_spill] sm:$0xff] %v8653_v15  ;;  %v8669_v15 = vadd.f32 %v8520_v7, %v8247_v30  ;;  %v8691_v30 = vadd.f32 %v2314_v63, %v8305_v42  ;;  %v8707_v42 = vadd.f32 %v2323_v44, %v10660_v9  ;;  %v8710_v63 = vadd.f32 %v2326_v8, %v8345_v53  ;;  %v10662_v9 = vld [vmem:[#allocation35_spill] sm:$0xff] }
 0x338   : > { %v3220_v7 = vsel %vm365_vm1, %v8436_v46, 0.0  ;;  %v3293_v53 = vmul.f32 %v8477_v39, %v8477_v39  ;;  %v3322_v8 = vsel %vm365_vm1, %v3290_v25, 0.0  ;;  %v3325_v44 = vsel %vm365_vm1, %v3292_v38, 0.0 }
 0x339   : > { %v3222_v32 = vadd.f32 %v3221_v16, %v3220_v7  ;;  %v8739_v51 = vadd.f32 %v2335_v56, %v10662_v9  ;;  %v3324_v49 = vadd.f32 %v3323_v58, %v3322_v8  ;;  %v2643_v25 = vadd.f32 %v8569_v34, %v2364_v5 }
 0x33a   : > { %v8742_v16 = vpop.f32.mrf.mxu0  ;;  %v3327_v48 = vsel %vm365_vm1, %v3293_v53, 0.0  ;;  %v3295_v38 = vmul.f32 %v8499_v57, %v8499_v57  ;;  %v2919_v7 = vadd.f32 %v8545_v62, %v2641_v52  ;;  %v8751_v56 = vadd.f32 %v8523_v12, %v2918_v4 }
 0x33b   : > { %v3224_v24 = vadd.f32 %v3223_v54, %v3222_v32  ;;  %v3326_v60 = vadd.f32 %v3325_v44, %v3324_v49  ;;  %v2644_v58 = vadd.f32 %v8583_v6, %v2365_v1  ;;  %v3329_v34 = vsel %vm365_vm1, %v3294_v3, 0.0 }
 0x33c   : > { %v3229_v5 = vsel %vm365_vm1, %v8499_v57, 0.0  ;;  %v3296_v54 = vmul.f32 %v8510_v0, %v8510_v0  ;;  %v2920_v53 = vadd.f32 %v8557_v22, %v2642_v50  ;;  %v3297_v62 = vmul.f32 %v8525_v21, %v8525_v21 }
 0x33d   : > { %v8717_v27 = vpop.f32.mrf.mxu2  ;;  %v3226_v36 = vadd.f32 %v3225_v37, %v3224_v24  ;;  %v3328_v26 = vadd.f32 %v3327_v48, %v3326_v60  ;;  %v2921_v12 = vadd.f32 %v8571_v10, %v2643_v25  ;;  %v3331_v6 = vsel %vm365_vm1, %v3295_v38, 0.0  ;;  %v10663_v25 = vld [vmem:[#allocation46_spill] sm:$0xff]  ;;  %v10665_v60 = vld [vmem:[#allocation17_spill] sm:$0xff] }
 0x33e   : > { %v8719_v19 = vpop.f32.mrf.mxu3  ;;  %v3231_v32 = vsel %vm365_vm1, %v8510_v0, 0.0  ;;  %v8771_v4 = vadd.f32 %v8537_v28, %v2919_v7  ;;  %v2645_v22 = vadd.f32 %v8597_v20, %v2366_v47  ;;  %v3298_v3 = vmul.f32 %v8751_v56, %v8751_v56 }
 0x33f   : > { %v3228_v8 = vadd.f32 %v3227_v13, %v3226_v36  ;;  %v3330_v44 = vadd.f32 %v3329_v34, %v3328_v26  ;;  %v2922_v10 = vadd.f32 %v8585_v59, %v2644_v58  ;;  %v3333_v50 = vsel %vm365_vm1, %v3296_v54, 0.0  ;;  %v10666_v34 = vld [vmem:[#allocation47_spill] sm:$0xff]  ;;  %v10667_v26 = vld [vmem:[#allocation13_spill] sm:$0xff] }
 0x340   : > { %v3233_v9 = vsel %vm365_vm1, %v8525_v21, 0.0  ;;  %v8781_v49 = vadd.f32 %v8547_v23, %v2920_v53  ;;  %v2646_v28 = vadd.f32 %v8606_v35, %v8669_v15  ;;  %v3335_v47 = vsel %vm365_vm1, %v3297_v62, 0.0  ;;  %v10664_v23 = vld [vmem:[#allocation12_spill] sm:$0xff]  ;;  %v10668_v62 = vld [vmem:[#allocation21_spill] sm:$0xff] }
 0x341   : > { %v3230_v37 = vadd.f32 %v3229_v5, %v3228_v8  ;;  %v3332_v24 = vadd.f32 %v3331_v6, %v3330_v44  ;;  %v8787_v48 = vadd.f32 %v10663_v25, %v2921_v12  ;;  %v3235_v59 = vsel %vm365_vm1, %v8751_v56, 0.0 }
 0x342   : > { %v8789_v13 = vpop.f32.mrf.mxu0  ;;  %v3299_v38 = vmul.f32 %v8771_v4, %v8771_v4  ;;  %v2923_v7 = vadd.f32 %v10664_v23, %v2645_v22  ;;  %v2647_v15 = vadd.f32 %v10665_v60, %v8675_v18  ;;  %v3337_v58 = vsel %vm365_vm1, %v3298_v3, 0.0  ;;  %v10669_v22 = vld [vmem:[#allocation20_spill] sm:$0xff]  ;;  %v10673_v60 = vld [vmem:[#allocation15_spill] sm:$0xff] }
 0x343   : > { %v3232_v20 = vadd.f32 %v3231_v32, %v3230_v37  ;;  %v3334_v35 = vadd.f32 %v3333_v50, %v3332_v24  ;;  %v8800_v5 = vadd.f32 %v10666_v34, %v2922_v10  ;;  %v3237_v54 = vsel %vm365_vm1, %v8771_v4, 0.0 }
 0x344   : > { %v3300_v53 = vmul.f32 %v8781_v49, %v8781_v49  ;;  %v2924_v8 = vadd.f32 %v10667_v26, %v2646_v28  ;;  %v2648_v12 = vadd.f32 %v10668_v62, %v8679_v17  ;;  %v3301_v32 = vmul.f32 %v8787_v48, %v8787_v48  ;;  %v10671_v17 = vld [vmem:[#allocation19_spill] sm:$0xff] }
 0x345   : > { %v8763_v52 = vpop.f32.mrf.mxu2  ;;  %v3234_v36 = vadd.f32 %v3233_v9, %v3232_v20  ;;  %v3336_v6 = vadd.f32 %v3335_v47, %v3334_v35  ;;  %v2649_v44 = vadd.f32 %v10669_v22, %v8683_v55  ;;  %v3339_v10 = vsel %vm365_vm1, %v3299_v38, 0.0  ;;  %v10670_v9 = vld [vmem:[#allocation11_spill] sm:$0xff] }
 0x346   : > { %v8765_v1 = vpop.f32.mrf.mxu3  ;;  %v3239_v50 = vsel %vm365_vm1, %v8781_v49, 0.0  ;;  %v8821_v28 = vadd.f32 %v10670_v9, %v2923_v7  ;;  %v2925_v24 = vadd.f32 %v10671_v17, %v2647_v15  ;;  %v3302_v25 = vmul.f32 %v8800_v5, %v8800_v5  ;;  %v10672_v55 = vld [vmem:[#allocation27_spill] sm:$0xff]  ;;  %v10674_v7 = vld [vmem:[#allocation18_spill] sm:$0xff]  ;;  %v10678_v17 = vld [vmem:[#allocation16_spill] sm:$0xff] }
 0x347   : > { %v3236_v18 = vadd.f32 %v3235_v59, %v3234_v36  ;;  %v3338_v20 = vadd.f32 %v3337_v58, %v3336_v6  ;;  %v2650_v59 = vadd.f32 %v10672_v55, %v8688_v43  ;;  %v3341_v23 = vsel %vm365_vm1, %v3300_v53, 0.0  ;;  %v10676_v6 = vld [vmem:[#allocation14_spill] sm:$0xff] }
 0x348   : > { %v3241_v38 = vsel %vm365_vm1, %v8787_v48, 0.0  ;;  %v8832_v35 = vadd.f32 %v10673_v60, %v2924_v8  ;;  %v2926_v36 = vadd.f32 %v10674_v7, %v2648_v12  ;;  %v3343_v58 = vsel %vm365_vm1, %v3301_v32, 0.0 }
 0x349   : > { %v3238_v47 = vadd.f32 %v3237_v54, %v3236_v18  ;;  %v3340_v34 = vadd.f32 %v3339_v10, %v3338_v20  ;;  %v10675_v54 = vld [vmem:[#allocation25_spill] sm:$0xff]  ;;  %v3243_v43 = vsel %vm365_vm1, %v8800_v5, 0.0  ;;  %v3303_v53 = vmul.f32 %v8821_v28, %v8821_v28  ;;  %v10677_v10 = vld [vmem:[#allocation24_spill] sm:$0xff] }
 0x34a   : > { %v2927_v26 = vadd.f32 %v10675_v54, %v2649_v44  ;;  %v8837_v62 = vpop.f32.mrf.mxu0  ;;  %v8844_v18 = vadd.f32 %v10676_v6, %v2925_v24  ;;  %v2651_v8 = vadd.f32 %v8639_v2, %v8691_v30  ;;  %v3345_v32 = vsel %vm365_vm1, %v3302_v25, 0.0  ;;  %v10679_v24 = vld [vmem:[#allocation28_spill] sm:$0xff]  ;;  %v10680_v30 = vld [vmem:[#allocation23_spill] sm:$0xff]  ;;  %v10682_v54 = vld [vmem:[#allocation22_spill] sm:$0xff] }
 0x34b   : > { %v3240_v15 = vadd.f32 %v3239_v50, %v3238_v47  ;;  %v3342_v12 = vadd.f32 %v3341_v23, %v3340_v34  ;;  %v2928_v44 = vadd.f32 %v10677_v10, %v2650_v59  ;;  %v3245_v50 = vsel %vm365_vm1, %v8821_v28, 0.0  ;;  %v10681_v34 = vld [vmem:[#allocation26_spill] sm:$0xff] }
 0x34c   : > { %v3304_v9 = vmul.f32 %v8832_v35, %v8832_v35  ;;  %v8855_v20 = vadd.f32 %v10678_v17, %v2926_v36  ;;  %v2652_v47 = vadd.f32 %v10679_v24, %v8697_v29  ;;  %v8860_v23 = vadd.f32 %v10680_v30, %v2927_v26 }
 0x34d   : > { %v8813_v37 = vpop.f32.mrf.mxu2  ;;  %v3242_v22 = vadd.f32 %v3241_v38, %v3240_v15  ;;  %v3344_v55 = vadd.f32 %v3343_v58, %v3342_v12  ;;  %v2653_v25 = vadd.f32 %v8651_v11, %v8700_v45  ;;  %v3347_v60 = vsel %vm365_vm1, %v3303_v53, 0.0  ;;  %v2338_v45 = vpop.f32.mrf.mxu1  ;;  %v10683_v12 = vld [vmem:[#allocation33_spill] sm:$0xff] }
 0x34e   : > { %v8815_v3 = vpop.f32.mrf.mxu3  ;;  %v3247_v7 = vsel %vm365_vm1, %v8832_v35, 0.0  ;;  %v3305_v36 = vmul.f32 %v8844_v18, %v8844_v18  ;;  %v2929_v29 = vadd.f32 %v10681_v34, %v2651_v8  ;;  %v8871_v26 = vadd.f32 %v10682_v54, %v2928_v44  ;;  %v10684_v44 = vld [vmem:[#allocation36_spill] sm:$0xff] }
 0x34f   : > { %v3244_v2 = vadd.f32 %v3243_v43, %v3242_v22  ;;  %v3346_v15 = vadd.f32 %v3345_v32, %v3344_v55  ;;  %v2654_v11 = vadd.f32 %v8717_v27, %v8707_v42  ;;  %v3349_v43 = vsel %vm365_vm1, %v3304_v9, 0.0  ;;  %v10685_v9 = vld [vmem:[#allocation29_spill] sm:$0xff] }
 0x350   : > { %v3249_v53 = vsel %vm365_vm1, %v8844_v18, 0.0  ;;  %v3306_v6 = vmul.f32 %v8855_v20, %v8855_v20  ;;  %v2930_v22 = vadd.f32 %v10683_v12, %v2652_v47  ;;  %v3307_v10 = vmul.f32 %v8860_v23, %v8860_v23 }
 0x351   : > { %v3246_v58 = vadd.f32 %v3245_v50, %v3244_v2  ;;  %v3348_v8 = vadd.f32 %v3347_v60, %v3346_v15  ;;  %v2931_v50 = vadd.f32 %v10684_v44, %v2653_v25  ;;  %v3351_v42 = vsel %vm365_vm1, %v3305_v36, 0.0  ;;  %v10686_v36 = vld [vmem:[#allocation31_spill] sm:$0xff] }
 0x352   : > { %v3170_v17 = vpop.f32.mrf.mxu0  ;;  %v3251_v27 = vsel %vm365_vm1, %v8855_v20, 0.0  ;;  %v8888_v24 = vadd.f32 %v10685_v9, %v2929_v29  ;;  %v2655_v55 = vadd.f32 %v8763_v52, %v8710_v63  ;;  %v3308_v30 = vmul.f32 %v8871_v26, %v8871_v26 }
 0x353   : > { %v3248_v32 = vadd.f32 %v3247_v7, %v3246_v58  ;;  %v3350_v47 = vadd.f32 %v3349_v43, %v3348_v8  ;;  %v2932_v60 = vadd.f32 %v8719_v19, %v2654_v11  ;;  %v3353_v25 = vsel %vm365_vm1, %v3306_v6, 0.0  ;;  %v10687_v58 = vld [vmem:[#allocation30_spill] sm:$0xff] }
 0x354   : > { %v3253_v7 = vsel %vm365_vm1, %v8860_v23, 0.0  ;;  %v8899_v34 = vadd.f32 %v10686_v36, %v2930_v22  ;;  %v2656_v29 = vadd.f32 %v8813_v37, %v8713_v14  ;;  %v3355_v52 = vsel %vm365_vm1, %v3307_v10, 0.0 }
 0x355   : > { %v2611_v59 = vpop.f32.mrf.mxu2  ;;  %v3250_v2 = vadd.f32 %v3249_v53, %v3248_v32  ;;  %v3352_v15 = vadd.f32 %v3351_v42, %v3350_v47  ;;  %v8905_v54 = vadd.f32 %v10687_v58, %v2931_v50  ;;  %v3255_v11 = vsel %vm365_vm1, %v8871_v26, 0.0 }
 0x356   : > { %v2889_v38 = vpop.f32.mrf.mxu3  ;;  %v3309_v53 = vmul.f32 %v8888_v24, %v8888_v24  ;;  %v2933_v6 = vadd.f32 %v8765_v1, %v2655_v55  ;;  %v2657_v12 = vadd.f32 %v2611_v59, %v8728_v31  ;;  %v3357_v22 = vsel %vm365_vm1, %v3308_v30, 0.0 }
 0x357   : > { %v3252_v63 = vadd.f32 %v3251_v27, %v3250_v2  ;;  %v3354_v14 = vadd.f32 %v3353_v25, %v3352_v15  ;;  %v8915_v8 = vadd.f32 %v8671_v61, %v2932_v60  ;;  %v3257_v32 = vsel %vm365_vm1, %v8888_v24, 0.0  ;;  %v2341_v27 = vpop.f32.mrf.mxu1  ;;  %v10688_v2 = vld [vmem:[#allocation7_spill] sm:$0xff] }
 0x358   : > { %v3310_v10 = vmul.f32 %v8899_v34, %v8899_v34  ;;  %v2934_v44 = vadd.f32 %v8815_v3, %v2656_v29  ;;  %v3311_v31 = vmul.f32 %v8905_v54, %v8905_v54  ;;  %v3359_v61 = vsel %vm365_vm1, %v3309_v53, 0.0 }
 0x359   : > { %v3254_v37 = vadd.f32 %v3253_v7, %v3252_v63  ;;  %v3356_v1 = vadd.f32 %v3355_v52, %v3354_v14  ;;  %v3259_v9 = vsel %vm365_vm1, %v8899_v34, 0.0  ;;  %v8929_v55 = vadd.f32 %v8742_v16, %v2933_v6 }
 0x35a   : > { %v3173_v59 = vpop.f32.mrf.mxu0  ;;  %v2935_v47 = vadd.f32 %v2889_v38, %v2657_v12  ;;  %v2380_v3 = vadd.f32 %v2338_v45, %v10688_v2  ;;  %v3312_v60 = vmul.f32 %v8915_v8, %v8915_v8  ;;  %v3361_v25 = vsel %vm365_vm1, %v3310_v10, 0.0 }
 0x35b   : > { %v3256_v42 = vadd.f32 %v3255_v11, %v3254_v37  ;;  %v3358_v30 = vadd.f32 %v3357_v22, %v3356_v1  ;;  %v3261_v7 = vsel %vm365_vm1, %v8905_v54, 0.0  ;;  %v8938_v36 = vadd.f32 %v8789_v13, %v2934_v44 }
 0x35c   : > { %v3363_v38 = vsel %vm365_vm1, %v3311_v31, 0.0  ;;  %v3263_v52 = vsel %vm365_vm1, %v8915_v8, 0.0  ;;  %v3313_v58 = vmul.f32 %v8929_v55, %v8929_v55  ;;  %v3265_v6 = vsel %vm365_vm1, %v8929_v55, 0.0 }
 0x35d   : > { %v2614_v43 = vpop.f32.mrf.mxu2  ;;  %v3360_v15 = vadd.f32 %v3359_v61, %v3358_v30  ;;  %v3314_v12 = vmul.f32 %v8938_v36, %v8938_v36  ;;  %v3267_v44 = vsel %vm365_vm1, %v8938_v36, 0.0  ;;  %v10689_v61 = vld [vmem:[#allocation10_spill] sm:$0xff] }
 0x35e   : > { %v2892_v19 = vpop.f32.mrf.mxu3  ;;  %v2658_v50 = vadd.f32 %v2614_v43, %v8739_v51  ;;  %v3258_v51 = vadd.f32 %v3257_v32, %v3256_v42  ;;  %v8946_v43 = vadd.f32 %v8837_v62, %v2935_v47  ;;  %v3367_v62 = vsel %vm365_vm1, %v3313_v58, 0.0 }
 0x35f   : > { %v3362_v53 = vadd.f32 %v3361_v25, %v3360_v15  ;;  %v3369_v47 = vsel %vm365_vm1, %v3314_v12, 0.0  ;;  %v10690_v12 = vld [vmem:[#allocation39_spill] sm:$0xff] }
 0x360   : > { %v2936_v29 = vadd.f32 %v2892_v19, %v2658_v50  ;;  %v3260_v16 = vadd.f32 %v3259_v9, %v3258_v51  ;;  %v3365_v19 = vsel %vm365_vm1, %v3312_v60, 0.0  ;;  %v3315_v50 = vmul.f32 %v8946_v43, %v8946_v43 }
 0x361   : > { %v3364_v22 = vadd.f32 %v3363_v38, %v3362_v53  ;;  %v2381_v9 = vadd.f32 %v2341_v27, %v10689_v61  ;;  %v3269_v2 = vsel %vm365_vm1, %v8946_v43, 0.0 }
 0x362   : > { %v3262_v13 = vadd.f32 %v3261_v7, %v3260_v16  ;;  %v8953_v14 = vadd.f32 %v3170_v17, %v2936_v29  ;;  %v3176_v10 = vpop.f32.mrf.mxu0  ;;  %v2344_v17 = vpop.f32.mrf.mxu1 }
 0x363   : > { %v3366_v42 = vadd.f32 %v3365_v19, %v3364_v22 }
 0x364   : > { %v3264_v32 = vadd.f32 %v3263_v52, %v3262_v13  ;;  %v3271_v7 = vsel %vm365_vm1, %v8953_v14, 0.0 }
 0x365   : > { %v2617_v63 = vpop.f32.mrf.mxu2  ;;  %v3368_v30 = vadd.f32 %v3367_v62, %v3366_v42 }
 0x366   : > { %v2895_v45 = vpop.f32.mrf.mxu3  ;;  %v2659_v11 = vadd.f32 %v2617_v63, %v2380_v3  ;;  %v3266_v31 = vadd.f32 %v3265_v6, %v3264_v32  ;;  %v3316_v3 = vmul.f32 %v8953_v14, %v8953_v14 }
 0x367   : > { %v3370_v15 = vadd.f32 %v3369_v47, %v3368_v30 }
 0x368   : > { %v2937_v37 = vadd.f32 %v2895_v45, %v2659_v11  ;;  %v3268_v51 = vadd.f32 %v3267_v44, %v3266_v31  ;;  %v3373_v38 = vsel %vm365_vm1, %v3316_v3, 0.0  ;;  %v10691_v3 = vld [vmem:[#allocation40_spill] sm:$0xff] }
 0x36a   : > { %v8960_v1 = vadd.f32 %v3173_v59, %v2937_v37  ;;  %v3371_v59 = vsel %vm365_vm1, %v3315_v50, 0.0  ;;  %v3270_v16 = vadd.f32 %v3269_v2, %v3268_v51  ;;  %v3179_v13 = vpop.f32.mrf.mxu0  ;;  %v2382_v37 = vadd.f32 %v2344_v17, %v10690_v12 }
 0x36b   : > { %v3372_v52 = vadd.f32 %v3371_v59, %v3370_v15 }
 0x36c   : > { %v3317_v27 = vmul.f32 %v8960_v1, %v8960_v1  ;;  %v3273_v63 = vsel %vm365_vm1, %v8960_v1, 0.0  ;;  %v3272_v58 = vadd.f32 %v3271_v7, %v3270_v16 }
 0x36d   : > { %v2620_v60 = vpop.f32.mrf.mxu2  ;;  %v3374_v19 = vadd.f32 %v3373_v38, %v3372_v52 }
 0x36e   : > { %v2898_v25 = vpop.f32.mrf.mxu3  ;;  %v2660_v29 = vadd.f32 %v2620_v60, %v2381_v9  ;;  %v3375_v11 = vsel %vm365_vm1, %v3317_v27, 0.0  ;;  %v3274_v6 = vadd.f32 %v3273_v63, %v3272_v58 }
 0x36f   : > { %v3376_v62 = vadd.f32 %v3375_v11, %v3374_v19 }
 0x370   : > { %v2938_v45 = vadd.f32 %v2898_v25, %v2660_v29 }
 0x372   : > { %v8977_v53 = vadd.f32 %v3176_v10, %v2938_v45  ;;  %v2347_v10 = vpop.f32.mrf.mxu1  ;;  %v3182_v60 = vpop.f32.mrf.mxu0  ;;  %v10692_v45 = vld [vmem:[#allocation9_spill] sm:$0xff] }
 0x373   : > { %v2383_v17 = vadd.f32 %v2347_v10, %v10691_v3 }
 0x374   : > { %v3275_v22 = vsel %vm365_vm1, %v8977_v53, 0.0  ;;  %v3318_v32 = vmul.f32 %v8977_v53, %v8977_v53 }
 0x375   : > { %v3276_v44 = vadd.f32 %v3275_v22, %v3274_v6  ;;  %v2623_v50 = vpop.f32.mrf.mxu2 }
 0x376   : > { %v2901_v42 = vpop.f32.mrf.mxu3  ;;  %v3377_v31 = vsel %vm365_vm1, %v3318_v32, 0.0  ;;  %v2661_v61 = vadd.f32 %v2623_v50, %v2382_v37 }
 0x377   : > { %v3378_v9 = vadd.f32 %v3377_v31, %v3376_v62 }
 0x378   : > { %v2939_v47 = vadd.f32 %v2901_v42, %v2661_v61 }
 0x37a   : > { %v8985_v2 = vadd.f32 %v3179_v13, %v2939_v47  ;;  %v2350_v38 = vpop.f32.mrf.mxu1  ;;  %v3185_v32 = vpop.f32.mrf.mxu0 }
 0x37b   : > { %v2384_v52 = vadd.f32 %v2350_v38, %v10692_v45 }
 0x37c   : > { %v3277_v30 = vsel %vm365_vm1, %v8985_v2, 0.0  ;;  %v3319_v51 = vmul.f32 %v8985_v2, %v8985_v2 }
 0x37d   : > { %v3278_v25 = vadd.f32 %v3277_v30, %v3276_v44  ;;  %v2626_v59 = vpop.f32.mrf.mxu2 }
 0x37e   : > { %v2904_v7 = vpop.f32.mrf.mxu3  ;;  %v3379_v27 = vsel %vm365_vm1, %v3319_v51, 0.0  ;;  %v2662_v29 = vadd.f32 %v2626_v59, %v2383_v17 }
 0x37f   : > { %v3380_v15 = vadd.f32 %v3379_v27, %v3378_v9 }
 0x380   : > { %v2940_v16 = vadd.f32 %v2904_v7, %v2662_v29  ;;  %v3658_v7 = vld [vmem:[%s10452_s8] sm:$0xf] }
 0x381   : > { %6530 = vmatpush.msk.msrb.mxu2 %vm944_vm0, %v3658_v7 }
 0x382   : > { %v8993_v63 = vadd.f32 %v3182_v60, %v2940_v16  ;;  %v10693_v16 = vld [vmem:[#allocation3_spill] sm:$0xff] }
 0x384   : > { %v3279_v58 = vsel %vm365_vm1, %v8993_v63, 0.0  ;;  %v3320_v11 = vmul.f32 %v8993_v63, %v8993_v63 }
 0x385   : > { %v3280_v13 = vadd.f32 %v3279_v58, %v3278_v25  ;;  %v2629_v19 = vpop.f32.mrf.mxu2 }
 0x386   : > { %v2907_v6 = vpop.f32.mrf.mxu3  ;;  %v3381_v12 = vsel %vm365_vm1, %v3320_v11, 0.0  ;;  %v2663_v37 = vadd.f32 %v2629_v19, %v2384_v52 }
 0x387   : > { %v3382_v22 = vadd.f32 %v3381_v12, %v3380_v15  ;;  %v6563_v15 = vld [vmem:[%s10452_s8 + $0x8] sm:$0xf] }
 0x388   : > { %v2941_v62 = vadd.f32 %v2907_v6, %v2663_v37  ;;  %6564 = vmatpush.msk.msrb.mxu3 %vm944_vm0, %v6563_v15 }
 0x38a   : > { %v9001_v44 = vadd.f32 %v3185_v32, %v2941_v62 }
 0x38c   : > { %v3281_v50 = vsel %vm365_vm1, %v9001_v44, 0.0  ;;  %v3321_v42 = vmul.f32 %v9001_v44, %v9001_v44 }
 0x38d   : > { %v3282_v31 = vadd.f32 %v3281_v50, %v3280_v13  ;;  %v3626_v13 = vld [vmem:[#allocation2] sm:$0xff] }
 0x38e   : > { %v3383_v61 = vsel %vm365_vm1, %v3321_v42, 0.0  ;;  %6531 = vmatmul.msk.f32.vlgmr.msrb.gmra.mxu2 %vm365_vm1, %v3626_v13 }
 0x38f   : > { %v3283_v10 = vrot.slane %v3282_v31, 4  ;;  %v3384_v9 = vadd.f32 %v3383_v61, %v3382_v22  ;;  %v4117_v22 = vld [vmem:[#allocation2 + $0x2] sm:$0xff] }
 0x390   : > { %6565 = vmatmul.msk.f32.vlgmr.msrb.gmra.mxu3 %vm365_vm1, %v4117_v22 }
 0x391   : > { %v3284_v47 = vadd.f32 %v3283_v10, %v3282_v31  ;;  %v3385_v3 = vrot.slane %v3384_v9, 4 }
 0x393   : > { %v3285_v17 = vrot.slane %v3284_v47, 2  ;;  %v3386_v30 = vadd.f32 %v3385_v3, %v3384_v9 }
 0x395   : > { %v3286_v51 = vadd.f32 %v3285_v17, %v3284_v47  ;;  %v3387_v60 = vrot.slane %v3386_v30, 2 }
 0x397   : > { %v3287_v25 = vrot.slane %v3286_v51, 1  ;;  %v3388_v59 = vadd.f32 %v3387_v60, %v3386_v30  ;;  %v3405_v30 = vld [vmem:[%s10449_s5] sm:$0x1] }
 0x399   : > { %v3288_v27 = vadd.f32 %v3287_v25, %v3286_v51  ;;  %v3389_v29 = vrot.slane %v3388_v59, 1 }
 0x39b   : > { %v9016_v38 = vmul.f32 %v3288_v27, %v10693_v16  ;;  %v3390_v45 = vadd.f32 %v3389_v29, %v3388_v59 }
 0x39d   : > { %v3391_v52 = vmul.f32 %v3390_v45, %v10693_v16  ;;  %v3392_v58 = vmul.f32 %v9016_v38, %v9016_v38  ;;  %v3438_v11 = vsub.f32 %v9001_v44, %v9016_v38  ;;  %v3434_v12 = vsub.f32 %v8960_v1, %v9016_v38  ;;  %v3627_v1 = vld [vmem:[#allocation2 + $0x8] sm:$0xff] }
 0x39e   : > { %v3435_v37 = vsub.f32 %v8977_v53, %v9016_v38  ;;  %v3436_v32 = vsub.f32 %v8985_v2, %v9016_v38  ;;  %v3437_v62 = vsub.f32 %v8993_v63, %v9016_v38  ;;  %v3407_v10 = vsub.f32 %v8436_v46, %v9016_v38  ;;  %6532 = vmatmul.msk.f32.gmra.mxu2 %vm365_vm1, %v3627_v1 }
 0x39f   : > { %v3393_v19 = vsub.f32 %v3391_v52, %v3392_v58  ;;  %v3408_v9 = vsub.f32 %v8453_v40, %v9016_v38  ;;  %v3409_v47 = vsub.f32 %v8464_v41, %v9016_v38  ;;  %v3410_v3 = vsub.f32 %v8477_v39, %v9016_v38 }
 0x3a0   : > { %v3411_v51 = vsub.f32 %v8488_v33, %v9016_v38  ;;  %v3412_v46 = vsub.f32 %v8499_v57, %v9016_v38  ;;  %v3413_v40 = vsub.f32 %v8510_v0, %v9016_v38  ;;  %v3414_v41 = vsub.f32 %v8525_v21, %v9016_v38 }
 0x3a1   : > { %v3394_v6 = vadd.f32 1e-05, %v3393_v19  ;;  %v3415_v39 = vsub.f32 %v8751_v56, %v9016_v38  ;;  %v3416_v60 = vsub.f32 %v8771_v4, %v9016_v38  ;;  %v3417_v33 = vsub.f32 %v8781_v49, %v9016_v38 }
 0x3a2   : > { %v3418_v57 = vsub.f32 %v8787_v48, %v9016_v38  ;;  %v3419_v59 = vsub.f32 %v8800_v5, %v9016_v38  ;;  %v3420_v21 = vsub.f32 %v8821_v28, %v9016_v38  ;;  %v3421_v56 = vsub.f32 %v8832_v35, %v9016_v38  ;;  %v9080_v28 = vld [vmem:[%s10450_s6] ss:$0 sm:$0xff] }
 0x3a3   : > { %6823 = vrsqrt.f32 %v3394_v6  ;;  %vm3401_vm8 = vweird.f32 %v3394_v6  ;;  %v3422_v4 = vsub.f32 %v8844_v18, %v9016_v38  ;;  %v3423_v7 = vsub.f32 %v8855_v20, %v9016_v38 }
 0x3a4   : > { %v3424_v49 = vsub.f32 %v8860_v23, %v9016_v38  ;;  %v3425_v48 = vsub.f32 %v8871_v26, %v9016_v38  ;;  %v3426_v5 = vsub.f32 %v8888_v24, %v9016_v38  ;;  %v3427_v18 = vsub.f32 %v8899_v34, %v9016_v38 }
 0x3a5   : > { %v3428_v20 = vsub.f32 %v8905_v54, %v9016_v38  ;;  %v3429_v23 = vsub.f32 %v8915_v8, %v9016_v38  ;;  %v3430_v26 = vsub.f32 %v8929_v55, %v9016_v38  ;;  %v3431_v24 = vsub.f32 %v8938_v36, %v9016_v38 }
 0x3a6   : > { %v3432_v27 = vsub.f32 %v8946_v43, %v9016_v38  ;;  %v3433_v29 = vsub.f32 %v8953_v14, %v9016_v38 }
 0x3a9   : > { %v6824_v44 = vpop.eup %6823 }
 0x3aa   : > { %v3396_v50 = vmul.f32 %v6824_v44, %v3394_v6  ;;  %vm3402_vm7 = vweird.f32 %v6824_v44 }
 0x3ab   : > { %vm3403_vm9 = vmor %vm3401_vm8, %vm3402_vm7 }
 0x3ac   : > { %v3397_v42 = vmul.f32 %v6824_v44, %v3396_v50 }
 0x3ae   : > { %v3398_v31 = vmul.f32 0.5, %v3397_v42 }
 0x3b0   : > { %v3399_v61 = vsub.f32 1.5, %v3398_v31 }
 0x3b2   : > { %v3400_v17 = vmul.f32 %v6824_v44, %v3399_v61 }
 0x3b4   : > { %v3404_v25 = vsel %vm3403_vm9, %v6824_v44, %v3400_v17 }
 0x3b5   : > { %v3439_v0 = vmul.f32 %v3405_v30, %v3404_v25 }
 0x3b7   : > { %v3440_v35 = vperm.slane %v3439_v0, 0 }
 0x3b9   : > { %v3472_v15 = vmul.f32 %v3440_v35, %v3438_v11  ;;  %v3441_v34 = vmul.f32 %v3440_v35, %v3407_v10  ;;  %v3442_v16 = vmul.f32 %v3440_v35, %v3408_v9  ;;  %v3443_v45 = vmul.f32 %v3440_v35, %v3409_v47 }
 0x3ba   : > { %v3444_v54 = vmul.f32 %v3440_v35, %v3410_v3  ;;  %v3445_v52 = vmul.f32 %v3440_v35, %v3411_v51  ;;  %v3446_v58 = vmul.f32 %v3440_v35, %v3412_v46  ;;  %v3447_v8 = vmul.f32 %v3440_v35, %v3413_v40 }
 0x3bb   : > { %v3507_v13 = vadd.f32 %v9080_v28, %v3472_v15  ;;  %v3448_v55 = vmul.f32 %v3440_v35, %v3414_v41  ;;  %v3449_v19 = vmul.f32 %v3440_v35, %v3415_v39  ;;  %v3450_v6 = vmul.f32 %v3440_v35, %v3416_v60  ;;  %v3659_v39 = vld [vmem:[#allocation2 + $0x1] sm:$0xff] }
 0x3bc   : > { %v3451_v36 = vmul.f32 %v3440_v35, %v3417_v33  ;;  %v3452_v22 = vmul.f32 %v3440_v35, %v3418_v57  ;;  %v3453_v44 = vmul.f32 %v3440_v35, %v3419_v59  ;;  %v3454_v43 = vmul.f32 %v3440_v35, %v3420_v21  ;;  %6498 = vmatmul.msk.f32.vlgmr.msra.gmra.mxu1 %vm365_vm1, %v3659_v39  ;;  %v6597_v21 = vld [vmem:[%s10452_s8 + $0xc] sm:$0xf] }
 0x3bd   : > { %v3539_v50 = vmax.f32 %v3507_v13, 0.0  ;;  %v3455_v42 = vmul.f32 %v3440_v35, %v3421_v56  ;;  %v3456_v14 = vmul.f32 %v3440_v35, %v3422_v4  ;;  %v9097_v11 = vmul.f32 %v3440_v35, %v3423_v7  ;;  %6598 = vmatpush.msk.msrb.mxu0 %vm944_vm0, %v6597_v21  ;;  %v6631_v7 = vld [vmem:[%s10452_s8 + $0x10] sm:$0xf] }
 0x3be   : > { %v9099_v31 = vmul.f32 %v3440_v35, %v3424_v49  ;;  %v9101_v61 = vmul.f32 %v3440_v35, %v3425_v48  ;;  %v9103_v10 = vmul.f32 %v3440_v35, %v3426_v5  ;;  %v9105_v9 = vmul.f32 %v3440_v35, %v3427_v18  ;;  %6632 = vmatpush.msk.msrb.mxu1 %vm944_vm0, %v6631_v7 }
 0x3bf   : > { %3625 = vst.msk [vmem:[#allocation2 + $0x189] sm:$0xff] %vm365_vm1, %v3539_v50  ;;  %v9108_v47 = vmul.f32 %v3440_v35, %v3428_v20  ;;  %v9110_v3 = vmul.f32 %v3440_v35, %v3429_v23  ;;  %v9112_v17 = vmul.f32 %v3440_v35, %v3430_v26  ;;  %v9114_v30 = vmul.f32 %v3440_v35, %v3431_v24 }
 0x3c0   : > { %v9116_v51 = vmul.f32 %v3440_v35, %v3432_v27  ;;  %v9118_v46 = vmul.f32 %v3440_v35, %v3433_v29  ;;  %v9123_v40 = vmul.f32 %v3440_v35, %v3434_v12  ;;  %v9128_v41 = vmul.f32 %v3440_v35, %v3435_v37  ;;  %v4118_v12 = vld [vmem:[#allocation2 + $0xa] sm:$0xff] }
 0x3c1   : > { %v9133_v60 = vmul.f32 %v3440_v35, %v3436_v32  ;;  %v9138_v25 = vmul.f32 %v3440_v35, %v3437_v62  ;;  %v3476_v53 = vadd.f32 %v9080_v28, %v3441_v34  ;;  %v3477_v37 = vadd.f32 %v9080_v28, %v3442_v16  ;;  %6566 = vmatmul.msk.f32.gmra.mxu3 %vm365_vm1, %v4118_v12  ;;  %v3660_v32 = vld [vmem:[#allocation2 + $0x9] sm:$0xff] }
 0x3c2   : > { %v3478_v33 = vadd.f32 %v9080_v28, %v3443_v45  ;;  %v3479_v2 = vadd.f32 %v9080_v28, %v3444_v54  ;;  %v3480_v63 = vadd.f32 %v9080_v28, %v3445_v52  ;;  %v3481_v38 = vadd.f32 %v9080_v28, %v3446_v58 }
 0x3c3   : > { %v3482_v62 = vadd.f32 %v9080_v28, %v3447_v8  ;;  %v3508_v57 = vmax.f32 %v3476_v53, 0.0  ;;  %v3509_v59 = vmax.f32 %v3477_v37, 0.0  ;;  %v3483_v56 = vadd.f32 %v9080_v28, %v3448_v55 }
 0x3c4   : > { %v3510_v0 = vmax.f32 %v3478_v33, 0.0  ;;  %6499 = vmatmul.msk.f32.gmra.mxu1 %vm365_vm1, %v3660_v32  ;;  %v3511_v4 = vmax.f32 %v3479_v2, 0.0  ;;  %v3484_v49 = vadd.f32 %v9080_v28, %v3449_v19  ;;  %v3512_v48 = vmax.f32 %v3480_v63, 0.0 }
 0x3c5   : > { %3594 = vst.msk [vmem:[#allocation2 + $0x19] sm:$0xff] %vm365_vm1, %v3508_v57  ;;  %v3485_v5 = vadd.f32 %v9080_v28, %v3450_v6  ;;  %v3513_v35 = vmax.f32 %v3481_v38, 0.0  ;;  %v3486_v18 = vadd.f32 %v9080_v28, %v3451_v36  ;;  %v3514_v20 = vmax.f32 %v3482_v62, 0.0 }
 0x3c6   : > { %3595 = vst.msk [vmem:[#allocation2 + $0x21] sm:$0xff] %vm365_vm1, %v3509_v59  ;;  %v3487_v23 = vadd.f32 %v9080_v28, %v3452_v22  ;;  %v3515_v26 = vmax.f32 %v3483_v56, 0.0  ;;  %v3488_v24 = vadd.f32 %v9080_v28, %v3453_v44  ;;  %v3516_v27 = vmax.f32 %v3484_v49, 0.0 }
 0x3c7   : > { %3596 = vst.msk [vmem:[#allocation2 + $0x31] sm:$0xff] %vm365_vm1, %v3510_v0  ;;  %v3489_v29 = vadd.f32 %v9080_v28, %v3454_v43  ;;  %v3517_v15 = vmax.f32 %v3485_v5, 0.0  ;;  %v3490_v34 = vadd.f32 %v9080_v28, %v3455_v42  ;;  %v3518_v16 = vmax.f32 %v3486_v18, 0.0 }
 0x3c8   : > { %3597 = vst.msk [vmem:[#allocation2 + $0x39] sm:$0xff] %vm365_vm1, %v3511_v4  ;;  %v3491_v45 = vadd.f32 %v9080_v28, %v3456_v14  ;;  %v3519_v54 = vmax.f32 %v3487_v23, 0.0  ;;  %v3492_v8 = vadd.f32 %v9080_v28, %v9097_v11  ;;  %v3520_v13 = vmax.f32 %v3488_v24, 0.0 }
 0x3c9   : > { %3598 = vst.msk [vmem:[#allocation2 + $0x49] sm:$0xff] %vm365_vm1, %v3512_v48  ;;  %v3493_v19 = vadd.f32 %v9080_v28, %v9099_v31  ;;  %v3521_v6 = vmax.f32 %v3489_v29, 0.0  ;;  %v3494_v36 = vadd.f32 %v9080_v28, %v9101_v61  ;;  %v3522_v22 = vmax.f32 %v3490_v34, 0.0 }
 0x3ca   : > { %3599 = vst.msk [vmem:[#allocation2 + $0x51] sm:$0xff] %vm365_vm1, %v3513_v35  ;;  %v3495_v44 = vadd.f32 %v9080_v28, %v9103_v10  ;;  %v3523_v43 = vmax.f32 %v3491_v45, 0.0  ;;  %v3496_v50 = vadd.f32 %v9080_v28, %v9105_v9  ;;  %v3524_v42 = vmax.f32 %v3492_v8, 0.0 }
 0x3cb   : > { %3600 = vst.msk [vmem:[#allocation2 + $0x61] sm:$0xff] %vm365_vm1, %v3514_v20  ;;  %v3497_v14 = vadd.f32 %v9080_v28, %v9108_v47  ;;  %v3525_v11 = vmax.f32 %v3493_v19, 0.0  ;;  %v3498_v31 = vadd.f32 %v9080_v28, %v9110_v3  ;;  %v3526_v61 = vmax.f32 %v3494_v36, 0.0 }
 0x3cc   : > { %3601 = vst.msk [vmem:[#allocation2 + $0x69] sm:$0xff] %vm365_vm1, %v3515_v26  ;;  %v9176_v52 = vld [vmem:[#allocation2 + $0x19] sm:$0xff]  ;;  %v3499_v10 = vadd.f32 %v9080_v28, %v9112_v17  ;;  %v3527_v39 = vmax.f32 %v3495_v44, 0.0  ;;  %v3500_v47 = vadd.f32 %v9080_v28, %v9114_v30  ;;  %v3528_v12 = vmax.f32 %v3496_v50, 0.0 }
 0x3cd   : > { %v3628_v58 = vld [vmem:[#allocation2 + $0x18] sm:$0xff]  ;;  %3602 = vst.msk [vmem:[#allocation2 + $0x79] sm:$0xff] %vm365_vm1, %v3516_v27  ;;  %6500 = vmatmul.msk.f32.gmra.mxu1 %vm365_vm1, %v9176_v52  ;;  %v9210_v9 = vld [vmem:[#allocation2 + $0x21] sm:$0xff]  ;;  %v3501_v17 = vadd.f32 %v9080_v28, %v9116_v51  ;;  %v3529_v53 = vmax.f32 %v3497_v14, 0.0  ;;  %v3502_v30 = vadd.f32 %v9080_v28, %v9118_v46  ;;  %v3530_v37 = vmax.f32 %v3498_v31, 0.0 }
 0x3ce   : > { %6533 = vmatmul.msk.f32.gmra.mxu2 %vm365_vm1, %v3628_v58  ;;  %v9184_v55 = vld [vmem:[#allocation2 + $0x1a] sm:$0xff]  ;;  %3603 = vst.msk [vmem:[#allocation2 + $0x81] sm:$0xff] %vm365_vm1, %v3517_v15  ;;  %6599 = vmatmul.msk.f32.vlgmr.msrb.gmra.mxu0 %vm365_vm1, %v3628_v58  ;;  %v9218_v3 = vld [vmem:[#allocation2 + $0x22] sm:$0xff]  ;;  %v3503_v33 = vadd.f32 %v9080_v28, %v9123_v40  ;;  %v3531_v2 = vmax.f32 %v3499_v10, 0.0  ;;  %v3504_v51 = vadd.f32 %v9080_v28, %v9128_v41  ;;  %v3532_v63 = vmax.f32 %v3500_v47, 0.0  ;;  %v9242_v57 = vld [vmem:[#allocation2 + $0x31] sm:$0xff] }
 0x3cf   : > { %6567 = vmatmul.msk.f32.gmra.mxu3 %vm365_vm1, %v9184_v55  ;;  %3604 = vst.msk [vmem:[#allocation2 + $0x91] sm:$0xff] %vm365_vm1, %v3518_v16  ;;  %v3629_v1 = vld [vmem:[#allocation2 + $0x20] sm:$0xff]  ;;  %v3505_v38 = vadd.f32 %v9080_v28, %v9133_v60  ;;  %v3533_v32 = vmax.f32 %v3501_v17, 0.0  ;;  %v3506_v46 = vadd.f32 %v9080_v28, %v9138_v25  ;;  %v3534_v62 = vmax.f32 %v3502_v30, 0.0  ;;  %v9244_v41 = vld [vmem:[#allocation2 + $0x30] sm:$0xff]  ;;  %v9265_v21 = vld [vmem:[#allocation2 + $0x38] sm:$0xff] }
 0x3d0   : > { %3605 = vst.msk [vmem:[#allocation2 + $0x99] sm:$0xff] %vm365_vm1, %v3519_v54  ;;  %v3535_v40 = vmax.f32 %v3503_v33, 0.0  ;;  %v3536_v59 = vmax.f32 %v3504_v51, 0.0  ;;  %v9251_v28 = vld [vmem:[#allocation2 + $0x32] sm:$0xff]  ;;  %v9271_v56 = vld [vmem:[#allocation2 + $0x3a] sm:$0xff]  ;;  %v9277_v4 = vld [vmem:[#allocation2 + $0x49] sm:$0xff] }
 0x3d1   : > { %3606 = vst.msk [vmem:[#allocation2 + $0xa9] sm:$0xff] %vm365_vm1, %v3520_v13  ;;  %v3537_v60 = vmax.f32 %v3505_v38, 0.0  ;;  %v3538_v25 = vmax.f32 %v3506_v46, 0.0  ;;  %v9263_v0 = vld [vmem:[#allocation2 + $0x39] sm:$0xff]  ;;  %v9279_v7 = vld [vmem:[#allocation2 + $0x48] sm:$0xff]  ;;  %v9291_v48 = vld [vmem:[#allocation2 + $0x51] sm:$0xff] }
 0x3d2   : > { %3607 = vst.msk [vmem:[#allocation2 + $0xb1] sm:$0xff] %vm365_vm1, %v3521_v6  ;;  %v9285_v49 = vld [vmem:[#allocation2 + $0x4a] sm:$0xff]  ;;  %v9299_v35 = vld [vmem:[#allocation2 + $0x52] sm:$0xff]  ;;  %v9305_v18 = vld [vmem:[#allocation2 + $0x61] sm:$0xff] }
 0x3d3   : > { %3608 = vst.msk [vmem:[#allocation2 + $0xc1] sm:$0xff] %vm365_vm1, %v3522_v22  ;;  %v9293_v5 = vld [vmem:[#allocation2 + $0x50] sm:$0xff]  ;;  %v9307_v20 = vld [vmem:[#allocation2 + $0x60] sm:$0xff]  ;;  %v9321_v24 = vld [vmem:[#allocation2 + $0x68] sm:$0xff] }
 0x3d4   : > { %3609 = vst.msk [vmem:[#allocation2 + $0xc9] sm:$0xff] %vm365_vm1, %v3523_v43  ;;  %v9313_v23 = vld [vmem:[#allocation2 + $0x62] sm:$0xff]  ;;  %v9327_v27 = vld [vmem:[#allocation2 + $0x6a] sm:$0xff]  ;;  %v9333_v29 = vld [vmem:[#allocation2 + $0x79] sm:$0xff] }
 0x3d5   : > { %3610 = vst.msk [vmem:[#allocation2 + $0xd9] sm:$0xff] %vm365_vm1, %v3524_v42  ;;  %6501 = vmatmul.msk.f32.gmra.mxu1 %vm365_vm1, %v9210_v9  ;;  %v9319_v26 = vld [vmem:[#allocation2 + $0x69] sm:$0xff]  ;;  %v9335_v15 = vld [vmem:[#allocation2 + $0x78] sm:$0xff]  ;;  %v9347_v16 = vld [vmem:[#allocation2 + $0x81] sm:$0xff] }
 0x3d6   : > { %6534 = vmatmul.msk.f32.gmra.mxu2 %vm365_vm1, %v3629_v1  ;;  %3611 = vst.msk [vmem:[#allocation2 + $0xe1] sm:$0xff] %vm365_vm1, %v3525_v11  ;;  %6600 = vmatmul.msk.f32.gmra.mxu0 %vm365_vm1, %v3629_v1  ;;  %v9341_v34 = vld [vmem:[#allocation2 + $0x7a] sm:$0xff]  ;;  %v9355_v54 = vld [vmem:[#allocation2 + $0x82] sm:$0xff]  ;;  %v9361_v58 = vld [vmem:[#allocation2 + $0x91] sm:$0xff] }
 0x3d7   : > { %6568 = vmatmul.msk.f32.gmra.mxu3 %vm365_vm1, %v9218_v3  ;;  %3612 = vst.msk [vmem:[#allocation2 + $0xf1] sm:$0xff] %vm365_vm1, %v3526_v61  ;;  %v9349_v45 = vld [vmem:[#allocation2 + $0x80] sm:$0xff]  ;;  %v9363_v8 = vld [vmem:[#allocation2 + $0x90] sm:$0xff]  ;;  %v9377_v6 = vld [vmem:[#allocation2 + $0x98] sm:$0xff] }
 0x3d8   : > { %3613 = vst.msk [vmem:[#allocation2 + $0xf9] sm:$0xff] %vm365_vm1, %v3527_v39  ;;  %v9369_v13 = vld [vmem:[#allocation2 + $0x92] sm:$0xff]  ;;  %v9383_v36 = vld [vmem:[#allocation2 + $0x9a] sm:$0xff]  ;;  %v9389_v22 = vld [vmem:[#allocation2 + $0xa9] sm:$0xff] }
 0x3d9   : > { %3614 = vst.msk [vmem:[#allocation2 + $0x109] sm:$0xff] %vm365_vm1, %v3528_v12  ;;  %v9375_v19 = vld [vmem:[#allocation2 + $0x99] sm:$0xff]  ;;  %v9391_v44 = vld [vmem:[#allocation2 + $0xa8] sm:$0xff]  ;;  %v9403_v50 = vld [vmem:[#allocation2 + $0xb1] sm:$0xff] }
 0x3da   : > { %3615 = vst.msk [vmem:[#allocation2 + $0x111] sm:$0xff] %vm365_vm1, %v3529_v53  ;;  %v9397_v43 = vld [vmem:[#allocation2 + $0xaa] sm:$0xff]  ;;  %v9411_v14 = vld [vmem:[#allocation2 + $0xb2] sm:$0xff]  ;;  %v9419_v31 = vld [vmem:[#allocation2 + $0xc1] sm:$0xff] }
 0x3db   : > { %3616 = vst.msk [vmem:[#allocation2 + $0x121] sm:$0xff] %vm365_vm1, %v3530_v37  ;;  %v9405_v42 = vld [vmem:[#allocation2 + $0xb0] sm:$0xff]  ;;  %v9421_v61 = vld [vmem:[#allocation2 + $0xc0] sm:$0xff]  ;;  %v9441_v17 = vld [vmem:[#allocation2 + $0xc8] sm:$0xff] }
 0x3dc   : > { %3617 = vst.msk [vmem:[#allocation2 + $0x129] sm:$0xff] %vm365_vm1, %v3531_v2  ;;  %v9427_v10 = vld [vmem:[#allocation2 + $0xc2] sm:$0xff]  ;;  %v9447_v53 = vld [vmem:[#allocation2 + $0xca] sm:$0xff]  ;;  %v9459_v51 = vld [vmem:[#allocation2 + $0xd9] sm:$0xff] }
 0x3dd   : > { %3618 = vst.msk [vmem:[#allocation2 + $0x139] sm:$0xff] %vm365_vm1, %v3532_v63  ;;  %6502 = vmatmul.msk.f32.gmra.mxu1 %vm365_vm1, %v9242_v57  ;;  %v9439_v12 = vld [vmem:[#allocation2 + $0xc9] sm:$0xff]  ;;  %v9461_v63 = vld [vmem:[#allocation2 + $0xd8] sm:$0xff] }
 0x3de   : > { %6535 = vmatmul.msk.f32.gmra.mxu2 %vm365_vm1, %v9244_v41  ;;  %3619 = vst.msk [vmem:[#allocation2 + $0x141] sm:$0xff] %vm365_vm1, %v3533_v32  ;;  %6601 = vmatmul.msk.f32.gmra.mxu0 %vm365_vm1, %v9244_v41  ;;  %v9467_v38 = vld [vmem:[#allocation2 + $0xda] sm:$0xff] }
 0x3df   : > { %6569 = vmatmul.msk.f32.gmra.mxu3 %vm365_vm1, %v9251_v28  ;;  %3620 = vst.msk [vmem:[#allocation2 + $0x151] sm:$0xff] %vm365_vm1, %v3534_v62 }
 0x3e0   : > { %3621 = vst.msk [vmem:[#allocation2 + $0x159] sm:$0xff] %vm365_vm1, %v3535_v40 }
 0x3e1   : > { %3622 = vst.msk [vmem:[#allocation2 + $0x169] sm:$0xff] %vm365_vm1, %v3536_v59 }
 0x3e2   : > { %3623 = vst.msk [vmem:[#allocation2 + $0x171] sm:$0xff] %vm365_vm1, %v3537_v60 }
 0x3e3   : > { %3624 = vst.msk [vmem:[#allocation2 + $0x181] sm:$0xff] %vm365_vm1, %v3538_v25  ;;  %v9477_v25 = vld [vmem:[#allocation2 + $0xe1] sm:$0xff] }
 0x3e4   : > { %10697 = vst [vmem:[#allocation43_spill] sm:$0xff] %v9459_v51 }
 0x3e5   : > { %6503 = vmatmul.msk.f32.gmra.mxu1 %vm365_vm1, %v9263_v0  ;;  %10698 = vst [vmem:[#allocation44_spill] sm:$0xff] %v9467_v38 }
 0x3e6   : > { %6536 = vmatmul.msk.f32.gmra.mxu2 %vm365_vm1, %v9265_v21  ;;  %6602 = vmatmul.msk.f32.gmra.mxu0 %vm365_vm1, %v9265_v21  ;;  %10701 = vst [vmem:[#allocation42_spill] sm:$0xff] %v9477_v25 }
 0x3e7   : > { %6570 = vmatmul.msk.f32.gmra.mxu3 %vm365_vm1, %v9271_v56 }
 0x3ed   : > { %6504 = vmatmul.msk.f32.gmra.mxu1 %vm365_vm1, %v9277_v4 }
 0x3ee   : > { %6537 = vmatmul.msk.f32.gmra.mxu2 %vm365_vm1, %v9279_v7  ;;  %6603 = vmatmul.msk.f32.gmra.mxu0 %vm365_vm1, %v9279_v7 }
 0x3ef   : > { %6571 = vmatmul.msk.f32.gmra.mxu3 %vm365_vm1, %v9285_v49 }
 0x3f5   : > { %6505 = vmatmul.msk.f32.gmra.mxu1 %vm365_vm1, %v9291_v48 }
 0x3f6   : > { %6538 = vmatmul.msk.f32.gmra.mxu2 %vm365_vm1, %v9293_v5  ;;  %6604 = vmatmul.msk.f32.gmra.mxu0 %vm365_vm1, %v9293_v5 }
 0x3f7   : > { %6572 = vmatmul.msk.f32.gmra.mxu3 %vm365_vm1, %v9299_v35 }
 0x3fd   : > { %6506 = vmatmul.msk.f32.gmra.mxu1 %vm365_vm1, %v9305_v18 }
 0x3fe   : > { %6539 = vmatmul.msk.f32.gmra.mxu2 %vm365_vm1, %v9307_v20  ;;  %6605 = vmatmul.msk.f32.gmra.mxu0 %vm365_vm1, %v9307_v20 }
 0x3ff   : > { %6573 = vmatmul.msk.f32.gmra.mxu3 %vm365_vm1, %v9313_v23 }
 0x405   : > { %6507 = vmatmul.msk.f32.gmra.mxu1 %vm365_vm1, %v9319_v26 }
 0x406   : > { %6540 = vmatmul.msk.f32.gmra.mxu2 %vm365_vm1, %v9321_v24  ;;  %6606 = vmatmul.msk.f32.gmra.mxu0 %vm365_vm1, %v9321_v24 }
 0x407   : > { %6574 = vmatmul.msk.f32.gmra.mxu3 %vm365_vm1, %v9327_v27 }
 0x40d   : > { %6508 = vmatmul.msk.f32.gmra.mxu1 %vm365_vm1, %v9333_v29 }
 0x40e   : > { %6541 = vmatmul.msk.f32.gmra.mxu2 %vm365_vm1, %v9335_v15  ;;  %6607 = vmatmul.msk.f32.gmra.mxu0 %vm365_vm1, %v9335_v15 }
 0x40f   : > { %6575 = vmatmul.msk.f32.gmra.mxu3 %vm365_vm1, %v9341_v34 }
 0x411   : > { %v9429_v39 = vpop.f32.mrf.mxu2 }
 0x413   : > { %v9435_v1 = vpop.f32.mrf.mxu3 }
 0x415   : > { %6509 = vmatmul.msk.f32.gmra.mxu1 %vm365_vm1, %v9347_v16 }
 0x416   : > { %6542 = vmatmul.msk.f32.gmra.mxu2 %vm365_vm1, %v9349_v45  ;;  %6608 = vmatmul.msk.f32.gmra.mxu0 %vm365_vm1, %v9349_v45 }
 0x417   : > { %6576 = vmatmul.msk.f32.gmra.mxu3 %vm365_vm1, %v9355_v54 }
 0x41d   : > { %6510 = vmatmul.msk.f32.gmra.mxu1 %vm365_vm1, %v9361_v58 }
 0x41e   : > { %6543 = vmatmul.msk.f32.gmra.mxu2 %vm365_vm1, %v9363_v8  ;;  %6609 = vmatmul.msk.f32.gmra.mxu0 %vm365_vm1, %v9363_v8 }
 0x41f   : > { %6577 = vmatmul.msk.f32.gmra.mxu3 %vm365_vm1, %v9369_v13 }
 0x421   : > { %v9453_v30 = vpop.f32.mrf.mxu2 }
 0x422   : > { %10695 = vst [vmem:[#allocation41_spill] sm:$0xff] %v9453_v30  ;;  %v9485_v30 = vld [vmem:[#allocation2 + $0xe2] sm:$0xff] }
 0x423   : > { %10702 = vst [vmem:[#allocation45_spill] sm:$0xff] %v9485_v30 }
 0x425   : > { %6511 = vmatmul.msk.f32.gmra.mxu1 %vm365_vm1, %v9375_v19 }
 0x426   : > { %6544 = vmatmul.msk.f32.gmra.mxu2 %vm365_vm1, %v9377_v6  ;;  %6610 = vmatmul.msk.f32.gmra.mxu0 %vm365_vm1, %v9377_v6 }
 0x427   : > { %6578 = vmatmul.msk.f32.gmra.mxu3 %vm365_vm1, %v9383_v36 }
 0x42d   : > { %6512 = vmatmul.msk.f32.gmra.mxu1 %vm365_vm1, %v9389_v22 }
 0x42e   : > { %6545 = vmatmul.msk.f32.gmra.mxu2 %vm365_vm1, %v9391_v44  ;;  %6611 = vmatmul.msk.f32.gmra.mxu0 %vm365_vm1, %v9391_v44 }
 0x42f   : > { %6579 = vmatmul.msk.f32.gmra.mxu3 %vm365_vm1, %v9397_v43 }
 0x435   : > { %6513 = vmatmul.msk.f32.gmra.mxu1 %vm365_vm1, %v9403_v50 }
 0x436   : > { %6546 = vmatmul.msk.f32.gmra.mxu2 %vm365_vm1, %v9405_v42  ;;  %6612 = vmatmul.msk.f32.gmra.mxu0 %vm365_vm1, %v9405_v42 }
 0x437   : > { %6580 = vmatmul.msk.f32.gmra.mxu3 %vm365_vm1, %v9411_v14 }
 0x439   : > { %v9417_v11 = vpop.f32.mrf.mxu1 }
 0x43d   : > { %6514 = vmatmul.msk.f32.gmra.mxu1 %vm365_vm1, %v9419_v31 }
 0x43e   : > { %6547 = vmatmul.msk.f32.gmra.mxu2 %vm365_vm1, %v9421_v61  ;;  %6613 = vmatmul.msk.f32.gmra.mxu0 %vm365_vm1, %v9421_v61 }
 0x43f   : > { %6581 = vmatmul.msk.f32.gmra.mxu3 %vm365_vm1, %v9427_v10 }
 0x441   : > { %v9437_v47 = vpop.f32.mrf.mxu1 }
 0x442   : > { %10694 = vst [vmem:[#allocation32_spill] sm:$0xff] %v9437_v47  ;;  %v9497_v47 = vld [vmem:[#allocation2 + $0xf0] sm:$0xff] }
 0x443   : > { %10706 = vst [vmem:[#allocation5_spill] sm:$0xff] %v9497_v47 }
 0x444   : > { %v9455_v37 = vpop.f32.mrf.mxu3 }
 0x445   : > { %6515 = vmatmul.msk.f32.gmra.mxu1 %vm365_vm1, %v9439_v12  ;;  %10696 = vst [vmem:[#allocation34_spill] sm:$0xff] %v9455_v37  ;;  %v9479_v37 = vld [vmem:[#allocation2 + $0xe0] sm:$0xff] }
 0x446   : > { %6548 = vmatmul.msk.f32.gmra.mxu2 %vm365_vm1, %v9441_v17  ;;  %6614 = vmatmul.msk.f32.gmra.mxu0 %vm365_vm1, %v9441_v17 }
 0x447   : > { %6582 = vmatmul.msk.f32.gmra.mxu3 %vm365_vm1, %v9447_v53 }
 0x44a   : > { %v3815_v33 = vpop.f32.mrf.mxu1 }
 0x44b   : > { %v9457_v2 = vpop.f32.mrf.mxu0 }
 0x44d   : > { %6516 = vmatmul.msk.f32.gmra.mxu1 %vm365_vm1, %v9459_v51  ;;  %v9624_v51 = vld [vmem:[#allocation2 + $0x140] sm:$0xff] }
 0x44e   : > { %6549 = vmatmul.msk.f32.gmra.mxu2 %vm365_vm1, %v9461_v63  ;;  %6615 = vmatmul.msk.f32.gmra.mxu0 %vm365_vm1, %v9461_v63  ;;  %10740 = vst [vmem:[#allocation49_spill] sm:$0xff] %v9624_v51 }
 0x44f   : > { %6583 = vmatmul.msk.f32.gmra.mxu3 %vm365_vm1, %v9467_v38  ;;  %v9515_v38 = vld [vmem:[#allocation2 + $0xf8] sm:$0xff] }
 0x450   : > { %10711 = vst [vmem:[#allocation17_spill] sm:$0xff] %v9515_v38 }
 0x451   : > { %v4027_v32 = vpop.f32.mrf.mxu2 }
 0x452   : > { %v4028_v46 = vadd.f32 %v4027_v32, %v3815_v33  ;;  %v4273_v62 = vpop.f32.mrf.mxu3  ;;  %v3818_v40 = vpop.f32.mrf.mxu1 }
 0x453   : > { %v9475_v60 = vpop.f32.mrf.mxu0 }
 0x454   : > { %v9473_v59 = vadd.f32 %v4273_v62, %v4028_v46  ;;  %10700 = vst [vmem:[#allocation37_spill] sm:$0xff] %v9475_v60 }
 0x455   : > { %6517 = vmatmul.msk.f32.gmra.mxu1 %vm365_vm1, %v9477_v25  ;;  %v9495_v25 = vld [vmem:[#allocation2 + $0xf1] sm:$0xff] }
 0x456   : > { %10699 = vst [vmem:[#allocation38_spill] sm:$0xff] %v9473_v59  ;;  %6550 = vmatmul.msk.f32.gmra.mxu2 %vm365_vm1, %v9479_v37  ;;  %6616 = vmatmul.msk.f32.gmra.mxu0 %vm365_vm1, %v9479_v37 }
 0x457   : > { %6584 = vmatmul.msk.f32.gmra.mxu3 %vm365_vm1, %v9485_v30  ;;  %10705 = vst [vmem:[#allocation6_spill] sm:$0xff] %v9495_v25  ;;  %v9503_v30 = vld [vmem:[#allocation2 + $0xf2] sm:$0xff] }
 0x458   : > { %10707 = vst [vmem:[#allocation8_spill] sm:$0xff] %v9503_v30 }
 0x459   : > { %v4030_v33 = vpop.f32.mrf.mxu2 }
 0x45a   : > { %v4031_v32 = vadd.f32 %v4030_v33, %v3818_v40  ;;  %v4276_v46 = vpop.f32.mrf.mxu3  ;;  %v3821_v62 = vpop.f32.mrf.mxu1 }
 0x45b   : > { %v9493_v60 = vpop.f32.mrf.mxu0 }
 0x45c   : > { %v9491_v59 = vadd.f32 %v4276_v46, %v4031_v32  ;;  %10704 = vst [vmem:[#allocation4_spill] sm:$0xff] %v9493_v60 }
 0x45d   : > { %6518 = vmatmul.msk.f32.gmra.mxu1 %vm365_vm1, %v9495_v25  ;;  %v9513_v25 = vld [vmem:[#allocation2 + $0xf9] sm:$0xff] }
 0x45e   : > { %10703 = vst [vmem:[#allocation48_spill] sm:$0xff] %v9491_v59  ;;  %6551 = vmatmul.msk.f32.gmra.mxu2 %vm365_vm1, %v9497_v47  ;;  %6617 = vmatmul.msk.f32.gmra.mxu0 %vm365_vm1, %v9497_v47  ;;  %v9533_v47 = vld [vmem:[#allocation2 + $0x108] sm:$0xff] }
 0x45f   : > { %6585 = vmatmul.msk.f32.gmra.mxu3 %vm365_vm1, %v9503_v30  ;;  %10710 = vst [vmem:[#allocation12_spill] sm:$0xff] %v9513_v25  ;;  %v9521_v30 = vld [vmem:[#allocation2 + $0xfa] sm:$0xff] }
 0x460   : > { %10712 = vst [vmem:[#allocation47_spill] sm:$0xff] %v9521_v30 }
 0x461   : > { %v4033_v40 = vpop.f32.mrf.mxu2  ;;  %10716 = vst [vmem:[#allocation11_spill] sm:$0xff] %v9533_v47 }
 0x462   : > { %v4034_v33 = vadd.f32 %v4033_v40, %v3821_v62  ;;  %v4279_v32 = vpop.f32.mrf.mxu3  ;;  %v3824_v46 = vpop.f32.mrf.mxu1 }
 0x463   : > { %v9511_v60 = vpop.f32.mrf.mxu0 }
 0x464   : > { %v9509_v59 = vadd.f32 %v4279_v32, %v4034_v33  ;;  %10709 = vst [vmem:[#allocation46_spill] sm:$0xff] %v9511_v60 }
 0x465   : > { %6519 = vmatmul.msk.f32.gmra.mxu1 %vm365_vm1, %v9513_v25  ;;  %v9531_v25 = vld [vmem:[#allocation2 + $0x109] sm:$0xff] }
 0x466   : > { %10708 = vst [vmem:[#allocation35_spill] sm:$0xff] %v9509_v59  ;;  %6552 = vmatmul.msk.f32.gmra.mxu2 %vm365_vm1, %v9515_v38  ;;  %6618 = vmatmul.msk.f32.gmra.mxu0 %vm365_vm1, %v9515_v38  ;;  %v9551_v38 = vld [vmem:[#allocation2 + $0x110] sm:$0xff] }
 0x467   : > { %6586 = vmatmul.msk.f32.gmra.mxu3 %vm365_vm1, %v9521_v30  ;;  %10715 = vst [vmem:[#allocation20_spill] sm:$0xff] %v9531_v25  ;;  %v9539_v30 = vld [vmem:[#allocation2 + $0x10a] sm:$0xff] }
 0x468   : > { %10717 = vst [vmem:[#allocation19_spill] sm:$0xff] %v9539_v30 }
 0x469   : > { %v4036_v62 = vpop.f32.mrf.mxu2  ;;  %10721 = vst [vmem:[#allocation25_spill] sm:$0xff] %v9551_v38 }
 0x46a   : > { %v4037_v40 = vadd.f32 %v4036_v62, %v3824_v46  ;;  %v4282_v33 = vpop.f32.mrf.mxu3  ;;  %v3827_v32 = vpop.f32.mrf.mxu1 }
 0x46b   : > { %v9529_v60 = vpop.f32.mrf.mxu0 }
 0x46c   : > { %v9527_v59 = vadd.f32 %v4282_v33, %v4037_v40  ;;  %10714 = vst [vmem:[#allocation21_spill] sm:$0xff] %v9529_v60 }
 0x46d   : > { %6520 = vmatmul.msk.f32.gmra.mxu1 %vm365_vm1, %v9531_v25  ;;  %v9549_v25 = vld [vmem:[#allocation2 + $0x111] sm:$0xff] }
 0x46e   : > { %10713 = vst [vmem:[#allocation13_spill] sm:$0xff] %v9527_v59  ;;  %6553 = vmatmul.msk.f32.gmra.mxu2 %vm365_vm1, %v9533_v47  ;;  %6619 = vmatmul.msk.f32.gmra.mxu0 %vm365_vm1, %v9533_v47  ;;  %v9569_v47 = vld [vmem:[#allocation2 + $0x120] sm:$0xff] }
 0x46f   : > { %6587 = vmatmul.msk.f32.gmra.mxu3 %vm365_vm1, %v9539_v30  ;;  %10720 = vst [vmem:[#allocation18_spill] sm:$0xff] %v9549_v25  ;;  %v9557_v30 = vld [vmem:[#allocation2 + $0x112] sm:$0xff] }
 0x470   : > { %10722 = vst [vmem:[#allocation14_spill] sm:$0xff] %v9557_v30 }
 0x471   : > { %v4039_v46 = vpop.f32.mrf.mxu2  ;;  %10726 = vst [vmem:[#allocation23_spill] sm:$0xff] %v9569_v47 }
 0x472   : > { %v4040_v62 = vadd.f32 %v4039_v46, %v3827_v32  ;;  %v4285_v40 = vpop.f32.mrf.mxu3  ;;  %v3830_v33 = vpop.f32.mrf.mxu1 }
 0x473   : > { %v9547_v60 = vpop.f32.mrf.mxu0 }
 0x474   : > { %v9545_v59 = vadd.f32 %v4285_v40, %v4040_v62  ;;  %10719 = vst [vmem:[#allocation15_spill] sm:$0xff] %v9547_v60 }
 0x475   : > { %6521 = vmatmul.msk.f32.gmra.mxu1 %vm365_vm1, %v9549_v25  ;;  %v9567_v25 = vld [vmem:[#allocation2 + $0x121] sm:$0xff] }
 0x476   : > { %10718 = vst [vmem:[#allocation27_spill] sm:$0xff] %v9545_v59  ;;  %6554 = vmatmul.msk.f32.gmra.mxu2 %vm365_vm1, %v9551_v38  ;;  %6620 = vmatmul.msk.f32.gmra.mxu0 %vm365_vm1, %v9551_v38 }
 0x477   : > { %6588 = vmatmul.msk.f32.gmra.mxu3 %vm365_vm1, %v9557_v30  ;;  %10725 = vst [vmem:[#allocation28_spill] sm:$0xff] %v9567_v25  ;;  %v9575_v30 = vld [vmem:[#allocation2 + $0x122] sm:$0xff] }
 0x478   : > { %10727 = vst [vmem:[#allocation26_spill] sm:$0xff] %v9575_v30 }
 0x479   : > { %v4042_v32 = vpop.f32.mrf.mxu2 }
 0x47a   : > { %v4043_v46 = vadd.f32 %v4042_v32, %v3830_v33  ;;  %v4288_v62 = vpop.f32.mrf.mxu3  ;;  %v3833_v40 = vpop.f32.mrf.mxu1 }
 0x47b   : > { %v9565_v60 = vpop.f32.mrf.mxu0 }
 0x47c   : > { %v9563_v59 = vadd.f32 %v4288_v62, %v4043_v46  ;;  %10724 = vst [vmem:[#allocation16_spill] sm:$0xff] %v9565_v60  ;;  %v9583_v60 = vld [vmem:[#allocation2 + $0x129] sm:$0xff] }
 0x47d   : > { %6522 = vmatmul.msk.f32.gmra.mxu1 %vm365_vm1, %v9567_v25  ;;  %10729 = vst [vmem:[#allocation33_spill] sm:$0xff] %v9583_v60  ;;  %v9585_v25 = vld [vmem:[#allocation2 + $0x128] sm:$0xff] }
 0x47e   : > { %10723 = vst [vmem:[#allocation24_spill] sm:$0xff] %v9563_v59  ;;  %6555 = vmatmul.msk.f32.gmra.mxu2 %vm365_vm1, %v9569_v47  ;;  %6621 = vmatmul.msk.f32.gmra.mxu0 %vm365_vm1, %v9569_v47  ;;  %v9603_v47 = vld [vmem:[#allocation2 + $0x138] sm:$0xff] }
 0x47f   : > { %6589 = vmatmul.msk.f32.gmra.mxu3 %vm365_vm1, %v9575_v30  ;;  %10730 = vst [vmem:[#allocation36_spill] sm:$0xff] %v9585_v25  ;;  %v9591_v30 = vld [vmem:[#allocation2 + $0x12a] sm:$0xff] }
 0x480   : > { %10731 = vst [vmem:[#allocation29_spill] sm:$0xff] %v9591_v30 }
 0x481   : > { %v4045_v33 = vpop.f32.mrf.mxu2  ;;  %10735 = vst [vmem:[#allocation10_spill] sm:$0xff] %v9603_v47 }
 0x482   : > { %v4046_v32 = vadd.f32 %v4045_v33, %v3833_v40  ;;  %v4291_v46 = vpop.f32.mrf.mxu3  ;;  %v3836_v62 = vpop.f32.mrf.mxu1 }
 0x483   : > { %v9593_v38 = vpop.f32.mrf.mxu0 }
 0x484   : > { %v9581_v59 = vadd.f32 %v4291_v46, %v4046_v32  ;;  %10732 = vst [vmem:[#allocation31_spill] sm:$0xff] %v9593_v38 }
 0x485   : > { %6523 = vmatmul.msk.f32.gmra.mxu1 %vm365_vm1, %v9583_v60  ;;  %v9601_v60 = vld [vmem:[#allocation2 + $0x139] sm:$0xff] }
 0x486   : > { %10728 = vst [vmem:[#allocation22_spill] sm:$0xff] %v9581_v59  ;;  %6556 = vmatmul.msk.f32.gmra.mxu2 %vm365_vm1, %v9585_v25  ;;  %6622 = vmatmul.msk.f32.gmra.mxu0 %vm365_vm1, %v9585_v25  ;;  %v9622_v25 = vld [vmem:[#allocation2 + $0x141] sm:$0xff] }
 0x487   : > { %6590 = vmatmul.msk.f32.gmra.mxu3 %vm365_vm1, %v9591_v30  ;;  %10734 = vst [vmem:[#allocation7_spill] sm:$0xff] %v9601_v60  ;;  %v9609_v30 = vld [vmem:[#allocation2 + $0x13a] sm:$0xff] }
 0x488   : > { %10736 = vst [vmem:[#allocation39_spill] sm:$0xff] %v9609_v30 }
 0x489   : > { %v4048_v40 = vpop.f32.mrf.mxu2  ;;  %10739 = vst [vmem:[#allocation3_spill] sm:$0xff] %v9622_v25 }
 0x48a   : > { %v4049_v33 = vadd.f32 %v4048_v40, %v3836_v62  ;;  %v4294_v32 = vpop.f32.mrf.mxu3  ;;  %v3839_v46 = vpop.f32.mrf.mxu1 }
 0x48b   : > { %v9615_v62 = vpop.f32.mrf.mxu0 }
 0x48c   : > { %v9599_v59 = vadd.f32 %v4294_v32, %v4049_v33  ;;  %10737 = vst [vmem:[#allocation40_spill] sm:$0xff] %v9615_v62  ;;  %v6699_v62 = vld [vmem:[%s10452_s8 + $0x18] sm:$0xf] }
 0x48d   : > { %6524 = vmatmul.msk.f32.gmra.mxu1 %vm365_vm1, %v9601_v60  ;;  %v6665_v60 = vld [vmem:[%s10452_s8 + $0x14] sm:$0xf]  ;;  %6700 = vmatpush.msk.msra.mxu3 %vm944_vm0, %v6699_v62  ;;  %v6767_v62 = vld [vmem:[%s10452_s8 + $0x20] sm:$0xf] }
 0x48e   : > { %10733 = vst [vmem:[#allocation30_spill] sm:$0xff] %v9599_v59  ;;  %6557 = vmatmul.msk.f32.gmra.mxu2 %vm365_vm1, %v9603_v47  ;;  %6623 = vmatmul.msk.f32.gmra.mxu0 %vm365_vm1, %v9603_v47  ;;  %v9647_v47 = vld [vmem:[#allocation2 + $0x150] sm:$0xff] }
 0x48f   : > { %6591 = vmatmul.msk.f32.gmra.mxu3 %vm365_vm1, %v9609_v30  ;;  %6666 = vmatpush.msk.msra.mxu2 %vm944_vm0, %v6665_v60  ;;  %v9645_v30 = vld [vmem:[#allocation2 + $0x151] sm:$0xff] }
 0x490   : > { %10744 = vst [vmem:[#allocation53_spill] sm:$0xff] %v9645_v30  ;;  %6768 = vmatpush.msk.msra.mxu1 %vm944_vm0, %v6767_v62 }
 0x491   : > { %v4051_v40 = vpop.f32.mrf.mxu2 }
 0x492   : > { %v4052_v33 = vadd.f32 %v4051_v40, %v3839_v46  ;;  %v4297_v32 = vpop.f32.mrf.mxu3  ;;  %v3842_v59 = vpop.f32.mrf.mxu1  ;;  %v9634_v46 = vld [vmem:[#allocation2 + $0x142] sm:$0xff] }
 0x493   : > { %10741 = vst [vmem:[#allocation50_spill] sm:$0xff] %v9634_v46 }
 0x494   : > { %v9617_v38 = vadd.f32 %v4297_v32, %v4052_v33  ;;  %v9641_v32 = vpop.f32.mrf.mxu0 }
 0x495   : > { %6525 = vmatmul.msk.f32.gmra.mxu1 %vm365_vm1, %v9622_v25  ;;  %10742 = vst [vmem:[#allocation51_spill] sm:$0xff] %v9641_v32 }
 0x496   : > { %10738 = vst [vmem:[#allocation9_spill] sm:$0xff] %v9617_v38  ;;  %6558 = vmatmul.msk.f32.gmra.mxu2 %vm365_vm1, %v9624_v51  ;;  %6624 = vmatmul.msk.f32.gmra.mxu0 %vm365_vm1, %v9624_v51  ;;  %v9673_v51 = vld [vmem:[#allocation2 + $0x158] sm:$0xff] }
 0x497   : > { %6592 = vmatmul.msk.f32.gmra.mxu3 %vm365_vm1, %v9634_v46  ;;  %v6733_v46 = vld [vmem:[%s10452_s8 + $0x1c] sm:$0xf]  ;;  %10749 = vst [vmem:[#allocation58_spill] sm:$0xff] %v9673_v51 }
 0x498   : > { %6734 = vmatpush.msk.msra.mxu0 %vm944_vm0, %v6733_v46  ;;  %v9679_v46 = vld [vmem:[#allocation2 + $0x15a] sm:$0xff] }
 0x499   : > { %v4054_v60 = vpop.f32.mrf.mxu2  ;;  %10750 = vst [vmem:[#allocation59_spill] sm:$0xff] %v9679_v46 }
 0x49a   : > { %v4055_v40 = vadd.f32 %v4054_v60, %v3842_v59  ;;  %v4300_v33 = vpop.f32.mrf.mxu3  ;;  %v3845_v38 = vpop.f32.mrf.mxu1  ;;  %v9656_v59 = vld [vmem:[#allocation2 + $0x152] sm:$0xff] }
 0x49b   : > { %10745 = vst [vmem:[#allocation54_spill] sm:$0xff] %v9656_v59 }
 0x49c   : > { %v9643_v25 = vadd.f32 %v4300_v33, %v4055_v40 }
 0x49d   : > { %6526 = vmatmul.msk.f32.gmra.mxu1 %vm365_vm1, %v9645_v30  ;;  %v9669_v30 = vpop.f32.mrf.mxu0 }
 0x49e   : > { %10743 = vst [vmem:[#allocation52_spill] sm:$0xff] %v9643_v25  ;;  %6559 = vmatmul.msk.f32.gmra.mxu2 %vm365_vm1, %v9647_v47  ;;  %6625 = vmatmul.msk.f32.gmra.mxu0 %vm365_vm1, %v9647_v47 }
 0x49f   : > { %6593 = vmatmul.msk.f32.gmra.mxu3 %vm365_vm1, %v9656_v59  ;;  %10747 = vst [vmem:[#allocation56_spill] sm:$0xff] %v9669_v30  ;;  %v9671_v59 = vld [vmem:[#allocation2 + $0x159] sm:$0xff]  ;;  %v9689_v30 = vld [vmem:[#allocation2 + $0x168] sm:$0xff] }
 0x4a0   : > { %10748 = vst [vmem:[#allocation57_spill] sm:$0xff] %v9671_v59 }
 0x4a1   : > { %v4057_v60 = vpop.f32.mrf.mxu2 }
 0x4a2   : > { %v4058_v40 = vadd.f32 %v4057_v60, %v3845_v38  ;;  %v4303_v33 = vpop.f32.mrf.mxu3  ;;  %v3848_v25 = vpop.f32.mrf.mxu1 }
 0x4a4   : > { %v9667_v32 = vadd.f32 %v4303_v33, %v4058_v40 }
 0x4a5   : > { %6527 = vmatmul.msk.f32.gmra.mxu1 %vm365_vm1, %v9671_v59  ;;  %v9697_v59 = vpop.f32.mrf.mxu0 }
 0x4a6   : > { %10746 = vst [vmem:[#allocation55_spill] sm:$0xff] %v9667_v32  ;;  %6560 = vmatmul.msk.f32.gmra.mxu2 %vm365_vm1, %v9673_v51  ;;  %6626 = vmatmul.msk.f32.gmra.mxu0 %vm365_vm1, %v9673_v51  ;;  %v9687_v32 = vld [vmem:[#allocation2 + $0x169] sm:$0xff] }
 0x4a7   : > { %6594 = vmatmul.msk.f32.gmra.mxu3 %vm365_vm1, %v9679_v46  ;;  %10752 = vst [vmem:[#allocation61_spill] sm:$0xff] %v9687_v32  ;;  %v9695_v46 = vld [vmem:[#allocation2 + $0x16a] sm:$0xff] }
 0x4a8   : > { %10753 = vst [vmem:[#allocation62_spill] sm:$0xff] %v9695_v46  ;;  %v9707_v51 = vld [vmem:[#allocation2 + $0x170] sm:$0xff] }
 0x4a9   : > { %v4060_v38 = vpop.f32.mrf.mxu2  ;;  %10754 = vst [vmem:[#allocation63_spill] sm:$0xff] %v9697_v59  ;;  %v9713_v59 = vld [vmem:[#allocation2 + $0x172] sm:$0xff] }
 0x4aa   : > { %v4061_v62 = vadd.f32 %v4060_v38, %v3848_v25  ;;  %v4306_v60 = vpop.f32.mrf.mxu3  ;;  %v3851_v40 = vpop.f32.mrf.mxu1  ;;  %10757 = vst [vmem:[#allocation66_spill] sm:$0xff] %v9713_v59 }
 0x4ac   : > { %v9685_v33 = vadd.f32 %v4306_v60, %v4061_v62 }
 0x4ad   : > { %6528 = vmatmul.msk.f32.gmra.mxu1 %vm365_vm1, %v9687_v32  ;;  %v9705_v32 = vld [vmem:[#allocation2 + $0x171] sm:$0xff] }
 0x4ae   : > { %10751 = vst [vmem:[#allocation60_spill] sm:$0xff] %v9685_v33  ;;  %6561 = vmatmul.msk.f32.gmra.mxu2 %vm365_vm1, %v9689_v30  ;;  %6627 = vmatmul.msk.f32.gmra.mxu0 %vm365_vm1, %v9689_v30 }
 0x4af   : > { %6595 = vmatmul.msk.f32.gmra.mxu3 %vm365_vm1, %v9695_v46  ;;  %10756 = vst [vmem:[#allocation65_spill] sm:$0xff] %v9705_v32 }
 0x4b1   : > { %v4063_v25 = vpop.f32.mrf.mxu2 }
 0x4b2   : > { %v4064_v38 = vadd.f32 %v4063_v25, %v3851_v40  ;;  %v4309_v62 = vpop.f32.mrf.mxu3  ;;  %v3854_v60 = vpop.f32.mrf.mxu1 }
 0x4b3   : > { %v9719_v40 = vpop.f32.mrf.mxu0 }
 0x4b4   : > { %v9703_v33 = vadd.f32 %v4309_v62, %v4064_v38  ;;  %10758 = vst [vmem:[#allocation67_spill] sm:$0xff] %v9719_v40 }
 0x4b5   : > { %6529 = vmatmul.msk.f32.gmra.mxu1 %vm365_vm1, %v9705_v32  ;;  %v9723_v32 = vld [vmem:[#allocation2 + $0x180] sm:$0xff] }
 0x4b6   : > { %10755 = vst [vmem:[#allocation64_spill] sm:$0xff] %v9703_v33  ;;  %6562 = vmatmul.msk.f32.gmra.mxu2 %vm365_vm1, %v9707_v51  ;;  %6628 = vmatmul.msk.f32.gmra.mxu0 %vm365_vm1, %v9707_v51 }
 0x4b7   : > { %6596 = vmatmul.msk.f32.gmra.mxu3 %vm365_vm1, %v9713_v59 }
 0x4b9   : > { %v4066_v25 = vpop.f32.mrf.mxu2 }
 0x4ba   : > { %v4067_v38 = vadd.f32 %v4066_v25, %v3854_v60  ;;  %v4312_v62 = vpop.f32.mrf.mxu3  ;;  %v3857_v33 = vpop.f32.mrf.mxu1 }
 0x4bb   : > { %v9733_v59 = vpop.f32.mrf.mxu0 }
 0x4bc   : > { %v9721_v46 = vadd.f32 %v4312_v62, %v4067_v38 }
 0x4bd   : > { %6633 = vmatmul.msk.f32.vlgmr.msrb.gmra.mxu1 %vm365_vm1, %v9176_v52 }
 0x4be   : > { %10759 = vst [vmem:[#allocation68_spill] sm:$0xff] %v9721_v46  ;;  %6667 = vmatmul.msk.f32.vlgmr.msra.gmra.mxu2 %vm365_vm1, %v9184_v55  ;;  %6629 = vmatmul.msk.f32.gmra.mxu0 %vm365_vm1, %v9723_v32  ;;  %v9737_v46 = vld [vmem:[#allocation2 + $0x188] sm:$0xff] }
 0x4bf   : > { %6701 = vmatmul.msk.f32.vlgmr.msra.gmra.mxu3 %vm365_vm1, %v9244_v41 }
 0x4c1   : > { %v4069_v40 = vpop.f32.mrf.mxu2 }
 0x4c2   : > { %v4070_v60 = vadd.f32 %v4069_v40, %v3857_v33  ;;  %v4315_v25 = vpop.f32.mrf.mxu3  ;;  %v3860_v38 = vpop.f32.mrf.mxu1 }
 0x4c4   : > { %v9735_v62 = vadd.f32 %v4315_v25, %v4070_v60  ;;  %v9749_v60 = vpop.f32.mrf.mxu0 }
 0x4c5   : > { %6634 = vmatmul.msk.f32.gmra.mxu1 %vm365_vm1, %v9210_v9 }
 0x4c6   : > { %6668 = vmatmul.msk.f32.gmra.mxu2 %vm365_vm1, %v9218_v3  ;;  %6630 = vmatmul.msk.f32.gmra.mxu0 %vm365_vm1, %v9737_v46 }
 0x4c7   : > { %6702 = vmatmul.msk.f32.gmra.mxu3 %vm365_vm1, %v9265_v21 }
 0x4c9   : > { %v4072_v52 = vpop.f32.mrf.mxu2 }
 0x4ca   : > { %v4073_v55 = vadd.f32 %v4072_v52, %v3860_v38  ;;  %v4318_v41 = vpop.f32.mrf.mxu3  ;;  %v3863_v33 = vpop.f32.mrf.mxu1 }
 0x4cc   : > { %v9747_v40 = vadd.f32 %v4318_v41, %v4073_v55  ;;  %v9765_v52 = vpop.f32.mrf.mxu0 }
 0x4cd   : > { %6635 = vmatmul.msk.f32.gmra.mxu1 %vm365_vm1, %v9242_v57 }
 0x4ce   : > { %6669 = vmatmul.msk.f32.gmra.mxu2 %vm365_vm1, %v9251_v28  ;;  %6735 = vmatmul.msk.f32.vlgmr.msra.gmra.mxu0 %vm365_vm1, %v9242_v57 }
 0x4cf   : > { %6703 = vmatmul.msk.f32.gmra.mxu3 %vm365_vm1, %v9279_v7 }
 0x4d1   : > { %v4075_v9 = vpop.f32.mrf.mxu2 }
 0x4d2   : > { %v4076_v3 = vadd.f32 %v4075_v9, %v3863_v33  ;;  %v4321_v21 = vpop.f32.mrf.mxu3  ;;  %v3866_v25 = vpop.f32.mrf.mxu1 }
 0x4d4   : > { %v9759_v38 = vadd.f32 %v4321_v21, %v4076_v3 }
 0x4d5   : > { %6636 = vmatmul.msk.f32.gmra.mxu1 %vm365_vm1, %v9263_v0 }
 0x4d6   : > { %6670 = vmatmul.msk.f32.gmra.mxu2 %vm365_vm1, %v9271_v56  ;;  %6736 = vmatmul.msk.f32.gmra.mxu0 %vm365_vm1, %v9263_v0  ;;  %v9781_v56 = vpop.f32.mrf.mxu0 }
 0x4d7   : > { %6704 = vmatmul.msk.f32.gmra.mxu3 %vm365_vm1, %v9293_v5 }
 0x4d9   : > { %v4078_v57 = vpop.f32.mrf.mxu2 }
 0x4da   : > { %v4079_v28 = vadd.f32 %v4078_v57, %v3866_v25  ;;  %v4324_v7 = vpop.f32.mrf.mxu3  ;;  %v3869_v55 = vpop.f32.mrf.mxu1 }
 0x4dc   : > { %v9771_v41 = vadd.f32 %v4324_v7, %v4079_v28 }
 0x4dd   : > { %6637 = vmatmul.msk.f32.gmra.mxu1 %vm365_vm1, %v9277_v4 }
 0x4de   : > { %6671 = vmatmul.msk.f32.gmra.mxu2 %vm365_vm1, %v9285_v49  ;;  %6737 = vmatmul.msk.f32.gmra.mxu0 %vm365_vm1, %v9277_v4  ;;  %v9793_v21 = vpop.f32.mrf.mxu0 }
 0x4df   : > { %6705 = vmatmul.msk.f32.gmra.mxu3 %vm365_vm1, %v9307_v20 }
 0x4e1   : > { %v4081_v0 = vpop.f32.mrf.mxu2 }
 0x4e2   : > { %v4082_v5 = vadd.f32 %v4081_v0, %v3869_v55  ;;  %v4327_v33 = vpop.f32.mrf.mxu3  ;;  %v3872_v9 = vpop.f32.mrf.mxu1 }
 0x4e4   : > { %v9783_v3 = vadd.f32 %v4327_v33, %v4082_v5 }
 0x4e5   : > { %6638 = vmatmul.msk.f32.gmra.mxu1 %vm365_vm1, %v9291_v48 }
 0x4e6   : > { %6672 = vmatmul.msk.f32.gmra.mxu2 %vm365_vm1, %v9299_v35  ;;  %6738 = vmatmul.msk.f32.gmra.mxu0 %vm365_vm1, %v9291_v48  ;;  %v9807_v55 = vpop.f32.mrf.mxu0 }
 0x4e7   : > { %6706 = vmatmul.msk.f32.gmra.mxu3 %vm365_vm1, %v9321_v24 }
 0x4e9   : > { %v4084_v4 = vpop.f32.mrf.mxu2 }
 0x4ea   : > { %v4085_v49 = vadd.f32 %v4084_v4, %v3872_v9  ;;  %v4330_v20 = vpop.f32.mrf.mxu3  ;;  %v3875_v25 = vpop.f32.mrf.mxu1 }
 0x4ec   : > { %v9795_v57 = vadd.f32 %v4330_v20, %v4085_v49 }
 0x4ed   : > { %6639 = vmatmul.msk.f32.gmra.mxu1 %vm365_vm1, %v9305_v18 }
 0x4ee   : > { %6673 = vmatmul.msk.f32.gmra.mxu2 %vm365_vm1, %v9313_v23  ;;  %6739 = vmatmul.msk.f32.gmra.mxu0 %vm365_vm1, %v9305_v18  ;;  %v9823_v33 = vpop.f32.mrf.mxu0 }
 0x4ef   : > { %6707 = vmatmul.msk.f32.gmra.mxu3 %vm365_vm1, %v9335_v15 }
 0x4f1   : > { %v4087_v48 = vpop.f32.mrf.mxu2 }
 0x4f2   : > { %v4088_v35 = vadd.f32 %v4087_v48, %v3875_v25  ;;  %v4333_v24 = vpop.f32.mrf.mxu3  ;;  %v3878_v28 = vpop.f32.mrf.mxu1 }
 0x4f4   : > { %v9805_v7 = vadd.f32 %v4333_v24, %v4088_v35 }
 0x4f5   : > { %6640 = vmatmul.msk.f32.gmra.mxu1 %vm365_vm1, %v9319_v26 }
 0x4f6   : > { %6674 = vmatmul.msk.f32.gmra.mxu2 %vm365_vm1, %v9327_v27  ;;  %6740 = vmatmul.msk.f32.gmra.mxu0 %vm365_vm1, %v9319_v26 }
 0x4f7   : > { %6708 = vmatmul.msk.f32.gmra.mxu3 %vm365_vm1, %v9349_v45 }
 0x4f9   : > { %v4090_v18 = vpop.f32.mrf.mxu2 }
 0x4fa   : > { %v4091_v23 = vadd.f32 %v4090_v18, %v3878_v28  ;;  %v4336_v15 = vpop.f32.mrf.mxu3  ;;  %v3881_v0 = vpop.f32.mrf.mxu1 }
 0x4fc   : > { %v9817_v5 = vadd.f32 %v4336_v15, %v4091_v23 }
 0x4fd   : > { %6641 = vmatmul.msk.f32.gmra.mxu1 %vm365_vm1, %v9333_v29 }
 0x4fe   : > { %10760 = vst [vmem:[#allocation69_spill] sm:$0xff] %v9817_v5  ;;  %6675 = vmatmul.msk.f32.gmra.mxu2 %vm365_vm1, %v9341_v34  ;;  %6741 = vmatmul.msk.f32.gmra.mxu0 %vm365_vm1, %v9333_v29  ;;  %v9839_v34 = vpop.f32.mrf.mxu0 }
 0x4ff   : > { %6709 = vmatmul.msk.f32.gmra.mxu3 %vm365_vm1, %v9363_v8 }
 0x501   : > { %v4093_v26 = vpop.f32.mrf.mxu2 }
 0x502   : > { %v4094_v27 = vadd.f32 %v4093_v26, %v3881_v0  ;;  %v4339_v45 = vpop.f32.mrf.mxu3  ;;  %v3884_v9 = vpop.f32.mrf.mxu1 }
 0x504   : > { %v9829_v4 = vadd.f32 %v4339_v45, %v4094_v27 }
 0x505   : > { %6642 = vmatmul.msk.f32.gmra.mxu1 %vm365_vm1, %v9347_v16 }
 0x506   : > { %10761 = vst [vmem:[#allocation70_spill] sm:$0xff] %v9829_v4  ;;  %6676 = vmatmul.msk.f32.gmra.mxu2 %vm365_vm1, %v9355_v54  ;;  %6742 = vmatmul.msk.f32.gmra.mxu0 %vm365_vm1, %v9347_v16  ;;  %v9851_v48 = vpop.f32.mrf.mxu0 }
 0x507   : > { %6710 = vmatmul.msk.f32.gmra.mxu3 %vm365_vm1, %v9377_v6 }
 0x509   : > { %v4096_v29 = vpop.f32.mrf.mxu2 }
 0x50a   : > { %v4097_v8 = vadd.f32 %v4096_v29, %v3884_v9  ;;  %v4342_v49 = vpop.f32.mrf.mxu3  ;;  %v3887_v20 = vpop.f32.mrf.mxu1 }
 0x50c   : > { %v9841_v25 = vadd.f32 %v4342_v49, %v4097_v8 }
 0x50d   : > { %6643 = vmatmul.msk.f32.gmra.mxu1 %vm365_vm1, %v9361_v58 }
 0x50e   : > { %10762 = vst [vmem:[#allocation71_spill] sm:$0xff] %v9841_v25  ;;  %6677 = vmatmul.msk.f32.gmra.mxu2 %vm365_vm1, %v9369_v13  ;;  %6743 = vmatmul.msk.f32.gmra.mxu0 %vm365_vm1, %v9361_v58  ;;  %v9865_v23 = vpop.f32.mrf.mxu0  ;;  %v5796_v25 = vld [vmem:[#allocation2 + $0xb2] sm:$0xff] }
 0x50f   : > { %6711 = vmatmul.msk.f32.gmra.mxu3 %vm365_vm1, %v9391_v44 }
 0x511   : > { %v4099_v16 = vpop.f32.mrf.mxu2 }
 0x512   : > { %v4100_v54 = vadd.f32 %v4099_v16, %v3887_v20  ;;  %v4345_v6 = vpop.f32.mrf.mxu3  ;;  %v3890_v35 = vpop.f32.mrf.mxu1 }
 0x514   : > { %v9853_v24 = vadd.f32 %v4345_v6, %v4100_v54 }
 0x515   : > { %6644 = vmatmul.msk.f32.gmra.mxu1 %vm365_vm1, %v9375_v19 }
 0x516   : > { %10763 = vst [vmem:[#allocation72_spill] sm:$0xff] %v9853_v24  ;;  %6678 = vmatmul.msk.f32.gmra.mxu2 %vm365_vm1, %v9383_v36  ;;  %6744 = vmatmul.msk.f32.gmra.mxu0 %vm365_vm1, %v9375_v19  ;;  %v9881_v26 = vpop.f32.mrf.mxu0  ;;  %v5794_v24 = vld [vmem:[#allocation2 + $0x9a] sm:$0xff] }
 0x517   : > { %6712 = vmatmul.msk.f32.gmra.mxu3 %vm365_vm1, %v9405_v42  ;;  %10766 = vst [vmem:[#allocation75_spill] sm:$0xff] %v9881_v26  ;;  %v10843_v26 = vld [vmem:[#allocation51_spill] sm:$0xff] }
 0x519   : > { %v4102_v58 = vpop.f32.mrf.mxu2 }
 0x51a   : > { %v4103_v13 = vadd.f32 %v4102_v58, %v3890_v35  ;;  %v4348_v44 = vpop.f32.mrf.mxu3  ;;  %v3893_v28 = vpop.f32.mrf.mxu1  ;;  %v10772_v35 = vld [vmem:[#allocation43_spill] sm:$0xff] }
 0x51c   : > { %v9863_v18 = vadd.f32 %v4348_v44, %v4103_v13 }
 0x51d   : > { %6645 = vmatmul.msk.f32.gmra.mxu1 %vm365_vm1, %v9389_v22 }
 0x51e   : > { %10764 = vst [vmem:[#allocation73_spill] sm:$0xff] %v9863_v18  ;;  %6679 = vmatmul.msk.f32.gmra.mxu2 %vm365_vm1, %v9397_v43  ;;  %6745 = vmatmul.msk.f32.gmra.mxu0 %vm365_vm1, %v9389_v22  ;;  %v5792_v18 = vld [vmem:[#allocation2 + $0x82] sm:$0xff] }
 0x51f   : > { %6713 = vmatmul.msk.f32.gmra.mxu3 %vm365_vm1, %v9421_v61 }
 0x521   : > { %v4105_v19 = vpop.f32.mrf.mxu2 }
 0x522   : > { %v4106_v36 = vadd.f32 %v4105_v19, %v3893_v28  ;;  %v4351_v42 = vpop.f32.mrf.mxu3  ;;  %v3896_v15 = vpop.f32.mrf.mxu1  ;;  %v10777_v19 = vld [vmem:[#allocation34_spill] sm:$0xff] }
 0x524   : > { %v9875_v0 = vadd.f32 %v4351_v42, %v4106_v36 }
 0x525   : > { %6646 = vmatmul.msk.f32.gmra.mxu1 %vm365_vm1, %v9403_v50 }
 0x526   : > { %10765 = vst [vmem:[#allocation74_spill] sm:$0xff] %v9875_v0  ;;  %6680 = vmatmul.msk.f32.gmra.mxu2 %vm365_vm1, %v9411_v14  ;;  %6746 = vmatmul.msk.f32.gmra.mxu0 %vm365_vm1, %v9403_v50  ;;  %v9897_v14 = vpop.f32.mrf.mxu0  ;;  %v5790_v0 = vld [vmem:[#allocation2 + $0x6a] sm:$0xff] }
 0x527   : > { %6714 = vmatmul.msk.f32.gmra.mxu3 %vm365_vm1, %v9441_v17  ;;  %10768 = vst [vmem:[#allocation77_spill] sm:$0xff] %v9897_v14 }
 0x529   : > { %v4108_v22 = vpop.f32.mrf.mxu2 }
 0x52a   : > { %v4109_v43 = vadd.f32 %v4108_v22, %v3896_v15  ;;  %v4354_v61 = vpop.f32.mrf.mxu3  ;;  %v3899_v27 = vpop.f32.mrf.mxu1  ;;  %v10779_v22 = vld [vmem:[#allocation37_spill] sm:$0xff] }
 0x52c   : > { %v9887_v45 = vadd.f32 %v4354_v61, %v4109_v43  ;;  %v10780_v61 = vld [vmem:[#allocation42_spill] sm:$0xff] }
 0x52d   : > { %6647 = vmatmul.msk.f32.gmra.mxu1 %vm365_vm1, %v9419_v31 }
 0x52e   : > { %10767 = vst [vmem:[#allocation76_spill] sm:$0xff] %v9887_v45  ;;  %6681 = vmatmul.msk.f32.gmra.mxu2 %vm365_vm1, %v9427_v10  ;;  %6747 = vmatmul.msk.f32.gmra.mxu0 %vm365_vm1, %v9419_v31  ;;  %v4022_v31 = vadd.f32 %v9429_v39, %v9417_v11  ;;  %v9911_v20 = vpop.f32.mrf.mxu0  ;;  %v10775_v11 = vld [vmem:[#allocation32_spill] sm:$0xff]  ;;  %v10776_v39 = vld [vmem:[#allocation41_spill] sm:$0xff] }
 0x52f   : > { %6715 = vmatmul.msk.f32.gmra.mxu3 %vm365_vm1, %v9461_v63  ;;  %10770 = vst [vmem:[#allocation79_spill] sm:$0xff] %v9911_v20  ;;  %v4025_v58 = vadd.f32 %v10776_v39, %v10775_v11  ;;  %v5795_v20 = vld [vmem:[#allocation2 + $0xaa] sm:$0xff] }
 0x530   : > { %v4363_v54 = vadd.f32 %v9435_v1, %v4022_v31 }
 0x531   : > { %v4111_v50 = vpop.f32.mrf.mxu2  ;;  %v4364_v36 = vadd.f32 %v10777_v19, %v4025_v58 }
 0x532   : > { %v4112_v17 = vadd.f32 %v4111_v50, %v3899_v27  ;;  %v4357_v9 = vpop.f32.mrf.mxu3  ;;  %v3902_v29 = vpop.f32.mrf.mxu1  ;;  %v10781_v27 = vld [vmem:[#allocation45_spill] sm:$0xff] }
 0x533   : > { %v4642_v43 = vadd.f32 %v10779_v22, %v4364_v36  ;;  %v10782_v50 = vld [vmem:[#allocation17_spill] sm:$0xff]  ;;  %v10791_v36 = vld [vmem:[#allocation12_spill] sm:$0xff]  ;;  %v10792_v22 = vld [vmem:[#allocation47_spill] sm:$0xff] }
 0x534   : > { %v9899_v8 = vadd.f32 %v4357_v9, %v4112_v17 }
 0x535   : > { %6648 = vmatmul.msk.f32.gmra.mxu1 %vm365_vm1, %v9439_v12 }
 0x536   : > { %10769 = vst [vmem:[#allocation78_spill] sm:$0xff] %v9899_v8  ;;  %6682 = vmatmul.msk.f32.gmra.mxu2 %vm365_vm1, %v9447_v53  ;;  %6748 = vmatmul.msk.f32.gmra.mxu0 %vm365_vm1, %v9439_v12  ;;  %v4641_v53 = vadd.f32 %v9457_v2, %v4363_v54  ;;  %v10774_v12 = vld [vmem:[#allocation5_spill] sm:$0xff]  ;;  %v9930_v15 = vpop.f32.mrf.mxu0 }
 0x537   : > { %6716 = vmatmul.msk.f32.gmra.mxu3 %vm365_vm1, %v9479_v37  ;;  %v10773_v37 = vld [vmem:[#allocation44_spill] sm:$0xff]  ;;  %10778 = vst [vmem:[#allocation43_spill] sm:$0xff] %v9930_v15 }
 0x538   : > { %v5786_v8 = vld [vmem:[#allocation2 + $0x3a] sm:$0xff]  ;;  %v5793_v15 = vld [vmem:[#allocation2 + $0x92] sm:$0xff] }
 0x539   : > { %v4114_v10 = vpop.f32.mrf.mxu2 }
 0x53a   : > { %v4115_v63 = vadd.f32 %v4114_v10, %v3902_v29  ;;  %v4360_v49 = vpop.f32.mrf.mxu3  ;;  %v4823_v16 = vpop.f32.mrf.mxu1 }
 0x53b   : > { %v4919_v1 = vadd.f32 %v4823_v16, %v4641_v53  ;;  %v10784_v16 = vld [vmem:[#allocation4_spill] sm:$0xff]  ;;  %v10785_v53 = vld [vmem:[#allocation6_spill] sm:$0xff] }
 0x53c   : > { %v9914_v6 = vadd.f32 %v4360_v49, %v4115_v63  ;;  %v10783_v49 = vld [vmem:[#allocation38_spill] sm:$0xff] }
 0x53d   : > { %6649 = vmatmul.msk.f32.gmra.mxu1 %vm365_vm1, %v10772_v35  ;;  %v4643_v54 = vadd.f32 %v10784_v16, %v10783_v49  ;;  %v10796_v49 = vld [vmem:[#allocation21_spill] sm:$0xff] }
 0x53e   : > { %10771 = vst [vmem:[#allocation80_spill] sm:$0xff] %v9914_v6  ;;  %6683 = vmatmul.msk.f32.gmra.mxu2 %vm365_vm1, %v10773_v37  ;;  %6749 = vmatmul.msk.f32.gmra.mxu0 %vm365_vm1, %v10772_v35  ;;  %v10786_v35 = vld [vmem:[#allocation8_spill] sm:$0xff]  ;;  %v9949_v37 = vpop.f32.mrf.mxu0 }
 0x53f   : > { %6717 = vmatmul.msk.f32.gmra.mxu3 %vm365_vm1, %v10774_v12  ;;  %10787 = vst [vmem:[#allocation44_spill] sm:$0xff] %v9949_v37  ;;  %v10788_v12 = vld [vmem:[#allocation11_spill] sm:$0xff]  ;;  %v5791_v37 = vld [vmem:[#allocation2 + $0x7a] sm:$0xff] }
 0x541   : > { %v5101_v13 = vpop.f32.mrf.mxu2 }
 0x542   : > { %v5197_v44 = vadd.f32 %v5101_v13, %v4919_v1  ;;  %v5379_v28 = vpop.f32.mrf.mxu3  ;;  %v4826_v2 = vpop.f32.mrf.mxu1 }
 0x543   : > { %v4920_v17 = vadd.f32 %v4826_v2, %v4642_v43  ;;  %v10790_v2 = vld [vmem:[#allocation46_spill] sm:$0xff]  ;;  %v10793_v43 = vld [vmem:[#allocation25_spill] sm:$0xff] }
 0x544   : > { %v9928_v42 = vadd.f32 %v5379_v28, %v5197_v44  ;;  %v10789_v28 = vld [vmem:[#allocation48_spill] sm:$0xff] }
 0x545   : > { %6650 = vmatmul.msk.f32.gmra.mxu1 %vm365_vm1, %v10780_v61  ;;  %v4644_v19 = vadd.f32 %v10790_v2, %v10789_v28  ;;  %v10801_v2 = vld [vmem:[#allocation13_spill] sm:$0xff] }
 0x546   : > { %6684 = vmatmul.msk.f32.gmra.mxu2 %vm365_vm1, %v10781_v27  ;;  %6750 = vmatmul.msk.f32.gmra.mxu0 %vm365_vm1, %v10780_v61  ;;  %v9967_v27 = vpop.f32.mrf.mxu0 }
 0x547   : > { %6718 = vmatmul.msk.f32.gmra.mxu3 %vm365_vm1, %v10782_v50  ;;  %10794 = vst [vmem:[#allocation5_spill] sm:$0xff] %v9967_v27  ;;  %v5789_v27 = vld [vmem:[#allocation2 + $0x62] sm:$0xff] }
 0x549   : > { %v5104_v9 = vpop.f32.mrf.mxu2 }
 0x54a   : > { %v5198_v29 = vadd.f32 %v5104_v9, %v4920_v17  ;;  %v5382_v31 = vpop.f32.mrf.mxu3  ;;  %v4829_v10 = vpop.f32.mrf.mxu1 }
 0x54b   : > { %v4921_v11 = vadd.f32 %v4829_v10, %v4643_v54  ;;  %v10795_v10 = vld [vmem:[#allocation35_spill] sm:$0xff]  ;;  %v10797_v54 = vld [vmem:[#allocation20_spill] sm:$0xff] }
 0x54c   : > { %v9941_v63 = vadd.f32 %v5382_v31, %v5198_v29  ;;  %v4645_v16 = vadd.f32 %v10796_v49, %v10795_v10 }
 0x54d   : > { %6651 = vmatmul.msk.f32.gmra.mxu1 %vm365_vm1, %v10785_v53 }
 0x54e   : > { %6685 = vmatmul.msk.f32.gmra.mxu2 %vm365_vm1, %v10786_v35  ;;  %6751 = vmatmul.msk.f32.gmra.mxu0 %vm365_vm1, %v10785_v53  ;;  %v10798_v53 = vld [vmem:[#allocation19_spill] sm:$0xff] }
 0x54f   : > { %6719 = vmatmul.msk.f32.gmra.mxu3 %vm365_vm1, %v10788_v12  ;;  %v10799_v35 = vld [vmem:[#allocation23_spill] sm:$0xff] }
 0x551   : > { %v5107_v39 = vpop.f32.mrf.mxu2 }
 0x552   : > { %v5199_v58 = vadd.f32 %v5107_v39, %v4921_v11  ;;  %v5385_v1 = vpop.f32.mrf.mxu3  ;;  %v4832_v13 = vpop.f32.mrf.mxu1 }
 0x553   : > { %v4922_v61 = vadd.f32 %v4832_v13, %v4644_v19  ;;  %v10802_v19 = vld [vmem:[#allocation15_spill] sm:$0xff] }
 0x554   : > { %v9955_v44 = vadd.f32 %v5385_v1, %v5199_v58  ;;  %v9981_v1 = vpop.f32.mrf.mxu0 }
 0x555   : > { %6652 = vmatmul.msk.f32.gmra.mxu1 %vm365_vm1, %v10791_v36  ;;  %10800 = vst [vmem:[#allocation32_spill] sm:$0xff] %v9981_v1 }
 0x556   : > { %6686 = vmatmul.msk.f32.gmra.mxu2 %vm365_vm1, %v10792_v22  ;;  %6752 = vmatmul.msk.f32.gmra.mxu0 %vm365_vm1, %v10791_v36  ;;  %v4646_v36 = vadd.f32 %v10802_v19, %v10801_v2  ;;  %v10803_v22 = vld [vmem:[#allocation18_spill] sm:$0xff] }
 0x557   : > { %6720 = vmatmul.msk.f32.gmra.mxu3 %vm365_vm1, %v10793_v43  ;;  %v10804_v43 = vld [vmem:[#allocation14_spill] sm:$0xff] }
 0x559   : > { %v5110_v50 = vpop.f32.mrf.mxu2 }
 0x55a   : > { %v5200_v17 = vadd.f32 %v5110_v50, %v4922_v61  ;;  %v5388_v9 = vpop.f32.mrf.mxu3  ;;  %v4835_v29 = vpop.f32.mrf.mxu1  ;;  %v10805_v61 = vld [vmem:[#allocation36_spill] sm:$0xff] }
 0x55b   : > { %v4923_v12 = vadd.f32 %v4835_v29, %v4645_v16 }
 0x55c   : > { %v9969_v31 = vadd.f32 %v5388_v9, %v5200_v17  ;;  %v9997_v16 = vpop.f32.mrf.mxu0 }
 0x55d   : > { %6653 = vmatmul.msk.f32.gmra.mxu1 %vm365_vm1, %v10797_v54  ;;  %10806 = vst [vmem:[#allocation41_spill] sm:$0xff] %v9997_v16  ;;  %v5538_v16 = vld [vmem:[#allocation2 + $0x1a1] sm:$0xff] }
 0x55e   : > { %6687 = vmatmul.msk.f32.gmra.mxu2 %vm365_vm1, %v10798_v53  ;;  %6753 = vmatmul.msk.f32.gmra.mxu0 %vm365_vm1, %v10797_v54  ;;  %v10807_v54 = vld [vmem:[#allocation27_spill] sm:$0xff]  ;;  %v10808_v53 = vld [vmem:[#allocation16_spill] sm:$0xff] }
 0x55f   : > { %6721 = vmatmul.msk.f32.gmra.mxu3 %vm365_vm1, %v10799_v35  ;;  %v4647_v35 = vadd.f32 %v10808_v53, %v10807_v54  ;;  %v10817_v54 = vld [vmem:[#allocation49_spill] sm:$0xff] }
 0x561   : > { %v5113_v11 = vpop.f32.mrf.mxu2 }
 0x562   : > { %v5201_v39 = vadd.f32 %v5113_v11, %v4923_v12  ;;  %v5391_v58 = vpop.f32.mrf.mxu3  ;;  %v4838_v13 = vpop.f32.mrf.mxu1  ;;  %v10809_v12 = vld [vmem:[#allocation28_spill] sm:$0xff]  ;;  %v10810_v11 = vld [vmem:[#allocation26_spill] sm:$0xff] }
 0x563   : > { %v4924_v50 = vadd.f32 %v4838_v13, %v4646_v36 }
 0x564   : > { %v9983_v28 = vadd.f32 %v5391_v58, %v5201_v39  ;;  %v10811_v39 = vld [vmem:[#allocation10_spill] sm:$0xff] }
 0x565   : > { %6654 = vmatmul.msk.f32.gmra.mxu1 %vm365_vm1, %v10803_v22 }
 0x566   : > { %6688 = vmatmul.msk.f32.gmra.mxu2 %vm365_vm1, %v10804_v43  ;;  %6754 = vmatmul.msk.f32.gmra.mxu0 %vm365_vm1, %v10803_v22  ;;  %v10812_v43 = vld [vmem:[#allocation24_spill] sm:$0xff] }
 0x567   : > { %6722 = vmatmul.msk.f32.gmra.mxu3 %vm365_vm1, %v10805_v61  ;;  %v10813_v61 = vld [vmem:[#allocation31_spill] sm:$0xff] }
 0x569   : > { %v5116_v17 = vpop.f32.mrf.mxu2 }
 0x56a   : > { %v5202_v9 = vadd.f32 %v5116_v17, %v4924_v50  ;;  %v5394_v29 = vpop.f32.mrf.mxu3  ;;  %v4841_v10 = vpop.f32.mrf.mxu1  ;;  %v4648_v50 = vadd.f32 %v10813_v61, %v10812_v43  ;;  %v10814_v17 = vld [vmem:[#allocation33_spill] sm:$0xff]  ;;  %v10821_v43 = vld [vmem:[#allocation50_spill] sm:$0xff] }
 0x56b   : > { %v4925_v58 = vadd.f32 %v4841_v10, %v4647_v35  ;;  %v10822_v61 = vld [vmem:[#allocation58_spill] sm:$0xff] }
 0x56c   : > { %v9995_v49 = vadd.f32 %v5394_v29, %v5202_v9  ;;  %v10815_v9 = vld [vmem:[#allocation29_spill] sm:$0xff]  ;;  %v10017_v29 = vpop.f32.mrf.mxu0 }
 0x56d   : > { %6655 = vmatmul.msk.f32.gmra.mxu1 %vm365_vm1, %v10809_v12  ;;  %10816 = vst [vmem:[#allocation34_spill] sm:$0xff] %v10017_v29  ;;  %v5785_v29 = vld [vmem:[#allocation2 + $0x32] sm:$0xff] }
 0x56e   : > { %6689 = vmatmul.msk.f32.gmra.mxu2 %vm365_vm1, %v10810_v11  ;;  %6755 = vmatmul.msk.f32.gmra.mxu0 %vm365_vm1, %v10809_v12 }
 0x56f   : > { %6723 = vmatmul.msk.f32.gmra.mxu3 %vm365_vm1, %v10811_v39 }
 0x571   : > { %v5119_v13 = vpop.f32.mrf.mxu2 }
 0x572   : > { %v5203_v2 = vadd.f32 %v5119_v13, %v4925_v58  ;;  %v5397_v19 = vpop.f32.mrf.mxu3  ;;  %v4844_v36 = vpop.f32.mrf.mxu1  ;;  %v10818_v58 = vld [vmem:[#allocation7_spill] sm:$0xff] }
 0x573   : > { %v4926_v10 = vadd.f32 %v4844_v36, %v4648_v50  ;;  %v10819_v13 = vld [vmem:[#allocation39_spill] sm:$0xff] }
 0x574   : > { %v10009_v22 = vadd.f32 %v5397_v19, %v5203_v2  ;;  %v10035_v2 = vpop.f32.mrf.mxu0  ;;  %v10820_v36 = vld [vmem:[#allocation3_spill] sm:$0xff] }
 0x575   : > { %6656 = vmatmul.msk.f32.gmra.mxu1 %vm365_vm1, %v10814_v17 }
 0x576   : > { %6690 = vmatmul.msk.f32.gmra.mxu2 %vm365_vm1, %v10815_v9  ;;  %6756 = vmatmul.msk.f32.gmra.mxu0 %vm365_vm1, %v10814_v17  ;;  %v10823_v17 = vld [vmem:[#allocation53_spill] sm:$0xff]  ;;  %v10824_v9 = vld [vmem:[#allocation54_spill] sm:$0xff] }
 0x577   : > { %6724 = vmatmul.msk.f32.gmra.mxu3 %vm365_vm1, %v10817_v54 }
 0x579   : > { %v5122_v53 = vpop.f32.mrf.mxu2 }
 0x57a   : > { %v5204_v35 = vadd.f32 %v5122_v53, %v4926_v10  ;;  %v5400_v12 = vpop.f32.mrf.mxu3  ;;  %v10023_v11 = vpop.f32.mrf.mxu1  ;;  %v10825_v53 = vld [vmem:[#allocation57_spill] sm:$0xff] }
 0x57c   : > { %v10025_v39 = vadd.f32 %v5400_v12, %v5204_v35  ;;  %v10826_v35 = vld [vmem:[#allocation59_spill] sm:$0xff]  ;;  %v10827_v12 = vld [vmem:[#allocation61_spill] sm:$0xff] }
 0x57d   : > { %6657 = vmatmul.msk.f32.gmra.mxu1 %vm365_vm1, %v10818_v58 }
 0x57e   : > { %6691 = vmatmul.msk.f32.gmra.mxu2 %vm365_vm1, %v10819_v13  ;;  %6757 = vmatmul.msk.f32.gmra.mxu0 %vm365_vm1, %v10818_v58  ;;  %v10828_v58 = vld [vmem:[#allocation62_spill] sm:$0xff] }
 0x57f   : > { %6725 = vmatmul.msk.f32.gmra.mxu3 %vm365_vm1, %v9647_v47  ;;  %v10047_v47 = vpop.f32.mrf.mxu0 }
 0x582   : > { %v10037_v19 = vpop.f32.mrf.mxu1  ;;  %v10188_v14 = vpop.f32.mrf.mxu3 }
 0x585   : > { %6658 = vmatmul.msk.f32.gmra.mxu1 %vm365_vm1, %v10820_v36 }
 0x586   : > { %6692 = vmatmul.msk.f32.gmra.mxu2 %vm365_vm1, %v10821_v43  ;;  %6758 = vmatmul.msk.f32.gmra.mxu0 %vm365_vm1, %v10820_v36  ;;  %v10829_v36 = vld [vmem:[#allocation65_spill] sm:$0xff]  ;;  %v10830_v43 = vld [vmem:[#allocation66_spill] sm:$0xff] }
 0x587   : > { %6726 = vmatmul.msk.f32.gmra.mxu3 %vm365_vm1, %v10822_v61  ;;  %v10061_v10 = vpop.f32.mrf.mxu0 }
 0x58a   : > { %v10049_v50 = vpop.f32.mrf.mxu1 }
 0x58d   : > { %6659 = vmatmul.msk.f32.gmra.mxu1 %vm365_vm1, %v10823_v17 }
 0x58e   : > { %6693 = vmatmul.msk.f32.gmra.mxu2 %vm365_vm1, %v10824_v9  ;;  %6759 = vmatmul.msk.f32.gmra.mxu0 %vm365_vm1, %v10823_v17  ;;  %v5259_v17 = vld [vmem:[#allocation2 + $0x198] sm:$0xff]  ;;  %v4703_v9 = vld [vmem:[#allocation2 + $0x181] sm:$0xff] }
 0x58f   : > { %6727 = vmatmul.msk.f32.gmra.mxu3 %vm365_vm1, %v9689_v30  ;;  %v10077_v13 = vpop.f32.mrf.mxu0 }
 0x592   : > { %v10059_v54 = vpop.f32.mrf.mxu1 }
 0x595   : > { %6660 = vmatmul.msk.f32.gmra.mxu1 %vm365_vm1, %v10825_v53 }
 0x596   : > { %6694 = vmatmul.msk.f32.gmra.mxu2 %vm365_vm1, %v10826_v35  ;;  %6760 = vmatmul.msk.f32.gmra.mxu0 %vm365_vm1, %v10825_v53  ;;  %v10097_v53 = vld [vmem:[#allocation2 + $0x182] sm:$0xff] }
 0x597   : > { %6728 = vmatmul.msk.f32.gmra.mxu3 %vm365_vm1, %v9707_v51  ;;  %v10093_v61 = vpop.f32.mrf.mxu0 }
 0x59a   : > { %v10071_v30 = vpop.f32.mrf.mxu1 }
 0x59d   : > { %6661 = vmatmul.msk.f32.gmra.mxu1 %vm365_vm1, %v10827_v12 }
 0x59e   : > { %6695 = vmatmul.msk.f32.gmra.mxu2 %vm365_vm1, %v10828_v58  ;;  %6761 = vmatmul.msk.f32.gmra.mxu0 %vm365_vm1, %v10827_v12  ;;  %v5260_v12 = vld [vmem:[#allocation2 + $0x1a0] sm:$0xff]  ;;  %v4704_v58 = vld [vmem:[#allocation2 + $0x189] sm:$0xff] }
 0x59f   : > { %6729 = vmatmul.msk.f32.gmra.mxu3 %vm365_vm1, %v9723_v32 }
 0x5a2   : > { %v10083_v51 = vpop.f32.mrf.mxu1 }
 0x5a5   : > { %6662 = vmatmul.msk.f32.gmra.mxu1 %vm365_vm1, %v10829_v36 }
 0x5a6   : > { %6696 = vmatmul.msk.f32.gmra.mxu2 %vm365_vm1, %v10830_v43  ;;  %6762 = vmatmul.msk.f32.gmra.mxu0 %vm365_vm1, %v10829_v36  ;;  %v10108_v36 = vld [vmem:[#allocation2 + $0x18a] sm:$0xff] }
 0x5a7   : > { %6730 = vmatmul.msk.f32.gmra.mxu3 %vm365_vm1, %v9737_v46  ;;  %v10104_v46 = vpop.f32.mrf.mxu0 }
 0x5aa   : > { %v10095_v32 = vpop.f32.mrf.mxu1 }
 0x5ad   : > { %6663 = vmatmul.msk.f32.gmra.mxu1 %vm365_vm1, %v4703_v9 }
 0x5ae   : > { %6697 = vmatmul.msk.f32.gmra.mxu2 %vm365_vm1, %v10097_v53  ;;  %6763 = vmatmul.msk.f32.gmra.mxu0 %vm365_vm1, %v4703_v9 }
 0x5af   : > { %6731 = vmatmul.msk.f32.gmra.mxu3 %vm365_vm1, %v5259_v17  ;;  %v5537_v17 = vld [vmem:[#allocation2 + $0x199] sm:$0xff]  ;;  %v10117_v9 = vpop.f32.mrf.mxu0 }
 0x5b2   : > { %v10106_v35 = vpop.f32.mrf.mxu1 }
 0x5b5   : > { %6664 = vmatmul.msk.f32.gmra.mxu1 %vm365_vm1, %v4704_v58 }
 0x5b6   : > { %6698 = vmatmul.msk.f32.gmra.mxu2 %vm365_vm1, %v10108_v36  ;;  %6764 = vmatmul.msk.f32.gmra.mxu0 %vm365_vm1, %v4704_v58  ;;  %v5787_v58 = vld [vmem:[#allocation2 + $0x4a] sm:$0xff] }
 0x5b7   : > { %6732 = vmatmul.msk.f32.gmra.mxu3 %vm365_vm1, %v5260_v12  ;;  %v10124_v1 = vpop.f32.mrf.mxu0 }
 0x5ba   : > { %v10115_v43 = vpop.f32.mrf.mxu1 }
 0x5bd   : > { %6769 = vmatmul.msk.f32.vlgmr.msra.gmra.mxu1 %vm365_vm1, %v5785_v29  ;;  %v5788_v29 = vld [vmem:[#allocation2 + $0x52] sm:$0xff] }
 0x5be   : > { %6765 = vmatmul.msk.f32.gmra.mxu0 %vm365_vm1, %v5537_v17 }
 0x5c2   : > { %v10121_v6 = vpop.f32.mrf.mxu1 }
 0x5c5   : > { %6770 = vmatmul.msk.f32.gmra.mxu1 %vm365_vm1, %v5786_v8 }
 0x5c6   : > { %6766 = vmatmul.msk.f32.gmra.mxu0 %vm365_vm1, %v5538_v16 }
 0x5ca   : > { %v10127_v12 = vpop.f32.mrf.mxu1 }
 0x5cd   : > { %6771 = vmatmul.msk.f32.gmra.mxu1 %vm365_vm1, %v5787_v58 }
 0x5d2   : > { %v10130_v45 = vpop.f32.mrf.mxu1 }
 0x5d5   : > { %6772 = vmatmul.msk.f32.gmra.mxu1 %vm365_vm1, %v5788_v29 }
 0x5da   : > { %v10133_v17 = vpop.f32.mrf.mxu1 }
 0x5dd   : > { %6773 = vmatmul.msk.f32.gmra.mxu1 %vm365_vm1, %v5789_v27 }
 0x5e2   : > { %v10136_v8 = vpop.f32.mrf.mxu1 }
 0x5e5   : > { %6774 = vmatmul.msk.f32.gmra.mxu1 %vm365_vm1, %v5790_v0 }
 0x5ea   : > { %v10139_v16 = vpop.f32.mrf.mxu1 }
 0x5ed   : > { %6775 = vmatmul.msk.f32.gmra.mxu1 %vm365_vm1, %v5791_v37 }
 0x5f2   : > { %v10142_v58 = vpop.f32.mrf.mxu1 }
 0x5f3   : > { %10831 = vst [vmem:[#allocation37_spill] sm:$0xff] %v10142_v58 }
 0x5f5   : > { %6776 = vmatmul.msk.f32.gmra.mxu1 %vm365_vm1, %v5792_v18 }
 0x5fa   : > { %v10145_v29 = vpop.f32.mrf.mxu1 }
 0x5fb   : > { %10832 = vst [vmem:[#allocation42_spill] sm:$0xff] %v10145_v29  ;;  %v5797_v29 = vld [vmem:[#allocation2 + $0xc2] sm:$0xff] }
 0x5fd   : > { %6777 = vmatmul.msk.f32.gmra.mxu1 %vm365_vm1, %v5793_v15 }
 0x602   : > { %v10148_v27 = vpop.f32.mrf.mxu1 }
 0x603   : > { %10833 = vst [vmem:[#allocation45_spill] sm:$0xff] %v10148_v27 }
 0x605   : > { %6778 = vmatmul.msk.f32.gmra.mxu1 %vm365_vm1, %v5794_v24  ;;  %v5798_v24 = vld [vmem:[#allocation2 + $0xca] sm:$0xff] }
 0x60a   : > { %v10151_v0 = vpop.f32.mrf.mxu1 }
 0x60b   : > { %10834 = vst [vmem:[#allocation17_spill] sm:$0xff] %v10151_v0 }
 0x60d   : > { %6779 = vmatmul.msk.f32.gmra.mxu1 %vm365_vm1, %v5795_v20  ;;  %v5799_v20 = vld [vmem:[#allocation2 + $0xda] sm:$0xff] }
 0x612   : > { %v10154_v37 = vpop.f32.mrf.mxu1 }
 0x613   : > { %10835 = vst [vmem:[#allocation38_spill] sm:$0xff] %v10154_v37 }
 0x615   : > { %6780 = vmatmul.msk.f32.gmra.mxu1 %vm365_vm1, %v5796_v25  ;;  %v5800_v25 = vld [vmem:[#allocation2 + $0xe2] sm:$0xff] }
 0x61a   : > { %v10157_v18 = vpop.f32.mrf.mxu1 }
 0x61b   : > { %10836 = vst [vmem:[#allocation4_spill] sm:$0xff] %v10157_v18  ;;  %v5753_v18 = vadd.f32 %v10035_v2, %v9928_v42  ;;  %v5754_v42 = vadd.f32 %v10047_v47, %v9941_v63  ;;  %v10184_v2 = vpop.f32.mrf.mxu2  ;;  %v5755_v63 = vadd.f32 %v10061_v10, %v9955_v44 }
 0x61d   : > { %6781 = vmatmul.msk.f32.gmra.mxu1 %vm365_vm1, %v5797_v29 }
 0x622   : > { %v10160_v15 = vpop.f32.mrf.mxu1 }
 0x623   : > { %10837 = vst [vmem:[#allocation6_spill] sm:$0xff] %v10160_v15 }
 0x625   : > { %6782 = vmatmul.msk.f32.gmra.mxu1 %vm365_vm1, %v5798_v24  ;;  %v5801_v24 = vld [vmem:[#allocation2 + $0xf2] sm:$0xff] }
 0x62a   : > { %v10163_v0 = vpop.f32.mrf.mxu1 }
 0x62b   : > { %10838 = vst [vmem:[#allocation8_spill] sm:$0xff] %v10163_v0  ;;  %v6829_v0 = vld [vmem:[%s6946_s16 + $0x8] sm:$0xff] }
 0x62d   : > { %6783 = vmatmul.msk.f32.gmra.mxu1 %vm365_vm1, %v5799_v20  ;;  %v6828_v20 = vld [vmem:[%s6946_s16] sm:$0xff] }
 0x632   : > { %v10166_v37 = vpop.f32.mrf.mxu1 }
 0x633   : > { %10839 = vst [vmem:[#allocation11_spill] sm:$0xff] %v10166_v37 }
 0x635   : > { %6784 = vmatmul.msk.f32.gmra.mxu1 %vm365_vm1, %v5800_v25 }
 0x63a   : > { %v5935_v29 = vpop.f32.mrf.mxu1 }
 0x63b   : > { %v6031_v27 = vadd.f32 %v5935_v29, %v5753_v18  ;;  %v5802_v29 = vld [vmem:[#allocation2 + $0xfa] sm:$0xff] }
 0x63d   : > { %v6063_v37 = vadd.f32 %v6828_v20, %v6031_v27  ;;  %6785 = vmatmul.msk.f32.gmra.mxu1 %vm365_vm1, %v5801_v24  ;;  %v10192_v27 = vpop.f32.mrf.mxu0  ;;  %v10196_v24 = vpop.f32.mrf.mxu2  ;;  %v5803_v20 = vld [vmem:[#allocation2 + $0x10a] sm:$0xff] }
 0x63f   : > { %6095 = vst.msk [vmem:[%s10176_s23] sm:$0xff] %vm365_vm1, %v6063_v37 }
 0x642   : > { %v5938_v18 = vpop.f32.mrf.mxu1 }
 0x643   : > { %v6032_v25 = vadd.f32 %v5938_v18, %v5754_v42  ;;  %v6830_v42 = vld [vmem:[%s6946_s16 + $0x10] sm:$0xff]  ;;  %v10204_v18 = vpop.f32.mrf.mxu3 }
 0x645   : > { %v6064_v15 = vadd.f32 %v6829_v0, %v6032_v25  ;;  %6786 = vmatmul.msk.f32.gmra.mxu1 %vm365_vm1, %v5802_v29  ;;  %v10206_v25 = vpop.f32.mrf.mxu0  ;;  %v5804_v29 = vld [vmem:[#allocation2 + $0x112] sm:$0xff] }
 0x647   : > { %6096 = vst.msk [vmem:[%s10176_s23 + $0x8] sm:$0xff] %vm365_vm1, %v6064_v15  ;;  %v5756_v15 = vadd.f32 %v10077_v13, %v9969_v31  ;;  %v5757_v31 = vadd.f32 %v10093_v61, %v9983_v28  ;;  %v5758_v28 = vadd.f32 %v10104_v46, %v9995_v49 }
 0x64a   : > { %v5941_v47 = vpop.f32.mrf.mxu1 }
 0x64b   : > { %v6033_v37 = vadd.f32 %v5941_v47, %v5755_v63  ;;  %v6831_v63 = vld [vmem:[%s6946_s16 + $0x18] sm:$0xff] }
 0x64d   : > { %v6065_v0 = vadd.f32 %v6830_v42, %v6033_v37  ;;  %6787 = vmatmul.msk.f32.gmra.mxu1 %vm365_vm1, %v5803_v20  ;;  %v10210_v37 = vpop.f32.mrf.mxu2  ;;  %v10216_v20 = vpop.f32.mrf.mxu3 }
 0x64f   : > { %6097 = vst.msk [vmem:[%s10176_s23 + $0x10] sm:$0xff] %vm365_vm1, %v6065_v0  ;;  %v10218_v0 = vpop.f32.mrf.mxu0 }
 0x652   : > { %v5944_v44 = vpop.f32.mrf.mxu1 }
 0x653   : > { %v6034_v10 = vadd.f32 %v5944_v44, %v5756_v15  ;;  %v5805_v15 = vld [vmem:[#allocation2 + $0x122] sm:$0xff] }
 0x654   : > { %v6832_v44 = vld [vmem:[%s6946_s16 + $0x20] sm:$0xff] }
 0x655   : > { %v6066_v47 = vadd.f32 %v6831_v63, %v6034_v10  ;;  %6788 = vmatmul.msk.f32.gmra.mxu1 %vm365_vm1, %v5804_v29  ;;  %v10224_v29 = vpop.f32.mrf.mxu2 }
 0x657   : > { %6098 = vst.msk [vmem:[%s10176_s23 + $0x18] sm:$0xff] %vm365_vm1, %v6066_v47  ;;  %v5806_v47 = vld [vmem:[#allocation2 + $0x12a] sm:$0xff] }
 0x65a   : > { %v5947_v13 = vpop.f32.mrf.mxu1 }
 0x65b   : > { %v6035_v42 = vadd.f32 %v5947_v13, %v5757_v31  ;;  %v10228_v31 = vpop.f32.mrf.mxu3  ;;  %v6833_v13 = vld [vmem:[%s6946_s16 + $0x28] sm:$0xff] }
 0x65d   : > { %v6067_v10 = vadd.f32 %v6832_v44, %v6035_v42  ;;  %6789 = vmatmul.msk.f32.gmra.mxu1 %vm365_vm1, %v5805_v15  ;;  %v10232_v42 = vpop.f32.mrf.mxu0  ;;  %v5759_v15 = vadd.f32 %v10117_v9, %v10009_v22  ;;  %v10238_v44 = vpop.f32.mrf.mxu2  ;;  %v5760_v9 = vadd.f32 %v10124_v1, %v10025_v39 }
 0x65f   : > { %6099 = vst.msk [vmem:[%s10176_s23 + $0x20] sm:$0xff] %vm365_vm1, %v6067_v10  ;;  %v5807_v10 = vld [vmem:[#allocation2 + $0x13a] sm:$0xff] }
 0x662   : > { %v5950_v61 = vpop.f32.mrf.mxu1 }
 0x663   : > { %v6036_v63 = vadd.f32 %v5950_v61, %v5758_v28  ;;  %v6834_v28 = vld [vmem:[%s6946_s16 + $0x30] sm:$0xff]  ;;  %v10244_v58 = vpop.f32.mrf.mxu3 }
 0x665   : > { %v6068_v4 = vadd.f32 %v6833_v13, %v6036_v63  ;;  %6790 = vmatmul.msk.f32.gmra.mxu1 %vm365_vm1, %v5806_v47  ;;  %v10840_v63 = vld [vmem:[#allocation22_spill] sm:$0xff]  ;;  %v10841_v13 = vld [vmem:[#allocation40_spill] sm:$0xff] }
 0x666   : > { %v4649_v47 = vadd.f32 %v10841_v13, %v10840_v63  ;;  %v6835_v63 = vld [vmem:[%s6946_s16 + $0x38] sm:$0xff] }
 0x667   : > { %6100 = vst.msk [vmem:[%s10176_s23 + $0x28] sm:$0xff] %vm365_vm1, %v6068_v4  ;;  %v10248_v4 = vpop.f32.mrf.mxu0 }
 0x668   : > { %v4927_v22 = vadd.f32 %v10023_v11, %v4649_v47 }
 0x66a   : > { %v5953_v49 = vpop.f32.mrf.mxu1 }
 0x66b   : > { %v6037_v46 = vadd.f32 %v5953_v49, %v5759_v15  ;;  %v5205_v49 = vadd.f32 %v10184_v2, %v4927_v22  ;;  %v10265_v2 = vpop.f32.mrf.mxu3 }
 0x66d   : > { %v6069_v61 = vadd.f32 %v6834_v28, %v6037_v46  ;;  %6791 = vmatmul.msk.f32.gmra.mxu1 %vm365_vm1, %v5807_v10  ;;  %v10254_v10 = vpop.f32.mrf.mxu2  ;;  %v5808_v28 = vld [vmem:[#allocation2 + $0x142] sm:$0xff]  ;;  %v5483_v11 = vadd.f32 %v10188_v14, %v5205_v49 }
 0x66e   : > { %v10844_v49 = vld [vmem:[#allocation9_spill] sm:$0xff] }
 0x66f   : > { %6101 = vst.msk [vmem:[%s10176_s23 + $0x30] sm:$0xff] %vm365_vm1, %v6069_v61  ;;  %v10842_v61 = vld [vmem:[#allocation30_spill] sm:$0xff]  ;;  %v5761_v39 = vadd.f32 %v10192_v27, %v5483_v11  ;;  %v10267_v47 = vpop.f32.mrf.mxu0 }
 0x670   : > { %v4650_v5 = vadd.f32 %v10843_v26, %v10842_v61  ;;  %v6836_v26 = vld [vmem:[%s6946_s16 + $0x40] sm:$0xff] }
 0x672   : > { %v5956_v15 = vpop.f32.mrf.mxu1  ;;  %v4928_v1 = vadd.f32 %v10037_v19, %v4650_v5  ;;  %v10845_v5 = vld [vmem:[#allocation56_spill] sm:$0xff] }
 0x673   : > { %v6038_v46 = vadd.f32 %v5956_v15, %v5760_v9  ;;  %v4651_v19 = vadd.f32 %v10845_v5, %v10844_v49  ;;  %v10282_v11 = vpop.f32.mrf.mxu3 }
 0x674   : > { %v5206_v9 = vadd.f32 %v10196_v24, %v4928_v1 }
 0x675   : > { %v6070_v13 = vadd.f32 %v6835_v63, %v6038_v46  ;;  %6792 = vmatmul.msk.f32.gmra.mxu1 %vm365_vm1, %v5808_v28  ;;  %v5809_v46 = vld [vmem:[#allocation2 + $0x152] sm:$0xff]  ;;  %v10272_v14 = vpop.f32.mrf.mxu2  ;;  %v4929_v63 = vadd.f32 %v10049_v50, %v4651_v19 }
 0x676   : > { %v5484_v27 = vadd.f32 %v10204_v18, %v5206_v9  ;;  %v10846_v18 = vld [vmem:[#allocation52_spill] sm:$0xff]  ;;  %v10847_v9 = vld [vmem:[#allocation63_spill] sm:$0xff] }
 0x677   : > { %6102 = vst.msk [vmem:[%s10176_s23 + $0x38] sm:$0xff] %vm365_vm1, %v6070_v13  ;;  %v5207_v61 = vadd.f32 %v10210_v37, %v4929_v63 }
 0x678   : > { %v5762_v24 = vadd.f32 %v10206_v25, %v5484_v27  ;;  %v5811_v27 = vld [vmem:[#allocation2 + $0x16a] sm:$0xff] }
 0x679   : > { %v5485_v50 = vadd.f32 %v10216_v20, %v5207_v61  ;;  %v10848_v61 = vld [vmem:[#allocation55_spill] sm:$0xff] }
 0x67a   : > { %v5959_v22 = vpop.f32.mrf.mxu1 }
 0x67b   : > { %v6039_v15 = vadd.f32 %v5959_v22, %v5761_v39  ;;  %v10284_v39 = vpop.f32.mrf.mxu0  ;;  %v5810_v22 = vld [vmem:[#allocation2 + $0x15a] sm:$0xff]  ;;  %v5424_v63 = vpop.f32.mrf.mxu3 }
 0x67d   : > { %v6071_v28 = vadd.f32 %v6836_v26, %v6039_v15  ;;  %6793 = vmatmul.msk.f32.gmra.mxu1 %vm365_vm1, %v5809_v46  ;;  %v6837_v15 = vld [vmem:[%s6946_s16 + $0x48] sm:$0xff]  ;;  %v4652_v26 = vadd.f32 %v10847_v9, %v10846_v18  ;;  %v5146_v25 = vpop.f32.mrf.mxu2 }
 0x67f   : > { %6103 = vst.msk [vmem:[%s10176_s23 + $0x40] sm:$0xff] %vm365_vm1, %v6071_v28  ;;  %v4930_v37 = vadd.f32 %v10059_v54, %v4652_v26  ;;  %v5763_v28 = vadd.f32 %v10218_v0, %v5485_v50  ;;  %v5812_v26 = vld [vmem:[#allocation2 + $0x172] sm:$0xff] }
 0x680   : > { %v6839_v50 = vld [vmem:[%s6946_s16 + $0x58] sm:$0xff] }
 0x681   : > { %v5208_v5 = vadd.f32 %v10224_v29, %v4930_v37 }
 0x682   : > { %v5962_v13 = vpop.f32.mrf.mxu1 }
 0x683   : > { %v6040_v1 = vadd.f32 %v5962_v13, %v5762_v24  ;;  %v6838_v24 = vld [vmem:[%s6946_s16 + $0x50] sm:$0xff]  ;;  %v5702_v20 = vpop.f32.mrf.mxu0  ;;  %v5486_v54 = vadd.f32 %v10228_v31, %v5208_v5 }
 0x685   : > { %v6072_v46 = vadd.f32 %v6837_v15, %v6040_v1  ;;  %6794 = vmatmul.msk.f32.gmra.mxu1 %vm365_vm1, %v5810_v22  ;;  %v10849_v1 = vld [vmem:[#allocation67_spill] sm:$0xff]  ;;  %v5764_v29 = vadd.f32 %v10232_v42, %v5486_v54  ;;  %v5149_v15 = vpop.f32.mrf.mxu2 }
 0x686   : > { %v4653_v22 = vadd.f32 %v10849_v1, %v10848_v61  ;;  %v6840_v61 = vld [vmem:[%s6946_s16 + $0x60] sm:$0xff] }
 0x687   : > { %6104 = vst.msk [vmem:[%s10176_s23 + $0x48] sm:$0xff] %vm365_vm1, %v6072_v46 }
 0x688   : > { %v4931_v0 = vadd.f32 %v10071_v30, %v4653_v22  ;;  %v5427_v30 = vpop.f32.mrf.mxu3 }
 0x68a   : > { %v5965_v49 = vpop.f32.mrf.mxu1  ;;  %v5209_v18 = vadd.f32 %v10238_v44, %v4931_v0 }
 0x68b   : > { %v6041_v19 = vadd.f32 %v5965_v49, %v5763_v28  ;;  %v10850_v28 = vld [vmem:[#allocation60_spill] sm:$0xff]  ;;  %v5705_v42 = vpop.f32.mrf.mxu0 }
 0x68c   : > { %v4654_v31 = vadd.f32 %v9733_v59, %v10850_v28  ;;  %v5487_v49 = vadd.f32 %v10244_v58, %v5209_v18  ;;  %v10851_v59 = vld [vmem:[#allocation64_spill] sm:$0xff] }
 0x68d   : > { %v6073_v13 = vadd.f32 %v6838_v24, %v6041_v19  ;;  %6795 = vmatmul.msk.f32.gmra.mxu1 %vm365_vm1, %v5811_v27  ;;  %v4655_v58 = vadd.f32 %v9749_v60, %v10851_v59 }
 0x68e   : > { %v4932_v5 = vadd.f32 %v10083_v51, %v4654_v31  ;;  %v5765_v44 = vadd.f32 %v10248_v4, %v5487_v49  ;;  %v6842_v49 = vld [vmem:[%s6946_s16 + $0x70] sm:$0xff] }
 0x68f   : > { %6105 = vst.msk [vmem:[%s10176_s23 + $0x50] sm:$0xff] %vm365_vm1, %v6073_v13  ;;  %v5152_v13 = vpop.f32.mrf.mxu2  ;;  %v4933_v51 = vadd.f32 %v10095_v32, %v4655_v58 }
 0x690   : > { %v5210_v27 = vadd.f32 %v10254_v10, %v4932_v5  ;;  %v5430_v10 = vpop.f32.mrf.mxu3 }
 0x692   : > { %v5968_v46 = vpop.f32.mrf.mxu1  ;;  %v5488_v22 = vadd.f32 %v10265_v2, %v5210_v27  ;;  %v10852_v2 = vld [vmem:[#allocation68_spill] sm:$0xff] }
 0x693   : > { %v6042_v9 = vadd.f32 %v5968_v46, %v5764_v29  ;;  %v5708_v54 = vpop.f32.mrf.mxu0  ;;  %v5211_v29 = vadd.f32 %v10272_v14, %v4933_v51 }
 0x694   : > { %v5766_v4 = vadd.f32 %v10267_v47, %v5488_v22 }
 0x695   : > { %v6074_v37 = vadd.f32 %v6839_v50, %v6042_v9  ;;  %6796 = vmatmul.msk.f32.gmra.mxu1 %vm365_vm1, %v5812_v26  ;;  %v4656_v9 = vadd.f32 %v9765_v52, %v10852_v2  ;;  %v5489_v32 = vadd.f32 %v10282_v11, %v5211_v29  ;;  %v5815_v50 = vld [vmem:[#allocation2 + $0x19a] sm:$0xff]  ;;  %v4657_v52 = vadd.f32 %v9781_v56, %v9735_v62  ;;  %v6845_v2 = vld [vmem:[%s6946_s16 + $0x88] sm:$0xff] }
 0x696   : > { %v4658_v56 = vadd.f32 %v9793_v21, %v9747_v40  ;;  %v4659_v29 = vadd.f32 %v9807_v55, %v9759_v38 }
 0x697   : > { %6106 = vst.msk [vmem:[%s10176_s23 + $0x58] sm:$0xff] %vm365_vm1, %v6074_v37  ;;  %v5155_v60 = vpop.f32.mrf.mxu2  ;;  %v4934_v47 = vadd.f32 %v10106_v35, %v4656_v9  ;;  %v5767_v14 = vadd.f32 %v10284_v39, %v5489_v32  ;;  %v4935_v39 = vadd.f32 %v10115_v43, %v4657_v52  ;;  %v4660_v32 = vadd.f32 %v9823_v33, %v9771_v41 }
 0x698   : > { %v5433_v28 = vpop.f32.mrf.mxu3  ;;  %v4936_v43 = vadd.f32 %v10121_v6, %v4658_v56  ;;  %v4937_v21 = vadd.f32 %v10127_v12, %v4659_v29 }
 0x699   : > { %v5212_v37 = vadd.f32 %v5146_v25, %v4934_v47  ;;  %v5213_v27 = vadd.f32 %v5149_v15, %v4935_v39  ;;  %v4938_v55 = vadd.f32 %v10130_v45, %v4660_v32  ;;  %v4662_v39 = vadd.f32 %v9851_v48, %v9795_v57  ;;  %v10858_v32 = vld [vmem:[#allocation42_spill] sm:$0xff] }
 0x69a   : > { %v5971_v19 = vpop.f32.mrf.mxu1  ;;  %v5214_v22 = vadd.f32 %v5152_v13, %v4936_v43 }
 0x69b   : > { %v6043_v24 = vadd.f32 %v5971_v19, %v5765_v44  ;;  %v5490_v11 = vadd.f32 %v5424_v63, %v5212_v37  ;;  %v5816_v19 = vld [vmem:[#allocation2 + $0x1a2] sm:$0xff]  ;;  %v5491_v63 = vadd.f32 %v5427_v30, %v5213_v27 }
 0x69d   : > { %v6075_v1 = vadd.f32 %v6840_v61, %v6043_v24  ;;  %6797 = vmatmul.msk.f32.gmra.mxu1 %vm365_vm1, %v10097_v53  ;;  %v6841_v53 = vld [vmem:[%s6946_s16 + $0x68] sm:$0xff]  ;;  %v5768_v44 = vadd.f32 %v5702_v20, %v5490_v11  ;;  %v5769_v20 = vadd.f32 %v5705_v42, %v5491_v63  ;;  %v5215_v42 = vadd.f32 %v5155_v60, %v4937_v21  ;;  %v6847_v11 = vld [vmem:[%s6946_s16 + $0x98] sm:$0xff] }
 0x69f   : > { %6107 = vst.msk [vmem:[%s10176_s23 + $0x60] sm:$0xff] %vm365_vm1, %v6075_v1  ;;  %v5158_v35 = vpop.f32.mrf.mxu2  ;;  %v6843_v1 = vld [vmem:[%s6946_s16 + $0x78] sm:$0xff]  ;;  %v5493_v38 = vadd.f32 %v5433_v28, %v5215_v42 }
 0x6a0   : > { %v5436_v61 = vpop.f32.mrf.mxu3 }
 0x6a2   : > { %v5974_v0 = vpop.f32.mrf.mxu1 }
 0x6a3   : > { %v6044_v46 = vadd.f32 %v5974_v0, %v5766_v4  ;;  %v6844_v4 = vld [vmem:[%s6946_s16 + $0x80] sm:$0xff] }
 0x6a5   : > { %v6076_v18 = vadd.f32 %v6841_v53, %v6044_v46  ;;  %6798 = vmatmul.msk.f32.gmra.mxu1 %vm365_vm1, %v10108_v36  ;;  %v5711_v36 = vpop.f32.mrf.mxu0  ;;  %v5492_v46 = vadd.f32 %v5430_v10, %v5214_v22  ;;  %v10853_v22 = vld [vmem:[#allocation69_spill] sm:$0xff] }
 0x6a6   : > { %v5771_v10 = vadd.f32 %v5711_v36, %v5493_v38 }
 0x6a7   : > { %6108 = vst.msk [vmem:[%s10176_s23 + $0x68] sm:$0xff] %vm365_vm1, %v6076_v18  ;;  %v5161_v58 = vpop.f32.mrf.mxu2  ;;  %v5770_v6 = vadd.f32 %v5708_v54, %v5492_v46 }
 0x6a8   : > { %v5439_v53 = vpop.f32.mrf.mxu3 }
 0x6aa   : > { %v5977_v26 = vpop.f32.mrf.mxu1 }
 0x6ab   : > { %v6045_v31 = vadd.f32 %v5977_v26, %v5767_v14  ;;  %v5216_v14 = vadd.f32 %v5158_v35, %v4938_v55  ;;  %v6846_v26 = vld [vmem:[%s6946_s16 + $0x90] sm:$0xff] }
 0x6ad   : > { %v6077_v5 = vadd.f32 %v6842_v49, %v6045_v31  ;;  %6799 = vmatmul.msk.f32.gmra.mxu1 %vm365_vm1, %v5815_v50  ;;  %v5714_v62 = vpop.f32.mrf.mxu0  ;;  %v4661_v31 = vadd.f32 %v9839_v34, %v9783_v3  ;;  %v5494_v41 = vadd.f32 %v5436_v61, %v5216_v14  ;;  %v4940_v34 = vadd.f32 %v10136_v8, %v4662_v39  ;;  %v6848_v61 = vld [vmem:[%s6946_s16 + $0xa0] sm:$0xff] }
 0x6ae   : > { %v6852_v39 = vld [vmem:[%s6946_s16 + $0xc0] sm:$0xff] }
 0x6af   : > { %6109 = vst.msk [vmem:[%s10176_s23 + $0x70] sm:$0xff] %vm365_vm1, %v6077_v5  ;;  %v5164_v13 = vpop.f32.mrf.mxu2  ;;  %v4939_v33 = vadd.f32 %v10133_v17, %v4661_v31  ;;  %v5772_v45 = vadd.f32 %v5714_v62, %v5494_v41  ;;  %v4663_v62 = vadd.f32 %v9865_v23, %v9805_v7  ;;  %v10855_v23 = vld [vmem:[#allocation37_spill] sm:$0xff]  ;;  %v10860_v31 = vld [vmem:[#allocation79_spill] sm:$0xff] }
 0x6b0   : > { %v5442_v47 = vpop.f32.mrf.mxu3 }
 0x6b1   : > { %v5217_v36 = vadd.f32 %v5161_v58, %v4939_v33  ;;  %v4941_v48 = vadd.f32 %v10139_v16, %v4663_v62  ;;  %v6849_v58 = vld [vmem:[%s6946_s16 + $0xa8] sm:$0xff] }
 0x6b2   : > { %v5980_v25 = vpop.f32.mrf.mxu1 }
 0x6b3   : > { %v6046_v24 = vadd.f32 %v5980_v25, %v5768_v44  ;;  %v5495_v44 = vadd.f32 %v5439_v53, %v5217_v36 }
 0x6b5   : > { %v6078_v59 = vadd.f32 %v6843_v1, %v6046_v24  ;;  %6800 = vmatmul.msk.f32.gmra.mxu1 %vm365_vm1, %v5816_v19  ;;  %v5717_v40 = vpop.f32.mrf.mxu0  ;;  %v5218_v19 = vadd.f32 %v5164_v13, %v4940_v34  ;;  %v10857_v13 = vld [vmem:[#allocation77_spill] sm:$0xff]  ;;  %v10863_v34 = vld [vmem:[#allocation43_spill] sm:$0xff] }
 0x6b6   : > { %v5773_v17 = vadd.f32 %v5717_v40, %v5495_v44 }
 0x6b7   : > { %6110 = vst.msk [vmem:[%s10176_s23 + $0x78] sm:$0xff] %vm365_vm1, %v6078_v59  ;;  %v5167_v37 = vpop.f32.mrf.mxu2  ;;  %v5496_v57 = vadd.f32 %v5442_v47, %v5218_v19 }
 0x6b8   : > { %v5445_v49 = vpop.f32.mrf.mxu3  ;;  %v5219_v43 = vadd.f32 %v5167_v37, %v4941_v48  ;;  %v10859_v37 = vld [vmem:[#allocation71_spill] sm:$0xff]  ;;  %v6853_v48 = vld [vmem:[%s6946_s16 + $0xc8] sm:$0xff] }
 0x6b9   : > { %v4666_v41 = vadd.f32 %v10860_v31, %v10859_v37 }
 0x6ba   : > { %v5983_v15 = vpop.f32.mrf.mxu1 }
 0x6bb   : > { %v6047_v51 = vadd.f32 %v5983_v15, %v5769_v20 }
 0x6bd   : > { %v6079_v0 = vadd.f32 %v6844_v4, %v6047_v51  ;;  %v5720_v12 = vpop.f32.mrf.mxu0  ;;  %v10854_v51 = vld [vmem:[#allocation75_spill] sm:$0xff] }
 0x6be   : > { %v5774_v56 = vadd.f32 %v5720_v12, %v5496_v57  ;;  %v4664_v4 = vadd.f32 %v10854_v51, %v10853_v22 }
 0x6bf   : > { %6111 = vst.msk [vmem:[%s10176_s23 + $0x80] sm:$0xff] %vm365_vm1, %v6079_v0  ;;  %v5170_v3 = vpop.f32.mrf.mxu2  ;;  %v5497_v0 = vadd.f32 %v5445_v49, %v5219_v43  ;;  %v10866_v43 = vld [vmem:[#allocation44_spill] sm:$0xff] }
 0x6c0   : > { %v5448_v24 = vpop.f32.mrf.mxu3  ;;  %v4942_v46 = vadd.f32 %v10855_v23, %v4664_v4  ;;  %v6854_v23 = vld [vmem:[%s6946_s16 + $0xd0] sm:$0xff] }
 0x6c2   : > { %v5986_v30 = vpop.f32.mrf.mxu1  ;;  %v5220_v40 = vadd.f32 %v5170_v3, %v4942_v46  ;;  %v10862_v3 = vld [vmem:[#allocation72_spill] sm:$0xff] }
 0x6c3   : > { %v6048_v18 = vadd.f32 %v5986_v30, %v5770_v6  ;;  %v6850_v30 = vld [vmem:[%s6946_s16 + $0xb0] sm:$0xff] }
 0x6c5   : > { %v6080_v9 = vadd.f32 %v6845_v2, %v6048_v18  ;;  %v5723_v52 = vpop.f32.mrf.mxu0  ;;  %v10856_v18 = vld [vmem:[#allocation70_spill] sm:$0xff] }
 0x6c6   : > { %v5775_v16 = vadd.f32 %v5723_v52, %v5497_v0  ;;  %v4665_v2 = vadd.f32 %v10857_v13, %v10856_v18 }
 0x6c7   : > { %6112 = vst.msk [vmem:[%s10176_s23 + $0x88] sm:$0xff] %vm365_vm1, %v6080_v9  ;;  %v5173_v8 = vpop.f32.mrf.mxu2  ;;  %v5498_v9 = vadd.f32 %v5448_v24, %v5220_v40 }
 0x6c8   : > { %v5451_v29 = vpop.f32.mrf.mxu3  ;;  %v4943_v38 = vadd.f32 %v10858_v32, %v4665_v2 }
 0x6ca   : > { %v5989_v54 = vpop.f32.mrf.mxu1 }
 0x6cb   : > { %v6049_v60 = vadd.f32 %v5989_v54, %v5771_v10  ;;  %v5221_v54 = vadd.f32 %v5173_v8, %v4943_v38 }
 0x6cd   : > { %v6081_v50 = vadd.f32 %v6846_v26, %v6049_v60  ;;  %v5726_v59 = vpop.f32.mrf.mxu0  ;;  %v6851_v60 = vld [vmem:[%s6946_s16 + $0xb8] sm:$0xff]  ;;  %v5499_v33 = vadd.f32 %v5451_v29, %v5221_v54 }
 0x6ce   : > { %v5776_v55 = vadd.f32 %v5726_v59, %v5498_v9 }
 0x6cf   : > { %6113 = vst.msk [vmem:[%s10176_s23 + $0x90] sm:$0xff] %vm365_vm1, %v6081_v50  ;;  %v5176_v6 = vpop.f32.mrf.mxu2 }
 0x6d0   : > { %v5454_v10 = vpop.f32.mrf.mxu3 }
 0x6d2   : > { %v5992_v28 = vpop.f32.mrf.mxu1 }
 0x6d3   : > { %v6050_v5 = vadd.f32 %v5992_v28, %v5772_v45  ;;  %v10861_v45 = vld [vmem:[#allocation45_spill] sm:$0xff] }
 0x6d4   : > { %v4944_v28 = vadd.f32 %v10861_v45, %v4666_v41 }
 0x6d5   : > { %v6082_v35 = vadd.f32 %v6847_v11, %v6050_v5  ;;  %v5729_v7 = vpop.f32.mrf.mxu0 }
 0x6d6   : > { %v5777_v36 = vadd.f32 %v5729_v7, %v5499_v33  ;;  %v5222_v5 = vadd.f32 %v5176_v6, %v4944_v28  ;;  %v6856_v28 = vld [vmem:[%s6946_s16 + $0xe0] sm:$0xff] }
 0x6d7   : > { %6114 = vst.msk [vmem:[%s10176_s23 + $0x98] sm:$0xff] %vm365_vm1, %v6082_v35  ;;  %v5179_v50 = vpop.f32.mrf.mxu2 }
 0x6d8   : > { %v5457_v52 = vpop.f32.mrf.mxu3 }
 0x6da   : > { %v5995_v25 = vpop.f32.mrf.mxu1 }
 0x6db   : > { %v6051_v27 = vadd.f32 %v5995_v25, %v5773_v17  ;;  %v4667_v17 = vadd.f32 %v10863_v34, %v10862_v3  ;;  %v5500_v25 = vadd.f32 %v5454_v10, %v5222_v5  ;;  %v10874_v5 = vld [vmem:[#allocation78_spill] sm:$0xff] }
 0x6dd   : > { %v6083_v1 = vadd.f32 %v6848_v61, %v6051_v27  ;;  %v5732_v47 = vpop.f32.mrf.mxu0  ;;  %v10864_v27 = vld [vmem:[#allocation17_spill] sm:$0xff] }
 0x6de   : > { %v4945_v24 = vadd.f32 %v10864_v27, %v4667_v17  ;;  %v5778_v61 = vadd.f32 %v5732_v47, %v5500_v25  ;;  %v10871_v47 = vld [vmem:[#allocation76_spill] sm:$0xff] }
 0x6df   : > { %6115 = vst.msk [vmem:[%s10176_s23 + $0xa0] sm:$0xff] %vm365_vm1, %v6083_v1  ;;  %v5182_v19 = vpop.f32.mrf.mxu2 }
 0x6e0   : > { %v5223_v59 = vadd.f32 %v5179_v50, %v4945_v24  ;;  %v5460_v57 = vpop.f32.mrf.mxu3  ;;  %v6857_v24 = vld [vmem:[%s6946_s16 + $0xe8] sm:$0xff] }
 0x6e2   : > { %v5998_v63 = vpop.f32.mrf.mxu1 }
 0x6e3   : > { %v6052_v20 = vadd.f32 %v5998_v63, %v5774_v56  ;;  %v10865_v63 = vld [vmem:[#allocation73_spill] sm:$0xff] }
 0x6e5   : > { %v6084_v15 = vadd.f32 %v6849_v58, %v6052_v20  ;;  %v5735_v35 = vpop.f32.mrf.mxu0  ;;  %v4668_v20 = vadd.f32 %v10866_v43, %v10865_v63  ;;  %v5501_v58 = vadd.f32 %v5457_v52, %v5223_v59  ;;  %v10875_v52 = vld [vmem:[#allocation41_spill] sm:$0xff]  ;;  %v10878_v59 = vld [vmem:[#allocation34_spill] sm:$0xff] }
 0x6e7   : > { %6116 = vst.msk [vmem:[%s10176_s23 + $0xa8] sm:$0xff] %vm365_vm1, %v6084_v15  ;;  %v10867_v15 = vld [vmem:[#allocation38_spill] sm:$0xff]  ;;  %v5779_v51 = vadd.f32 %v5735_v35, %v5501_v58  ;;  %v5185_v4 = vpop.f32.mrf.mxu2 }
 0x6e8   : > { %v4946_v22 = vadd.f32 %v10867_v15, %v4668_v20  ;;  %v5463_v6 = vpop.f32.mrf.mxu3 }
 0x6ea   : > { %v6001_v53 = vpop.f32.mrf.mxu1  ;;  %v5224_v29 = vadd.f32 %v5182_v19, %v4946_v22  ;;  %v6858_v22 = vld [vmem:[%s6946_s16 + $0xf0] sm:$0xff] }
 0x6eb   : > { %v6053_v21 = vadd.f32 %v6001_v53, %v5775_v16  ;;  %v10868_v16 = vld [vmem:[#allocation74_spill] sm:$0xff]  ;;  %v10869_v53 = vld [vmem:[#allocation5_spill] sm:$0xff] }
 0x6ec   : > { %v4669_v40 = vadd.f32 %v10869_v53, %v10868_v16 }
 0x6ed   : > { %v6085_v42 = vadd.f32 %v6850_v30, %v6053_v21  ;;  %v5738_v8 = vpop.f32.mrf.mxu0  ;;  %v5502_v21 = vadd.f32 %v5460_v57, %v5224_v29 }
 0x6ef   : > { %6117 = vst.msk [vmem:[%s10176_s23 + $0xb0] sm:$0xff] %vm365_vm1, %v6085_v42  ;;  %v10870_v42 = vld [vmem:[#allocation4_spill] sm:$0xff]  ;;  %v5780_v13 = vadd.f32 %v5738_v8, %v5502_v21  ;;  %v5188_v38 = vpop.f32.mrf.mxu2 }
 0x6f0   : > { %v4947_v18 = vadd.f32 %v10870_v42, %v4669_v40  ;;  %v5466_v50 = vpop.f32.mrf.mxu3 }
 0x6f2   : > { %v6004_v12 = vpop.f32.mrf.mxu1  ;;  %v5225_v9 = vadd.f32 %v5185_v4, %v4947_v18 }
 0x6f3   : > { %v6054_v14 = vadd.f32 %v6004_v12, %v5776_v55  ;;  %v6855_v55 = vld [vmem:[%s6946_s16 + $0xd8] sm:$0xff] }
 0x6f4   : > { %v10872_v12 = vld [vmem:[#allocation32_spill] sm:$0xff] }
 0x6f5   : > { %v6086_v26 = vadd.f32 %v6851_v60, %v6054_v14  ;;  %v5741_v30 = vpop.f32.mrf.mxu0  ;;  %v4670_v54 = vadd.f32 %v10872_v12, %v10871_v47  ;;  %v5503_v14 = vadd.f32 %v5463_v6, %v5225_v9  ;;  %v10873_v60 = vld [vmem:[#allocation6_spill] sm:$0xff] }
 0x6f7   : > { %6118 = vst.msk [vmem:[%s10176_s23 + $0xb8] sm:$0xff] %vm365_vm1, %v6086_v26  ;;  %v4948_v26 = vadd.f32 %v10873_v60, %v4670_v54  ;;  %v5781_v37 = vadd.f32 %v5741_v30, %v5503_v14 }
 0x6f8   : > { %v5469_v34 = vpop.f32.mrf.mxu3 }
 0x6f9   : > { %v5226_v33 = vadd.f32 %v5188_v38, %v4948_v26 }
 0x6fa   : > { %v6007_v49 = vpop.f32.mrf.mxu1 }
 0x6fb   : > { %v6055_v11 = vadd.f32 %v6007_v49, %v5777_v36  ;;  %v5191_v49 = vpop.f32.mrf.mxu2  ;;  %v5504_v35 = vadd.f32 %v5466_v50, %v5226_v33 }
 0x6fd   : > { %v6087_v44 = vadd.f32 %v6852_v39, %v6055_v11  ;;  %v5744_v31 = vpop.f32.mrf.mxu0  ;;  %v4671_v11 = vadd.f32 %v10875_v52, %v10874_v5  ;;  %v10876_v39 = vld [vmem:[#allocation8_spill] sm:$0xff] }
 0x6fe   : > { %v5782_v3 = vadd.f32 %v5744_v31, %v5504_v35 }
 0x6ff   : > { %6119 = vst.msk [vmem:[%s10176_s23 + $0xc0] sm:$0xff] %vm365_vm1, %v6087_v44  ;;  %v4949_v44 = vadd.f32 %v10876_v39, %v4671_v11 }
 0x700   : > { %v5472_v15 = vpop.f32.mrf.mxu3 }
 0x701   : > { %v5227_v25 = vadd.f32 %v5191_v49, %v4949_v44 }
 0x702   : > { %v6010_v1 = vpop.f32.mrf.mxu1 }
 0x703   : > { %v6056_v62 = vadd.f32 %v6010_v1, %v5778_v61  ;;  %v10877_v1 = vld [vmem:[#allocation80_spill] sm:$0xff]  ;;  %v5505_v57 = vadd.f32 %v5469_v34, %v5227_v25 }
 0x705   : > { %v6088_v56 = vadd.f32 %v6853_v48, %v6056_v62  ;;  %v5747_v27 = vpop.f32.mrf.mxu0  ;;  %v4672_v62 = vadd.f32 %v10878_v59, %v10877_v1  ;;  %v5194_v48 = vpop.f32.mrf.mxu2 }
 0x706   : > { %v5783_v63 = vadd.f32 %v5747_v27, %v5505_v57 }
 0x707   : > { %6120 = vst.msk [vmem:[%s10176_s23 + $0xc8] sm:$0xff] %vm365_vm1, %v6088_v56  ;;  %v10879_v56 = vld [vmem:[#allocation11_spill] sm:$0xff] }
 0x708   : > { %v4950_v8 = vadd.f32 %v10879_v56, %v4672_v62 }
 0x70a   : > { %v6013_v0 = vpop.f32.mrf.mxu1  ;;  %v5228_v20 = vadd.f32 %v5194_v48, %v4950_v8 }
 0x70b   : > { %v6057_v7 = vadd.f32 %v6013_v0, %v5779_v51 }
 0x70c   : > { %v5506_v0 = vadd.f32 %v5472_v15, %v5228_v20 }
 0x70d   : > { %v6089_v46 = vadd.f32 %v6854_v23, %v6057_v7  ;;  %v5750_v4 = vpop.f32.mrf.mxu0 }
 0x70e   : > { %v5784_v29 = vadd.f32 %v5750_v4, %v5506_v0 }
 0x70f   : > { %6121 = vst.msk [vmem:[%s10176_s23 + $0xd0] sm:$0xff] %vm365_vm1, %v6089_v46  ;;  %v6859_v46 = vld [vmem:[%s6946_s16 + $0xf8] sm:$0xff] }
 0x712   : > { %v6016_v2 = vpop.f32.mrf.mxu1 }
 0x713   : > { %v6058_v32 = vadd.f32 %v6016_v2, %v5780_v13 }
 0x715   : > { %v6090_v10 = vadd.f32 %v6855_v55, %v6058_v32 }
 0x717   : > { %6122 = vst.msk [vmem:[%s10176_s23 + $0xd8] sm:$0xff] %vm365_vm1, %v6090_v10 }
 0x71a   : > { %v6019_v41 = vpop.f32.mrf.mxu1 }
 0x71b   : > { %v6059_v45 = vadd.f32 %v6019_v41, %v5781_v37 }
 0x71d   : > { %v6091_v36 = vadd.f32 %v6856_v28, %v6059_v45 }
 0x71f   : > { %6123 = vst.msk [vmem:[%s10176_s23 + $0xe0] sm:$0xff] %vm365_vm1, %v6091_v36 }
 0x722   : > { %v6022_v17 = vpop.f32.mrf.mxu1 }
 0x723   : > { %v6060_v19 = vadd.f32 %v6022_v17, %v5782_v3 }
 0x725   : > { %v6092_v61 = vadd.f32 %v6857_v24, %v6060_v19 }
 0x727   : > { %6124 = vst.msk [vmem:[%s10176_s23 + $0xe8] sm:$0xff] %vm365_vm1, %v6092_v61 }
 0x72a   : > { %v6025_v43 = vpop.f32.mrf.mxu1 }
 0x72b   : > { %v6061_v58 = vadd.f32 %v6025_v43, %v5783_v63 }
 0x72d   : > { %v6093_v51 = vadd.f32 %v6858_v22, %v6061_v58 }
 0x72f   : > { %6125 = vst.msk [vmem:[%s10176_s23 + $0xf0] sm:$0xff] %vm365_vm1, %v6093_v51 }
 0x732   : > { %v6028_v7 = vpop.f32.mrf.mxu1 }
 0x733   : > { %v6062_v23 = vadd.f32 %v6028_v7, %v5784_v29 }
 0x735   : > { %v6094_v16 = vadd.f32 %v6859_v46, %v6062_v23 }
 0x737   : > { %6126 = vst.msk [vmem:[%s10176_s23 + $0xf8] sm:$0xff] %vm365_vm1, %v6094_v16 }
 0x738 PF: > { %s19_s30 = sadd.s32 1, %s6866_s30  }
 0x739   : > { %p16_p4 = scmp.ge.s32.totalorder %s19_s30, 4  }
 0x73b   :  { %18 = sbr.rel (!%p16_p4) target bundleno = 1 (0x1), region = 104 }

</bundles_post_ra>
